<compile_context>
chip_gen: v7x
topology: tpu7x:2x2x1
jax: 0.10.0
libtpu: 0.0.40
codegen_flags: <defaults>
</compile_context>

<pallas_src>
import jax
import jax.numpy as jnp
import numpy as np
from jax import lax
from jax.experimental import pallas as pl
from jax.experimental.pallas import tpu as pltpu

# SPINE hyper-parameters (params dict in the PyTorch module) -- static constants.
RL_COEF = 1.0          # params['RL_coef']
PSL_COEF = 1.0         # params['PSL_coef']
SIM_COEF = 1.0         # params['simloss_coef']
SPARSITY = 0.85        # params['sparsity']
RHO_STAR = 1.0 - SPARSITY


def _round_up(a, m):
    return (a + m - 1) // m * m


def _chip_info():
    """Returns (tensorcores_per_device, usable VMEM budget bytes, MXU edge)."""
    try:
        kind = jax.devices()[0].device_kind.lower()
    except Exception:
        kind = ""
    # v4 / v5p megacore and v7x expose 2 TensorCores behind one device.
    num_cores = 2 if ("v4" in kind or "v5p" in kind or "7" in kind) else 1
    try:
        vmem_phys = int(pltpu.get_tpu_info().vmem_capacity_bytes)
    except Exception:
        vmem_phys = (64 << 20) if "7" in kind else (128 << 20)
    # ~22% headroom for Mosaic internal scratch / semaphores:
    # v7x: ~50 MiB of 64; v5e/v6e: ~100 MiB of 128.
    vmem_budget = int(vmem_phys * 0.78)
    is_v5e = ("v5 lite" in kind) or ("v5e" in kind) or ("v5lite" in kind)
    mxu_edge = 128 if is_v5e else 256
    return num_cores, vmem_budget, mxu_edge


def _vmem_bytes_needed(tb, dp, hp, w_bufs):
    """Accurate per-core VMEM budget (no 4x fudge factor)."""
    stream = 2 * (2 * tb * dp * 4)                    # x, y tiles (double-buffered)
    stream += 2 * (tb * dp + tb * hp) * 4             # out, h tiles (double-buffered)
    weights = w_bufs * (2 * dp * hp * 2 + (dp + hp) * 4)   # bf16 weights + f32 biases
    accums = 2 * ((dp * dp + dp * hp + hp * hp) * 4         # gram partial outputs
                  + 8 * (3 * hp + dp) * 4)                   # column/sublane stat partials
    return stream + weights + accums + (2 << 20)             # + slack


def _make_spine_kernel(nb_per_core, tb, b_real):
    """Kernel factory; nb_per_core/tb/b_real are static Python ints."""
    tn_dims = (((0,), (0,)), ((), ()))   # contract over the batch-tile axis (X^T X)

    def _fold8(a):
        # (TB, C) -> (8, C) sublane partials: pure VPU adds, no cross-lane reduce.
        r, c = a.shape
        return jnp.sum(a.reshape(r // 8, 8, c), axis=0)

    def kernel(x_ref, y_ref, w1_ref, b1_ref, w2_ref, b2_ref,
               out_ref, h_ref, gxx_ref, gxh_ref, ghh_ref,
               csum_ref, csq_ref, czero_ref, csse_ref):
        c = pl.program_id(0)     # core / megacore axis
        i = pl.program_id(1)     # batch-tile axis (reduction)

        @pl.when(i == 0)
        def _init():
            gxx_ref[...] = jnp.zeros_like(gxx_ref)
            gxh_ref[...] = jnp.zeros_like(gxh_ref)
            ghh_ref[...] = jnp.zeros_like(ghh_ref)
            csum_ref[...] = jnp.zeros_like(csum_ref)
            csq_ref[...] = jnp.zeros_like(csq_ref)
            czero_ref[...] = jnp.zeros_like(czero_ref)
            csse_ref[...] = jnp.zeros_like(csse_ref)

        x = x_ref[...]                                     # (TB, Dp) f32
        y = y_ref[...]                                     # (TB, Dp) f32

        # Encoder / decoder: bf16 MXU matmuls, f32 accumulation, f32 bias + clamp.
        lin1 = jnp.dot(x.astype(jnp.bfloat16), w1_ref[...],
                       preferred_element_type=jnp.float32) + b1_ref[...]
        h = jnp.clip(lin1, 0.0, 1.0)                       # f32 clamp -> exact zeros
        out = jnp.dot(h.astype(jnp.bfloat16), w2_ref[...],
                      preferred_element_type=jnp.float32) + b2_ref[...]
        # TODO(synk): optionally emit bf16 out/h on v5e to halve writeback; kept
        # f32 here so the exact-zero sparsity semantics need no extra plumbing.
        out_ref[...] = out
        h_ref[...] = h

        # ---- batch-row validity mask (zero-padded rows must not pollute losses) ----
        row0 = (c * nb_per_core + i) * tb
        rows = lax.broadcasted_iota(jnp.int32, (tb, 1), 0) + row0
        valid = (rows < b_real).astype(jnp.float32)        # (TB, 1)

        hm = h * valid
        hm_sq = hm * hm
        diff = (out - y) * valid

        # ---- column/sublane-partial statistics (no per-step scalar reductions) ----
        csum_ref[...] += _fold8(hm)[None]                          # sum(h)
        csq_ref[...] += _fold8(hm_sq)[None]                        # sum(h^2)
        # Exact-zero count is valid only because the f32 clamp yields exact zeros.
        czero_ref[...] += _fold8(jnp.where(h == 0.0, valid, 0.0))[None]
        csse_ref[...] += _fold8(diff * diff)[None]                 # sum((out-y)^2)

        # ---- row-normalize via EUP rsqrt (guard all-zero rows; torch would NaN) ----
        xssq = jnp.sum(x * x, axis=1, keepdims=True)
        hssq = jnp.sum(hm_sq, axis=1, keepdims=True)
        xn = (x * jnp.where(xssq > 0.0, lax.rsqrt(xssq), 0.0)).astype(jnp.bfloat16)
        hn = (hm * jnp.where(hssq > 0.0, lax.rsqrt(hssq), 0.0)).astype(jnp.bfloat16)

        # ---- feature-space gram accumulation (bf16 MXU operands, f32 accumulate);
        #      no (B,B) temporaries:  ||XnXn^T - HnHn^T||_F^2
        #        = ||Xn^T Xn||^2 - 2||Xn^T Hn||^2 + ||Hn^T Hn||^2
        # TODO(synk): for very large B consider compensated accumulation of the
        # three squared-norm terms (catastrophic-cancellation headroom).
        gxx_ref[...] += lax.dot_general(xn, xn, tn_dims,
                                        preferred_element_type=jnp.float32)[None]
        gxh_ref[...] += lax.dot_general(xn, hn, tn_dims,
                                        preferred_element_type=jnp.float32)[None]
        ghh_ref[...] += lax.dot_general(hn, hn, tn_dims,
                                        preferred_element_type=jnp.float32)[None]

    return kernel


def spine_forward(batch_x, batch_y, w1, b1, w2, b2, *, batch_tile=None):
    """Returns (out, h, total_loss, [rl, psl, asl, sim], sparsity_ratio).

    w1 is (inp_dim, hdim), w2 is (hdim, inp_dim) -- i.e. nn.Linear weights
    pre-transposed so the kernel computes x @ W + b.
    """
    B, D = batch_x.shape
    H = w1.shape[1]
    assert w1.shape == (D, H) and w2.shape == (H, D)
    assert b1.shape == (H,) and b2.shape == (D,)

    num_cores, vmem_budget, mxu_edge = _chip_info()

    # Lane padding: D/H to multiples of 128 (lane-dense matmuls + unmasked stores).
    dp = _round_up(D, 128)
    hp = _round_up(H, 128)

    # Batch tile: grow to the VMEM budget, aligned to the MXU edge
    # (256 on v6e/v7x, 128 on v5e); tiny batches just get sublane (8) alignment.
    per_core = -(-B // num_cores)
    if batch_tile is not None:
        tb = _round_up(int(batch_tile), 8)
    elif per_core <= mxu_edge:
        tb = _round_up(max(per_core, 8), 8)
    else:
        tb = mxu_edge
        cand = min(1024, _round_up(per_core, mxu_edge))
        while cand > mxu_edge:
            if _vmem_bytes_needed(cand, dp, hp, 1) <= vmem_budget:
                tb = cand
                break
            cand -= mxu_edge
    nb = -(-B // (num_cores * tb))            # batch tiles per core
    b_pad = num_cores * nb * tb

    f32 = jnp.float32
    xp = jnp.pad(batch_x.astype(f32), ((0, b_pad - B), (0, dp - D)))
    yp = jnp.pad(batch_y.astype(f32), ((0, b_pad - B), (0, dp - D)))
    w1p = jnp.pad(w1.astype(f32), ((0, dp - D), (0, hp - H))).astype(jnp.bfloat16)
    w2p = jnp.pad(w2.astype(f32), ((0, hp - H), (0, dp - D))).astype(jnp.bfloat16)
    b1p = jnp.pad(b1.astype(f32), (0, hp - H)).reshape(1, hp)
    b2p = jnp.pad(b2.astype(f32), (0, dp - D)).reshape(1, dp)

    kernel = _make_spine_kernel(nb, tb, B)

    out_shape = (
        jax.ShapeDtypeStruct((b_pad, dp), f32),            # out
        jax.ShapeDtypeStruct((b_pad, hp), f32),            # h
        jax.ShapeDtypeStruct((num_cores, dp, dp), f32),    # Xn^T Xn partials
        jax.ShapeDtypeStruct((num_cores, dp, hp), f32),    # Xn^T Hn partials
        jax.ShapeDtypeStruct((num_cores, hp, hp), f32),    # Hn^T Hn partials
        jax.ShapeDtypeStruct((num_cores, 8, hp), f32),     # sum(h)       partials
        jax.ShapeDtypeStruct((num_cores, 8, hp), f32),     # sum(h^2)     partials
        jax.ShapeDtypeStruct((num_cores, 8, hp), f32),     # zero counts  partials
        jax.ShapeDtypeStruct((num_cores, 8, dp), f32),     # sum((out-y)^2) partials
    )

    def _call(single_buffer_weights):
        wkw = dict(pipeline_mode=pl.Buffered(1)) if single_buffer_weights else {}
        est = _vmem_bytes_needed(tb, dp, hp, 1 if single_buffer_weights else 2)
        vmem_limit = int(min(max(est, 32 << 20), vmem_budget))

        def batch_spec(cols):
            return pl.BlockSpec((tb, cols), lambda c, i: (c * nb + i, 0))

        def core_spec(shp):
            return pl.BlockSpec((1,) + shp, lambda c, i: (c, 0, 0))

        grid_spec = pltpu.PrefetchScalarGridSpec(
            num_scalar_prefetch=0,
            grid=(num_cores, nb),
            in_specs=[
                batch_spec(dp),                                       # x tile
                batch_spec(dp),                                       # y tile
                pl.BlockSpec((dp, hp), lambda c, i: (0, 0), **wkw),   # w1 (resident)
                pl.BlockSpec((1, hp), lambda c, i: (0, 0), **wkw),    # b1
                pl.BlockSpec((hp, dp), lambda c, i: (0, 0), **wkw),   # w2 (resident)
                pl.BlockSpec((1, dp), lambda c, i: (0, 0), **wkw),    # b2
            ],
            out_specs=(
                batch_spec(dp),                                       # out tile
                batch_spec(hp),                                       # h tile
                core_spec((dp, dp)), core_spec((dp, hp)), core_spec((hp, hp)),
                core_spec((8, hp)), core_spec((8, hp)), core_spec((8, hp)),
                core_spec((8, dp)),
            ),
        )
        res = pl.pallas_call(
            kernel,
            out_shape=out_shape,
            grid_spec=grid_spec,
            compiler_params=pltpu.CompilerParams(
                # Core axis is split across TensorCores (v7x/v4/v5p); the batch
                # axis carries the loss accumulators -> reduction ("arbitrary").
                dimension_semantics=("parallel", "arbitrary"),
                vmem_limit_bytes=vmem_limit,
            ),
        )(xp, yp, w1p, b1p, w2p, b2p)
        jax.block_until_ready(res)
        return res

    try:
        outs = _call(True)        # single-buffered resident weights
    except Exception:             # pl.Buffered(1) unsupported -> default buffering
        outs = _call(False)

    (out_p, h_p, gxx_p, gxh_p, ghh_p, csum_p, csq_p, czero_p, csse_p) = outs

    # ---- combine per-core partials; tiny finalize arithmetic in plain JAX ----
    gxx = jnp.sum(gxx_p, axis=0)
    gxh = jnp.sum(gxh_p, axis=0)
    ghh = jnp.sum(ghh_p, axis=0)
    col_sum_h = jnp.sum(csum_p[:, :, :H], axis=(0, 1))      # (H,)
    sum_h = jnp.sum(col_sum_h)
    sum_h2 = jnp.sum(csq_p[:, :, :H])
    n_zero = jnp.sum(czero_p[:, :, :H])
    sse = jnp.sum(csse_p[:, :, :D])

    rl = RL_COEF * sse / (B * D)
    psl = PSL_COEF * (sum_h - sum_h2) / (B * H)   # sum(h*(1-h)) = sum(h) - sum(h^2)
    t = jnp.maximum(col_sum_h / B - RHO_STAR, 0.0)
    asl = jnp.sum(t * t) / H
    spars = n_zero / (B * H)
    sim = SIM_COEF * (jnp.sum(gxx * gxx) - 2.0 * jnp.sum(gxh * gxh)
                      + jnp.sum(ghh * ghh)) / (B * B)
    total = rl + psl + asl + sim

    return out_p[:B, :D], h_p[:B, :H], total, [rl, psl, asl, sim], spars


def ref_forward(x, y, w1, b1, w2, b2):
    """Pure-JAX reference mirroring the PyTorch module (bf16 MXU inputs mirrored)."""
    B, D = x.shape
    H = w1.shape[1]
    bf = jnp.bfloat16
    h = jnp.clip(jnp.dot(x.astype(bf), w1.astype(bf),
                         preferred_element_type=jnp.float32) + b1, 0.0, 1.0)
    out = jnp.dot(h.astype(bf), w2.astype(bf),
                  preferred_element_type=jnp.float32) + b2
    rl = RL_COEF * jnp.mean((out - y) ** 2)
    psl = PSL_COEF * jnp.sum(h * (1.0 - h)) / (B * H)
    t = jnp.maximum(jnp.mean(h, axis=0) - RHO_STAR, 0.0)
    asl = jnp.sum(t * t) / H
    spars = jnp.sum(h == 0.0) / (B * H)
    xn = x / jnp.linalg.norm(x, axis=1, keepdims=True)
    hn = h / jnp.linalg.norm(h, axis=1, keepdims=True)
    # Mirror the kernel's bf16 MXU operands for the similarity grams.
    xn16, hn16 = xn.astype(bf), hn.astype(bf)
    g1 = jnp.dot(xn16, xn16.T, preferred_element_type=jnp.float32)
    g2 = jnp.dot(hn16, hn16.T, preferred_element_type=jnp.float32)
    sim = SIM_COEF * jnp.mean((g1 - g2) ** 2)
    return out, h, rl + psl + asl + sim, [rl, psl, asl, sim], spars


if __name__ == "__main__":
    # Small demo shapes (SPINE: inp_dim=GloVe dim, hdim=sparse dim). Chosen so the
    # lane padding (100->128, 200->256), the batch-row mask (30->32) and the
    # multi-tile accumulation path (batch_tile=8 -> 4 tiles) are all exercised.
    B, D, H = 30, 100, 200
    TB = 8

    key = jax.random.PRNGKey(0)
    kx, ky, kw1, kb1, kw2, kb2 = jax.random.split(key, 6)

    batch_x = jax.random.normal(kx, (B, D), dtype=jnp.float32)
    batch_y = batch_x + 0.01 * jax.random.normal(ky, (B, D), dtype=jnp.float32)

    # nn.Linear-style init: U(-1/sqrt(fan_in), 1/sqrt(fan_in)); weights stored
    # pre-transposed as (in, out).
    bnd1 = 1.0 / np.sqrt(D)
    w1 = jax.random.uniform(kw1, (D, H), jnp.float32, -bnd1, bnd1)
    b1 = jax.random.uniform(kb1, (H,), jnp.float32, -bnd1, bnd1)
    bnd2 = 1.0 / np.sqrt(H)
    w2 = jax.random.uniform(kw2, (H, D), jnp.float32, -bnd2, bnd2)
    b2 = jax.random.uniform(kb2, (D,), jnp.float32, -bnd2, bnd2)

    out, h, total, losses, spars = spine_forward(batch_x, batch_y, w1, b1, w2, b2,
                                                 batch_tile=TB)
    jax.block_until_ready((out, h, total, losses, spars))

    # Correctness check against the pure-JAX reference (same bf16 matmul inputs;
    # SimLoss checked against the original batch-space (B,B) formulation).
    r_out, r_h, r_total, r_losses, r_spars = ref_forward(batch_x, batch_y, w1, b1, w2, b2)
    np.testing.assert_allclose(np.asarray(out), np.asarray(r_out), rtol=2e-3, atol=2e-4)
    np.testing.assert_allclose(np.asarray(h), np.asarray(r_h), rtol=2e-3, atol=2e-4)
    np.testing.assert_allclose(float(total), float(r_total), rtol=5e-3, atol=2e-4)
    for a, b in zip(losses, r_losses):
        np.testing.assert_allclose(float(a), float(b), rtol=5e-3, atol=2e-4)
    np.testing.assert_allclose(float(spars), float(r_spars), rtol=5e-3, atol=1e-3)

    print("KERNEL_OK")
</pallas_src>

<mosaic_0001>
module attributes {stable_mosaic.version = 11 : i64} {
  func.func @kernel(%arg0: i32, %arg1: i32, %arg2: memref<8x128xf32, #tpu.memory_space<vmem>>, %arg3: memref<8x128xf32, #tpu.memory_space<vmem>>, %arg4: memref<128x256xbf16, #tpu.memory_space<vmem>>, %arg5: memref<1x256xf32, #tpu.memory_space<vmem>>, %arg6: memref<256x128xbf16, #tpu.memory_space<vmem>>, %arg7: memref<1x128xf32, #tpu.memory_space<vmem>>, %arg8: memref<8x128xf32, #tpu.memory_space<vmem>>, %arg9: memref<8x256xf32, #tpu.memory_space<vmem>>, %arg10: memref<1x128x128xf32, #tpu.memory_space<vmem>>, %arg11: memref<1x128x256xf32, #tpu.memory_space<vmem>>, %arg12: memref<1x256x256xf32, #tpu.memory_space<vmem>>, %arg13: memref<1x8x256xf32, #tpu.memory_space<vmem>>, %arg14: memref<1x8x256xf32, #tpu.memory_space<vmem>>, %arg15: memref<1x8x256xf32, #tpu.memory_space<vmem>>, %arg16: memref<1x8x128xf32, #tpu.memory_space<vmem>>) attributes {dimension_semantics = [#tpu.dimension_semantics<parallel>, #tpu.dimension_semantics<arbitrary>], iteration_bounds = array<i64: 1, 4>, scalar_prefetch = 0 : i64, scratch_operands = 0 : i64, tpu.core_type = #tpu.core_type<tc>, window_params = [{transform_indices = @transform_0, window_bounds = array<i64: 8, 128>}, {transform_indices = @transform_1, window_bounds = array<i64: 8, 128>}, {pipeline_mode = #tpu.pipeline_mode<synchronous>, transform_indices = @transform_2, window_bounds = array<i64: 128, 256>}, {pipeline_mode = #tpu.pipeline_mode<synchronous>, transform_indices = @transform_3, window_bounds = array<i64: 1, 256>}, {pipeline_mode = #tpu.pipeline_mode<synchronous>, transform_indices = @transform_4, window_bounds = array<i64: 256, 128>}, {pipeline_mode = #tpu.pipeline_mode<synchronous>, transform_indices = @transform_5, window_bounds = array<i64: 1, 128>}, {transform_indices = @transform_6, window_bounds = array<i64: 8, 128>}, {transform_indices = @transform_7, window_bounds = array<i64: 8, 256>}, {transform_indices = @transform_8, window_bounds = array<i64: 1, 128, 128>}, {transform_indices = @transform_9, window_bounds = array<i64: 1, 128, 256>}, {transform_indices = @transform_10, window_bounds = array<i64: 1, 256, 256>}, {transform_indices = @transform_11, window_bounds = array<i64: 1, 8, 256>}, {transform_indices = @transform_12, window_bounds = array<i64: 1, 8, 256>}, {transform_indices = @transform_13, window_bounds = array<i64: 1, 8, 256>}, {transform_indices = @transform_14, window_bounds = array<i64: 1, 8, 128>}]} {
    %c0_i32 = arith.constant 0 : i32
    %0 = arith.cmpi eq, %arg1, %c0_i32 : i32
    %1 = arith.extui %0 : i1 to i32
    %c0_i32_0 = arith.constant 0 : i32
    %2 = arith.cmpi ne, %1, %c0_i32_0 : i32
    scf.if %2 {
      %cst_76 = arith.constant 0.000000e+00 : f32
      %106 = vector.broadcast %cst_76 : f32 to vector<1x128x128xf32>
      %c0_77 = arith.constant 0 : index
      %c0_78 = arith.constant 0 : index
      %c0_79 = arith.constant 0 : index
      %107 = vector.load %arg10[%c0_77, %c0_78, %c0_79] : memref<1x128x128xf32, #tpu.memory_space<vmem>>, vector<1x128x128xf32>
      tpu.vector_store %arg10[%c0_77, %c0_78, %c0_79], %106 {strides = array<i32>} : memref<1x128x128xf32, #tpu.memory_space<vmem>>, vector<1x128x128xf32>,
      %cst_80 = arith.constant 0.000000e+00 : f32
      %108 = vector.broadcast %cst_80 : f32 to vector<1x128x256xf32>
      %c0_81 = arith.constant 0 : index
      %c0_82 = arith.constant 0 : index
      %c0_83 = arith.constant 0 : index
      %109 = vector.load %arg11[%c0_81, %c0_82, %c0_83] : memref<1x128x256xf32, #tpu.memory_space<vmem>>, vector<1x128x256xf32>
      tpu.vector_store %arg11[%c0_81, %c0_82, %c0_83], %108 {strides = array<i32>} : memref<1x128x256xf32, #tpu.memory_space<vmem>>, vector<1x128x256xf32>,
      %cst_84 = arith.constant 0.000000e+00 : f32
      %110 = vector.broadcast %cst_84 : f32 to vector<1x256x256xf32>
      %c0_85 = arith.constant 0 : index
      %c0_86 = arith.constant 0 : index
      %c0_87 = arith.constant 0 : index
      %111 = vector.load %arg12[%c0_85, %c0_86, %c0_87] : memref<1x256x256xf32, #tpu.memory_space<vmem>>, vector<1x256x256xf32>
      tpu.vector_store %arg12[%c0_85, %c0_86, %c0_87], %110 {strides = array<i32>} : memref<1x256x256xf32, #tpu.memory_space<vmem>>, vector<1x256x256xf32>,
      %cst_88 = arith.constant 0.000000e+00 : f32
      %112 = vector.broadcast %cst_88 : f32 to vector<1x8x256xf32>
      %c0_89 = arith.constant 0 : index
      %c0_90 = arith.constant 0 : index
      %c0_91 = arith.constant 0 : index
      %113 = vector.load %arg13[%c0_89, %c0_90, %c0_91] : memref<1x8x256xf32, #tpu.memory_space<vmem>>, vector<1x8x256xf32>
      tpu.vector_store %arg13[%c0_89, %c0_90, %c0_91], %112 {strides = array<i32>} : memref<1x8x256xf32, #tpu.memory_space<vmem>>, vector<1x8x256xf32>,
      %cst_92 = arith.constant 0.000000e+00 : f32
      %114 = vector.broadcast %cst_92 : f32 to vector<1x8x256xf32>
      %c0_93 = arith.constant 0 : index
      %c0_94 = arith.constant 0 : index
      %c0_95 = arith.constant 0 : index
      %115 = vector.load %arg14[%c0_93, %c0_94, %c0_95] : memref<1x8x256xf32, #tpu.memory_space<vmem>>, vector<1x8x256xf32>
      tpu.vector_store %arg14[%c0_93, %c0_94, %c0_95], %114 {strides = array<i32>} : memref<1x8x256xf32, #tpu.memory_space<vmem>>, vector<1x8x256xf32>,
      %cst_96 = arith.constant 0.000000e+00 : f32
      %116 = vector.broadcast %cst_96 : f32 to vector<1x8x256xf32>
      %c0_97 = arith.constant 0 : index
      %c0_98 = arith.constant 0 : index
      %c0_99 = arith.constant 0 : index
      %117 = vector.load %arg15[%c0_97, %c0_98, %c0_99] : memref<1x8x256xf32, #tpu.memory_space<vmem>>, vector<1x8x256xf32>
      tpu.vector_store %arg15[%c0_97, %c0_98, %c0_99], %116 {strides = array<i32>} : memref<1x8x256xf32, #tpu.memory_space<vmem>>, vector<1x8x256xf32>,
      %cst_100 = arith.constant 0.000000e+00 : f32
      %118 = vector.broadcast %cst_100 : f32 to vector<1x8x128xf32>
      %c0_101 = arith.constant 0 : index
      %c0_102 = arith.constant 0 : index
      %c0_103 = arith.constant 0 : index
      %119 = vector.load %arg16[%c0_101, %c0_102, %c0_103] : memref<1x8x128xf32, #tpu.memory_space<vmem>>, vector<1x8x128xf32>
      tpu.vector_store %arg16[%c0_101, %c0_102, %c0_103], %118 {strides = array<i32>} : memref<1x8x128xf32, #tpu.memory_space<vmem>>, vector<1x8x128xf32>,
    } else {
    }
    %c0 = arith.constant 0 : index
    %c0_1 = arith.constant 0 : index
    %3 = vector.load %arg2[%c0, %c0_1] : memref<8x128xf32, #tpu.memory_space<vmem>>, vector<8x128xf32>
    %c0_2 = arith.constant 0 : index
    %c0_3 = arith.constant 0 : index
    %4 = vector.load %arg3[%c0_2, %c0_3] : memref<8x128xf32, #tpu.memory_space<vmem>>, vector<8x128xf32>
    %5 = arith.truncf %3 : vector<8x128xf32> to vector<8x128xbf16>
    %c0_4 = arith.constant 0 : index
    %c0_5 = arith.constant 0 : index
    %6 = vector.load %arg4[%c0_4, %c0_5] : memref<128x256xbf16, #tpu.memory_space<vmem>>, vector<128x256xbf16>
    %cst = arith.constant dense<0.000000e+00> : vector<8x256xf32>
    %7 = tpu.matmul %5, %6, %cst {dimension_numbers = #tpu.dot_dimension_numbers<[1], [0], [0], [1], [0, 0, 1, 1], [], []>} : vector<8x128xbf16>, vector<128x256xbf16>, vector<8x256xf32> -> vector<8x256xf32>
    %c0_6 = arith.constant 0 : index
    %c0_7 = arith.constant 0 : index
    %8 = vector.load %arg5[%c0_6, %c0_7] : memref<1x256xf32, #tpu.memory_space<vmem>>, vector<1x256xf32>
    %9 = vector.broadcast %8 : vector<1x256xf32> to vector<8x256xf32>
    %10 = arith.addf %7, %9 : vector<8x256xf32>
    %cst_8 = arith.constant 0.000000e+00 : f32
    %cst_9 = arith.constant 1.000000e+00 : f32
    %11 = vector.broadcast %cst_8 : f32 to vector<8x256xf32>
    %12 = arith.maximumf %11, %10 : vector<8x256xf32>
    %13 = vector.broadcast %cst_9 : f32 to vector<8x256xf32>
    %14 = arith.minimumf %13, %12 : vector<8x256xf32>
    %15 = arith.truncf %14 : vector<8x256xf32> to vector<8x256xbf16>
    %c0_10 = arith.constant 0 : index
    %c0_11 = arith.constant 0 : index
    %16 = vector.load %arg6[%c0_10, %c0_11] : memref<256x128xbf16, #tpu.memory_space<vmem>>, vector<256x128xbf16>
    %cst_12 = arith.constant dense<0.000000e+00> : vector<8x128xf32>
    %17 = tpu.matmul %15, %16, %cst_12 {dimension_numbers = #tpu.dot_dimension_numbers<[1], [0], [0], [1], [0, 0, 1, 1], [], []>} : vector<8x256xbf16>, vector<256x128xbf16>, vector<8x128xf32> -> vector<8x128xf32>
    %c0_13 = arith.constant 0 : index
    %c0_14 = arith.constant 0 : index
    %18 = vector.load %arg7[%c0_13, %c0_14] : memref<1x128xf32, #tpu.memory_space<vmem>>, vector<1x128xf32>
    %19 = vector.broadcast %18 : vector<1x128xf32> to vector<8x128xf32>
    %20 = arith.addf %17, %19 : vector<8x128xf32>
    %c0_15 = arith.constant 0 : index
    %c0_16 = arith.constant 0 : index
    %21 = vector.load %arg8[%c0_15, %c0_16] : memref<8x128xf32, #tpu.memory_space<vmem>>, vector<8x128xf32>
    tpu.vector_store %arg8[%c0_15, %c0_16], %20 {strides = array<i32>} : memref<8x128xf32, #tpu.memory_space<vmem>>, vector<8x128xf32>,
    %c0_17 = arith.constant 0 : index
    %c0_18 = arith.constant 0 : index
    %22 = vector.load %arg9[%c0_17, %c0_18] : memref<8x256xf32, #tpu.memory_space<vmem>>, vector<8x256xf32>
    tpu.vector_store %arg9[%c0_17, %c0_18], %14 {strides = array<i32>} : memref<8x256xf32, #tpu.memory_space<vmem>>, vector<8x256xf32>,
    %c4_i32 = arith.constant 4 : i32
    %23 = arith.muli %arg0, %c4_i32 : i32
    %24 = arith.addi %23, %arg1 : i32
    %c8_i32 = arith.constant 8 : i32
    %25 = arith.muli %24, %c8_i32 : i32
    %26 = tpu.iota {dimensions = array<i32: 0>} : vector<8x1xi32>
    %27 = vector.broadcast %25 : i32 to vector<8x1xi32>
    %28 = arith.addi %26, %27 : vector<8x1xi32>
    %c30_i32 = arith.constant 30 : i32
    %29 = vector.broadcast %c30_i32 : i32 to vector<8x1xi32>
    %30 = arith.cmpi slt, %28, %29 : vector<8x1xi32>
    %31 = arith.extui %30 : vector<8x1xi1> to vector<8x1xi32>
    %32 = arith.sitofp %31 : vector<8x1xi32> to vector<8x1xf32>
    %33 = vector.broadcast %32 : vector<8x1xf32> to vector<8x256xf32>
    %34 = arith.mulf %14, %33 : vector<8x256xf32>
    %35 = arith.mulf %34, %34 : vector<8x256xf32>
    %36 = arith.subf %20, %4 : vector<8x128xf32>
    %37 = vector.broadcast %32 : vector<8x1xf32> to vector<8x128xf32>
    %38 = arith.mulf %36, %37 : vector<8x128xf32>
    %c0_19 = arith.constant 0 : index
    %c0_20 = arith.constant 0 : index
    %c0_21 = arith.constant 0 : index
    %39 = vector.load %arg13[%c0_19, %c0_20, %c0_21] : memref<1x8x256xf32, #tpu.memory_space<vmem>>, vector<1x8x256xf32>
    %40 = vector.shape_cast %34 : vector<8x256xf32> to vector<1x8x256xf32>
    %cst_22 = arith.constant dense<0.000000e+00> : vector<8x256xf32>
    %41 = vector.multi_reduction <add>, %40, %cst_22 [0] : vector<1x8x256xf32> to vector<8x256xf32>
    %42 = vector.shape_cast %41 : vector<8x256xf32> to vector<1x8x256xf32>
    %43 = arith.addf %39, %42 : vector<1x8x256xf32>
    %c0_23 = arith.constant 0 : index
    %c0_24 = arith.constant 0 : index
    %c0_25 = arith.constant 0 : index
    %44 = vector.load %arg13[%c0_23, %c0_24, %c0_25] : memref<1x8x256xf32, #tpu.memory_space<vmem>>, vector<1x8x256xf32>
    tpu.vector_store %arg13[%c0_23, %c0_24, %c0_25], %43 {strides = array<i32>} : memref<1x8x256xf32, #tpu.memory_space<vmem>>, vector<1x8x256xf32>,
    %c0_26 = arith.constant 0 : index
    %c0_27 = arith.constant 0 : index
    %c0_28 = arith.constant 0 : index
    %45 = vector.load %arg14[%c0_26, %c0_27, %c0_28] : memref<1x8x256xf32, #tpu.memory_space<vmem>>, vector<1x8x256xf32>
    %46 = vector.shape_cast %35 : vector<8x256xf32> to vector<1x8x256xf32>
    %cst_29 = arith.constant dense<0.000000e+00> : vector<8x256xf32>
    %47 = vector.multi_reduction <add>, %46, %cst_29 [0] : vector<1x8x256xf32> to vector<8x256xf32>
    %48 = vector.shape_cast %47 : vector<8x256xf32> to vector<1x8x256xf32>
    %49 = arith.addf %45, %48 : vector<1x8x256xf32>
    %c0_30 = arith.constant 0 : index
    %c0_31 = arith.constant 0 : index
    %c0_32 = arith.constant 0 : index
    %50 = vector.load %arg14[%c0_30, %c0_31, %c0_32] : memref<1x8x256xf32, #tpu.memory_space<vmem>>, vector<1x8x256xf32>
    tpu.vector_store %arg14[%c0_30, %c0_31, %c0_32], %49 {strides = array<i32>} : memref<1x8x256xf32, #tpu.memory_space<vmem>>, vector<1x8x256xf32>,
    %c0_33 = arith.constant 0 : index
    %c0_34 = arith.constant 0 : index
    %c0_35 = arith.constant 0 : index
    %51 = vector.load %arg15[%c0_33, %c0_34, %c0_35] : memref<1x8x256xf32, #tpu.memory_space<vmem>>, vector<1x8x256xf32>
    %cst_36 = arith.constant 0.000000e+00 : f32
    %52 = vector.broadcast %cst_36 : f32 to vector<8x256xf32>
    %53 = arith.cmpf oeq, %14, %52 : vector<8x256xf32>
    %cst_37 = arith.constant 0.000000e+00 : f32
    %54 = vector.shape_cast %32 : vector<8x1xf32> to vector<8x1xf32>
    %55 = vector.broadcast %54 : vector<8x1xf32> to vector<8x256xf32>
    %56 = vector.broadcast %cst_37 : f32 to vector<8x256xf32>
    %57 = arith.select %53, %55, %56 : vector<8x256xi1>, vector<8x256xf32>
    %58 = vector.shape_cast %57 : vector<8x256xf32> to vector<1x8x256xf32>
    %cst_38 = arith.constant dense<0.000000e+00> : vector<8x256xf32>
    %59 = vector.multi_reduction <add>, %58, %cst_38 [0] : vector<1x8x256xf32> to vector<8x256xf32>
    %60 = vector.shape_cast %59 : vector<8x256xf32> to vector<1x8x256xf32>
    %61 = arith.addf %51, %60 : vector<1x8x256xf32>
    %c0_39 = arith.constant 0 : index
    %c0_40 = arith.constant 0 : index
    %c0_41 = arith.constant 0 : index
    %62 = vector.load %arg15[%c0_39, %c0_40, %c0_41] : memref<1x8x256xf32, #tpu.memory_space<vmem>>, vector<1x8x256xf32>
    tpu.vector_store %arg15[%c0_39, %c0_40, %c0_41], %61 {strides = array<i32>} : memref<1x8x256xf32, #tpu.memory_space<vmem>>, vector<1x8x256xf32>,
    %c0_42 = arith.constant 0 : index
    %c0_43 = arith.constant 0 : index
    %c0_44 = arith.constant 0 : index
    %63 = vector.load %arg16[%c0_42, %c0_43, %c0_44] : memref<1x8x128xf32, #tpu.memory_space<vmem>>, vector<1x8x128xf32>
    %64 = arith.mulf %38, %38 : vector<8x128xf32>
    %65 = vector.shape_cast %64 : vector<8x128xf32> to vector<1x8x128xf32>
    %cst_45 = arith.constant dense<0.000000e+00> : vector<8x128xf32>
    %66 = vector.multi_reduction <add>, %65, %cst_45 [0] : vector<1x8x128xf32> to vector<8x128xf32>
    %67 = vector.shape_cast %66 : vector<8x128xf32> to vector<1x8x128xf32>
    %68 = arith.addf %63, %67 : vector<1x8x128xf32>
    %c0_46 = arith.constant 0 : index
    %c0_47 = arith.constant 0 : index
    %c0_48 = arith.constant 0 : index
    %69 = vector.load %arg16[%c0_46, %c0_47, %c0_48] : memref<1x8x128xf32, #tpu.memory_space<vmem>>, vector<1x8x128xf32>
    tpu.vector_store %arg16[%c0_46, %c0_47, %c0_48], %68 {strides = array<i32>} : memref<1x8x128xf32, #tpu.memory_space<vmem>>, vector<1x8x128xf32>,
    %70 = arith.mulf %3, %3 : vector<8x128xf32>
    %cst_49 = arith.constant dense<0.000000e+00> : vector<8xf32>
    %71 = vector.multi_reduction <add>, %70, %cst_49 [1] : vector<8x128xf32> to vector<8xf32>
    %72 = vector.shape_cast %71 : vector<8xf32> to vector<8x1xf32>
    %cst_50 = arith.constant dense<0.000000e+00> : vector<8xf32>
    %73 = vector.multi_reduction <add>, %35, %cst_50 [1] : vector<8x256xf32> to vector<8xf32>
    %74 = vector.shape_cast %73 : vector<8xf32> to vector<8x1xf32>
    %cst_51 = arith.constant 0.000000e+00 : f32
    %75 = vector.broadcast %cst_51 : f32 to vector<8x1xf32>
    %76 = arith.cmpf ogt, %72, %75 : vector<8x1xf32>
    %77 = math.rsqrt %72 : vector<8x1xf32>
    %cst_52 = arith.constant 0.000000e+00 : f32
    %78 = vector.broadcast %cst_52 : f32 to vector<8x1xf32>
    %79 = arith.select %76, %77, %78 : vector<8x1xi1>, vector<8x1xf32>
    %80 = vector.broadcast %79 : vector<8x1xf32> to vector<8x128xf32>
    %81 = arith.mulf %3, %80 : vector<8x128xf32>
    %82 = arith.truncf %81 : vector<8x128xf32> to vector<8x128xbf16>
    %cst_53 = arith.constant 0.000000e+00 : f32
    %83 = vector.broadcast %cst_53 : f32 to vector<8x1xf32>
    %84 = arith.cmpf ogt, %74, %83 : vector<8x1xf32>
    %85 = math.rsqrt %74 : vector<8x1xf32>
    %cst_54 = arith.constant 0.000000e+00 : f32
    %86 = vector.broadcast %cst_54 : f32 to vector<8x1xf32>
    %87 = arith.select %84, %85, %86 : vector<8x1xi1>, vector<8x1xf32>
    %88 = vector.broadcast %87 : vector<8x1xf32> to vector<8x256xf32>
    %89 = arith.mulf %34, %88 : vector<8x256xf32>
    %90 = arith.truncf %89 : vector<8x256xf32> to vector<8x256xbf16>
    %c0_55 = arith.constant 0 : index
    %c0_56 = arith.constant 0 : index
    %c0_57 = arith.constant 0 : index
    %91 = vector.load %arg10[%c0_55, %c0_56, %c0_57] : memref<1x128x128xf32, #tpu.memory_space<vmem>>, vector<1x128x128xf32>
    %cst_58 = arith.constant dense<0.000000e+00> : vector<128x128xf32>
    %92 = tpu.matmul %82, %82, %cst_58 {dimension_numbers = #tpu.dot_dimension_numbers<[0], [0], [1], [1], [0, 1, 1, 1], [], []>} : vector<8x128xbf16>, vector<8x128xbf16>, vector<128x128xf32> -> vector<128x128xf32>
    %93 = vector.shape_cast %92 : vector<128x128xf32> to vector<1x128x128xf32>
    %94 = arith.addf %91, %93 : vector<1x128x128xf32>
    %c0_59 = arith.constant 0 : index
    %c0_60 = arith.constant 0 : index
    %c0_61 = arith.constant 0 : index
    %95 = vector.load %arg10[%c0_59, %c0_60, %c0_61] : memref<1x128x128xf32, #tpu.memory_space<vmem>>, vector<1x128x128xf32>
    tpu.vector_store %arg10[%c0_59, %c0_60, %c0_61], %94 {strides = array<i32>} : memref<1x128x128xf32, #tpu.memory_space<vmem>>, vector<1x128x128xf32>,
    %c0_62 = arith.constant 0 : index
    %c0_63 = arith.constant 0 : index
    %c0_64 = arith.constant 0 : index
    %96 = vector.load %arg11[%c0_62, %c0_63, %c0_64] : memref<1x128x256xf32, #tpu.memory_space<vmem>>, vector<1x128x256xf32>
    %cst_65 = arith.constant dense<0.000000e+00> : vector<128x256xf32>
    %97 = tpu.matmul %82, %90, %cst_65 {dimension_numbers = #tpu.dot_dimension_numbers<[0], [0], [1], [1], [0, 1, 1, 1], [], []>} : vector<8x128xbf16>, vector<8x256xbf16>, vector<128x256xf32> -> vector<128x256xf32>
    %98 = vector.shape_cast %97 : vector<128x256xf32> to vector<1x128x256xf32>
    %99 = arith.addf %96, %98 : vector<1x128x256xf32>
    %c0_66 = arith.constant 0 : index
    %c0_67 = arith.constant 0 : index
    %c0_68 = arith.constant 0 : index
    %100 = vector.load %arg11[%c0_66, %c0_67, %c0_68] : memref<1x128x256xf32, #tpu.memory_space<vmem>>, vector<1x128x256xf32>
    tpu.vector_store %arg11[%c0_66, %c0_67, %c0_68], %99 {strides = array<i32>} : memref<1x128x256xf32, #tpu.memory_space<vmem>>, vector<1x128x256xf32>,
    %c0_69 = arith.constant 0 : index
    %c0_70 = arith.constant 0 : index
    %c0_71 = arith.constant 0 : index
    %101 = vector.load %arg12[%c0_69, %c0_70, %c0_71] : memref<1x256x256xf32, #tpu.memory_space<vmem>>, vector<1x256x256xf32>
    %cst_72 = arith.constant dense<0.000000e+00> : vector<256x256xf32>
    %102 = tpu.matmul %90, %90, %cst_72 {dimension_numbers = #tpu.dot_dimension_numbers<[0], [0], [1], [1], [0, 1, 1, 1], [], []>} : vector<8x256xbf16>, vector<8x256xbf16>, vector<256x256xf32> -> vector<256x256xf32>
    %103 = vector.shape_cast %102 : vector<256x256xf32> to vector<1x256x256xf32>
    %104 = arith.addf %101, %103 : vector<1x256x256xf32>
    %c0_73 = arith.constant 0 : index
    %c0_74 = arith.constant 0 : index
    %c0_75 = arith.constant 0 : index
    %105 = vector.load %arg12[%c0_73, %c0_74, %c0_75] : memref<1x256x256xf32, #tpu.memory_space<vmem>>, vector<1x256x256xf32>
    tpu.vector_store %arg12[%c0_73, %c0_74, %c0_75], %104 {strides = array<i32>} : memref<1x256x256xf32, #tpu.memory_space<vmem>>, vector<1x256x256xf32>,
    return
  }
  func.func @transform_0(%arg0: i32, %arg1: i32) -> (i32, i32) {
    %c4_i32 = arith.constant 4 : i32
    %0 = arith.muli %arg0, %c4_i32 : i32
    %1 = arith.addi %0, %arg1 : i32
    %c0_i32 = arith.constant 0 : i32
    %c0_i32_0 = arith.constant 0 : i32
    return %1, %c0_i32 : i32, i32
  }
  func.func @transform_1(%arg0: i32, %arg1: i32) -> (i32, i32) {
    %c4_i32 = arith.constant 4 : i32
    %0 = arith.muli %arg0, %c4_i32 : i32
    %1 = arith.addi %0, %arg1 : i32
    %c0_i32 = arith.constant 0 : i32
    %c0_i32_0 = arith.constant 0 : i32
    return %1, %c0_i32 : i32, i32
  }
  func.func @transform_2(%arg0: i32, %arg1: i32) -> (i32, i32) {
    %c0_i32 = arith.constant 0 : i32
    %c0_i32_0 = arith.constant 0 : i32
    %c0_i32_1 = arith.constant 0 : i32
    return %c0_i32, %c0_i32_0 : i32, i32
  }
  func.func @transform_3(%arg0: i32, %arg1: i32) -> (i32, i32) {
    %c0_i32 = arith.constant 0 : i32
    %c0_i32_0 = arith.constant 0 : i32
    %c0_i32_1 = arith.constant 0 : i32
    return %c0_i32, %c0_i32_0 : i32, i32
  }
  func.func @transform_4(%arg0: i32, %arg1: i32) -> (i32, i32) {
    %c0_i32 = arith.constant 0 : i32
    %c0_i32_0 = arith.constant 0 : i32
    %c0_i32_1 = arith.constant 0 : i32
    return %c0_i32, %c0_i32_0 : i32, i32
  }
  func.func @transform_5(%arg0: i32, %arg1: i32) -> (i32, i32) {
    %c0_i32 = arith.constant 0 : i32
    %c0_i32_0 = arith.constant 0 : i32
    %c0_i32_1 = arith.constant 0 : i32
    return %c0_i32, %c0_i32_0 : i32, i32
  }
  func.func @transform_6(%arg0: i32, %arg1: i32) -> (i32, i32) {
    %c4_i32 = arith.constant 4 : i32
    %0 = arith.muli %arg0, %c4_i32 : i32
    %1 = arith.addi %0, %arg1 : i32
    %c0_i32 = arith.constant 0 : i32
    %c0_i32_0 = arith.constant 0 : i32
    return %1, %c0_i32 : i32, i32
  }
  func.func @transform_7(%arg0: i32, %arg1: i32) -> (i32, i32) {
    %c4_i32 = arith.constant 4 : i32
    %0 = arith.muli %arg0, %c4_i32 : i32
    %1 = arith.addi %0, %arg1 : i32
    %c0_i32 = arith.constant 0 : i32
    %c0_i32_0 = arith.constant 0 : i32
    return %1, %c0_i32 : i32, i32
  }
  func.func @transform_8(%arg0: i32, %arg1: i32) -> (i32, i32, i32) {
    %c0_i32 = arith.constant 0 : i32
    %c0_i32_0 = arith.constant 0 : i32
    %c0_i32_1 = arith.constant 0 : i32
    return %arg0, %c0_i32, %c0_i32_0 : i32, i32, i32
  }
  func.func @transform_9(%arg0: i32, %arg1: i32) -> (i32, i32, i32) {
    %c0_i32 = arith.constant 0 : i32
    %c0_i32_0 = arith.constant 0 : i32
    %c0_i32_1 = arith.constant 0 : i32
    return %arg0, %c0_i32, %c0_i32_0 : i32, i32, i32
  }
  func.func @transform_10(%arg0: i32, %arg1: i32) -> (i32, i32, i32) {
    %c0_i32 = arith.constant 0 : i32
    %c0_i32_0 = arith.constant 0 : i32
    %c0_i32_1 = arith.constant 0 : i32
    return %arg0, %c0_i32, %c0_i32_0 : i32, i32, i32
  }
  func.func @transform_11(%arg0: i32, %arg1: i32) -> (i32, i32, i32) {
    %c0_i32 = arith.constant 0 : i32
    %c0_i32_0 = arith.constant 0 : i32
    %c0_i32_1 = arith.constant 0 : i32
    return %arg0, %c0_i32, %c0_i32_0 : i32, i32, i32
  }
  func.func @transform_12(%arg0: i32, %arg1: i32) -> (i32, i32, i32) {
    %c0_i32 = arith.constant 0 : i32
    %c0_i32_0 = arith.constant 0 : i32
    %c0_i32_1 = arith.constant 0 : i32
    return %arg0, %c0_i32, %c0_i32_0 : i32, i32, i32
  }
  func.func @transform_13(%arg0: i32, %arg1: i32) -> (i32, i32, i32) {
    %c0_i32 = arith.constant 0 : i32
    %c0_i32_0 = arith.constant 0 : i32
    %c0_i32_1 = arith.constant 0 : i32
    return %arg0, %c0_i32, %c0_i32_0 : i32, i32, i32
  }
  func.func @transform_14(%arg0: i32, %arg1: i32) -> (i32, i32, i32) {
    %c0_i32 = arith.constant 0 : i32
    %c0_i32_0 = arith.constant 0 : i32
    %c0_i32_1 = arith.constant 0 : i32
    return %arg0, %c0_i32, %c0_i32_0 : i32, i32, i32
  }
}

module attributes {stable_mosaic.version = 11 : i64} {
  func.func @kernel(%arg0: i32, %arg1: i32, %arg2: memref<8x128xf32, #tpu.memory_space<vmem>>, %arg3: memref<8x128xf32, #tpu.memory_space<vmem>>, %arg4: memref<128x256xbf16, #tpu.memory_space<vmem>>, %arg5: memref<1x256xf32, #tpu.memory_space<vmem>>, %arg6: memref<256x128xbf16, #tpu.memory_space<vmem>>, %arg7: memref<1x128xf32, #tpu.memory_space<vmem>>, %arg8: memref<8x128xf32, #tpu.memory_space<vmem>>, %arg9: memref<8x256xf32, #tpu.memory_space<vmem>>, %arg10: memref<1x128x128xf32, #tpu.memory_space<vmem>>, %arg11: memref<1x128x256xf32, #tpu.memory_space<vmem>>, %arg12: memref<1x256x256xf32, #tpu.memory_space<vmem>>, %arg13: memref<1x8x256xf32, #tpu.memory_space<vmem>>, %arg14: memref<1x8x256xf32, #tpu.memory_space<vmem>>, %arg15: memref<1x8x256xf32, #tpu.memory_space<vmem>>, %arg16: memref<1x8x128xf32, #tpu.memory_space<vmem>>) attributes {dimension_semantics = [#tpu.dimension_semantics<parallel>, #tpu.dimension_semantics<arbitrary>], iteration_bounds = array<i64: 1, 4>, scalar_prefetch = 0 : i64, scratch_operands = 0 : i64, tpu.core_type = #tpu.core_type<tc>, window_params = [{transform_indices = @transform_0, window_bounds = array<i64: 8, 128>}, {transform_indices = @transform_1, window_bounds = array<i64: 8, 128>}, {pipeline_mode = #tpu.pipeline_mode<synchronous>, transform_indices = @transform_2, window_bounds = array<i64: 128, 256>}, {pipeline_mode = #tpu.pipeline_mode<synchronous>, transform_indices = @transform_3, window_bounds = array<i64: 1, 256>}, {pipeline_mode = #tpu.pipeline_mode<synchronous>, transform_indices = @transform_4, window_bounds = array<i64: 256, 128>}, {pipeline_mode = #tpu.pipeline_mode<synchronous>, transform_indices = @transform_5, window_bounds = array<i64: 1, 128>}, {transform_indices = @transform_6, window_bounds = array<i64: 8, 128>}, {transform_indices = @transform_7, window_bounds = array<i64: 8, 256>}, {transform_indices = @transform_8, window_bounds = array<i64: 1, 128, 128>}, {transform_indices = @transform_9, window_bounds = array<i64: 1, 128, 256>}, {transform_indices = @transform_10, window_bounds = array<i64: 1, 256, 256>}, {transform_indices = @transform_11, window_bounds = array<i64: 1, 8, 256>}, {transform_indices = @transform_12, window_bounds = array<i64: 1, 8, 256>}, {transform_indices = @transform_13, window_bounds = array<i64: 1, 8, 256>}, {transform_indices = @transform_14, window_bounds = array<i64: 1, 8, 128>}]} {
    %c0_i32 = arith.constant 0 : i32
    %0 = arith.cmpi eq, %arg1, %c0_i32 : i32
    %1 = arith.extui %0 : i1 to i32
    %c0_i32_0 = arith.constant 0 : i32
    %2 = arith.cmpi ne, %1, %c0_i32_0 : i32
    scf.if %2 {
      %cst_76 = arith.constant 0.000000e+00 : f32
      %106 = vector.broadcast %cst_76 : f32 to vector<1x128x128xf32>
      %c0_77 = arith.constant 0 : index
      %c0_78 = arith.constant 0 : index
      %c0_79 = arith.constant 0 : index
      %107 = vector.load %arg10[%c0_77, %c0_78, %c0_79] : memref<1x128x128xf32, #tpu.memory_space<vmem>>, vector<1x128x128xf32>
      tpu.vector_store %arg10[%c0_77, %c0_78, %c0_79], %106 {strides = array<i32>} : memref<1x128x128xf32, #tpu.memory_space<vmem>>, vector<1x128x128xf32>,
      %cst_80 = arith.constant 0.000000e+00 : f32
      %108 = vector.broadcast %cst_80 : f32 to vector<1x128x256xf32>
      %c0_81 = arith.constant 0 : index
      %c0_82 = arith.constant 0 : index
      %c0_83 = arith.constant 0 : index
      %109 = vector.load %arg11[%c0_81, %c0_82, %c0_83] : memref<1x128x256xf32, #tpu.memory_space<vmem>>, vector<1x128x256xf32>
      tpu.vector_store %arg11[%c0_81, %c0_82, %c0_83], %108 {strides = array<i32>} : memref<1x128x256xf32, #tpu.memory_space<vmem>>, vector<1x128x256xf32>,
      %cst_84 = arith.constant 0.000000e+00 : f32
      %110 = vector.broadcast %cst_84 : f32 to vector<1x256x256xf32>
      %c0_85 = arith.constant 0 : index
      %c0_86 = arith.constant 0 : index
      %c0_87 = arith.constant 0 : index
      %111 = vector.load %arg12[%c0_85, %c0_86, %c0_87] : memref<1x256x256xf32, #tpu.memory_space<vmem>>, vector<1x256x256xf32>
      tpu.vector_store %arg12[%c0_85, %c0_86, %c0_87], %110 {strides = array<i32>} : memref<1x256x256xf32, #tpu.memory_space<vmem>>, vector<1x256x256xf32>,
      %cst_88 = arith.constant 0.000000e+00 : f32
      %112 = vector.broadcast %cst_88 : f32 to vector<1x8x256xf32>
      %c0_89 = arith.constant 0 : index
      %c0_90 = arith.constant 0 : index
      %c0_91 = arith.constant 0 : index
      %113 = vector.load %arg13[%c0_89, %c0_90, %c0_91] : memref<1x8x256xf32, #tpu.memory_space<vmem>>, vector<1x8x256xf32>
      tpu.vector_store %arg13[%c0_89, %c0_90, %c0_91], %112 {strides = array<i32>} : memref<1x8x256xf32, #tpu.memory_space<vmem>>, vector<1x8x256xf32>,
      %cst_92 = arith.constant 0.000000e+00 : f32
      %114 = vector.broadcast %cst_92 : f32 to vector<1x8x256xf32>
      %c0_93 = arith.constant 0 : index
      %c0_94 = arith.constant 0 : index
      %c0_95 = arith.constant 0 : index
      %115 = vector.load %arg14[%c0_93, %c0_94, %c0_95] : memref<1x8x256xf32, #tpu.memory_space<vmem>>, vector<1x8x256xf32>
      tpu.vector_store %arg14[%c0_93, %c0_94, %c0_95], %114 {strides = array<i32>} : memref<1x8x256xf32, #tpu.memory_space<vmem>>, vector<1x8x256xf32>,
      %cst_96 = arith.constant 0.000000e+00 : f32
      %116 = vector.broadcast %cst_96 : f32 to vector<1x8x256xf32>
      %c0_97 = arith.constant 0 : index
      %c0_98 = arith.constant 0 : index
      %c0_99 = arith.constant 0 : index
      %117 = vector.load %arg15[%c0_97, %c0_98, %c0_99] : memref<1x8x256xf32, #tpu.memory_space<vmem>>, vector<1x8x256xf32>
      tpu.vector_store %arg15[%c0_97, %c0_98, %c0_99], %116 {strides = array<i32>} : memref<1x8x256xf32, #tpu.memory_space<vmem>>, vector<1x8x256xf32>,
      %cst_100 = arith.constant 0.000000e+00 : f32
      %118 = vector.broadcast %cst_100 : f32 to vector<1x8x128xf32>
      %c0_101 = arith.constant 0 : index
      %c0_102 = arith.constant 0 : index
      %c0_103 = arith.constant 0 : index
      %119 = vector.load %arg16[%c0_101, %c0_102, %c0_103] : memref<1x8x128xf32, #tpu.memory_space<vmem>>, vector<1x8x128xf32>
      tpu.vector_store %arg16[%c0_101, %c0_102, %c0_103], %118 {strides = array<i32>} : memref<1x8x128xf32, #tpu.memory_space<vmem>>, vector<1x8x128xf32>,
    } else {
    }
    %c0 = arith.constant 0 : index
    %c0_1 = arith.constant 0 : index
    %3 = vector.load %arg2[%c0, %c0_1] : memref<8x128xf32, #tpu.memory_space<vmem>>, vector<8x128xf32>
    %c0_2 = arith.constant 0 : index
    %c0_3 = arith.constant 0 : index
    %4 = vector.load %arg3[%c0_2, %c0_3] : memref<8x128xf32, #tpu.memory_space<vmem>>, vector<8x128xf32>
    %5 = arith.truncf %3 : vector<8x128xf32> to vector<8x128xbf16>
    %c0_4 = arith.constant 0 : index
    %c0_5 = arith.constant 0 : index
    %6 = vector.load %arg4[%c0_4, %c0_5] : memref<128x256xbf16, #tpu.memory_space<vmem>>, vector<128x256xbf16>
    %cst = arith.constant dense<0.000000e+00> : vector<8x256xf32>
    %7 = tpu.matmul %5, %6, %cst {dimension_numbers = #tpu.dot_dimension_numbers<[1], [0], [0], [1], [0, 0, 1, 1], [], []>} : vector<8x128xbf16>, vector<128x256xbf16>, vector<8x256xf32> -> vector<8x256xf32>
    %c0_6 = arith.constant 0 : index
    %c0_7 = arith.constant 0 : index
    %8 = vector.load %arg5[%c0_6, %c0_7] : memref<1x256xf32, #tpu.memory_space<vmem>>, vector<1x256xf32>
    %9 = vector.broadcast %8 : vector<1x256xf32> to vector<8x256xf32>
    %10 = arith.addf %7, %9 : vector<8x256xf32>
    %cst_8 = arith.constant 0.000000e+00 : f32
    %cst_9 = arith.constant 1.000000e+00 : f32
    %11 = vector.broadcast %cst_8 : f32 to vector<8x256xf32>
    %12 = arith.maximumf %11, %10 : vector<8x256xf32>
    %13 = vector.broadcast %cst_9 : f32 to vector<8x256xf32>
    %14 = arith.minimumf %13, %12 : vector<8x256xf32>
    %15 = arith.truncf %14 : vector<8x256xf32> to vector<8x256xbf16>
    %c0_10 = arith.constant 0 : index
    %c0_11 = arith.constant 0 : index
    %16 = vector.load %arg6[%c0_10, %c0_11] : memref<256x128xbf16, #tpu.memory_space<vmem>>, vector<256x128xbf16>
    %cst_12 = arith.constant dense<0.000000e+00> : vector<8x128xf32>
    %17 = tpu.matmul %15, %16, %cst_12 {dimension_numbers = #tpu.dot_dimension_numbers<[1], [0], [0], [1], [0, 0, 1, 1], [], []>} : vector<8x256xbf16>, vector<256x128xbf16>, vector<8x128xf32> -> vector<8x128xf32>
    %c0_13 = arith.constant 0 : index
    %c0_14 = arith.constant 0 : index
    %18 = vector.load %arg7[%c0_13, %c0_14] : memref<1x128xf32, #tpu.memory_space<vmem>>, vector<1x128xf32>
    %19 = vector.broadcast %18 : vector<1x128xf32> to vector<8x128xf32>
    %20 = arith.addf %17, %19 : vector<8x128xf32>
    %c0_15 = arith.constant 0 : index
    %c0_16 = arith.constant 0 : index
    %21 = vector.load %arg8[%c0_15, %c0_16] : memref<8x128xf32, #tpu.memory_space<vmem>>, vector<8x128xf32>
    tpu.vector_store %arg8[%c0_15, %c0_16], %20 {strides = array<i32>} : memref<8x128xf32, #tpu.memory_space<vmem>>, vector<8x128xf32>,
    %c0_17 = arith.constant 0 : index
    %c0_18 = arith.constant 0 : index
    %22 = vector.load %arg9[%c0_17, %c0_18] : memref<8x256xf32, #tpu.memory_space<vmem>>, vector<8x256xf32>
    tpu.vector_store %arg9[%c0_17, %c0_18], %14 {strides = array<i32>} : memref<8x256xf32, #tpu.memory_space<vmem>>, vector<8x256xf32>,
    %c4_i32 = arith.constant 4 : i32
    %23 = arith.muli %arg0, %c4_i32 : i32
    %24 = arith.addi %23, %arg1 : i32
    %c8_i32 = arith.constant 8 : i32
    %25 = arith.muli %24, %c8_i32 : i32
    %26 = tpu.iota {dimensions = array<i32: 0>} : vector<8x1xi32>
    %27 = vector.broadcast %25 : i32 to vector<8x1xi32>
    %28 = arith.addi %26, %27 : vector<8x1xi32>
    %c30_i32 = arith.constant 30 : i32
    %29 = vector.broadcast %c30_i32 : i32 to vector<8x1xi32>
    %30 = arith.cmpi slt, %28, %29 : vector<8x1xi32>
    %31 = arith.extui %30 : vector<8x1xi1> to vector<8x1xi32>
    %32 = arith.sitofp %31 : vector<8x1xi32> to vector<8x1xf32>
    %33 = vector.broadcast %32 : vector<8x1xf32> to vector<8x256xf32>
    %34 = arith.mulf %14, %33 : vector<8x256xf32>
    %35 = arith.mulf %34, %34 : vector<8x256xf32>
    %36 = arith.subf %20, %4 : vector<8x128xf32>
    %37 = vector.broadcast %32 : vector<8x1xf32> to vector<8x128xf32>
    %38 = arith.mulf %36, %37 : vector<8x128xf32>
    %c0_19 = arith.constant 0 : index
    %c0_20 = arith.constant 0 : index
    %c0_21 = arith.constant 0 : index
    %39 = vector.load %arg13[%c0_19, %c0_20, %c0_21] : memref<1x8x256xf32, #tpu.memory_space<vmem>>, vector<1x8x256xf32>
    %40 = vector.shape_cast %34 : vector<8x256xf32> to vector<1x8x256xf32>
    %cst_22 = arith.constant dense<0.000000e+00> : vector<8x256xf32>
    %41 = vector.multi_reduction <add>, %40, %cst_22 [0] : vector<1x8x256xf32> to vector<8x256xf32>
    %42 = vector.shape_cast %41 : vector<8x256xf32> to vector<1x8x256xf32>
    %43 = arith.addf %39, %42 : vector<1x8x256xf32>
    %c0_23 = arith.constant 0 : index
    %c0_24 = arith.constant 0 : index
    %c0_25 = arith.constant 0 : index
    %44 = vector.load %arg13[%c0_23, %c0_24, %c0_25] : memref<1x8x256xf32, #tpu.memory_space<vmem>>, vector<1x8x256xf32>
    tpu.vector_store %arg13[%c0_23, %c0_24, %c0_25], %43 {strides = array<i32>} : memref<1x8x256xf32, #tpu.memory_space<vmem>>, vector<1x8x256xf32>,
    %c0_26 = arith.constant 0 : index
    %c0_27 = arith.constant 0 : index
    %c0_28 = arith.constant 0 : index
    %45 = vector.load %arg14[%c0_26, %c0_27, %c0_28] : memref<1x8x256xf32, #tpu.memory_space<vmem>>, vector<1x8x256xf32>
    %46 = vector.shape_cast %35 : vector<8x256xf32> to vector<1x8x256xf32>
    %cst_29 = arith.constant dense<0.000000e+00> : vector<8x256xf32>
    %47 = vector.multi_reduction <add>, %46, %cst_29 [0] : vector<1x8x256xf32> to vector<8x256xf32>
    %48 = vector.shape_cast %47 : vector<8x256xf32> to vector<1x8x256xf32>
    %49 = arith.addf %45, %48 : vector<1x8x256xf32>
    %c0_30 = arith.constant 0 : index
    %c0_31 = arith.constant 0 : index
    %c0_32 = arith.constant 0 : index
    %50 = vector.load %arg14[%c0_30, %c0_31, %c0_32] : memref<1x8x256xf32, #tpu.memory_space<vmem>>, vector<1x8x256xf32>
    tpu.vector_store %arg14[%c0_30, %c0_31, %c0_32], %49 {strides = array<i32>} : memref<1x8x256xf32, #tpu.memory_space<vmem>>, vector<1x8x256xf32>,
    %c0_33 = arith.constant 0 : index
    %c0_34 = arith.constant 0 : index
    %c0_35 = arith.constant 0 : index
    %51 = vector.load %arg15[%c0_33, %c0_34, %c0_35] : memref<1x8x256xf32, #tpu.memory_space<vmem>>, vector<1x8x256xf32>
    %cst_36 = arith.constant 0.000000e+00 : f32
    %52 = vector.broadcast %cst_36 : f32 to vector<8x256xf32>
    %53 = arith.cmpf oeq, %14, %52 : vector<8x256xf32>
    %cst_37 = arith.constant 0.000000e+00 : f32
    %54 = vector.shape_cast %32 : vector<8x1xf32> to vector<8x1xf32>
    %55 = vector.broadcast %54 : vector<8x1xf32> to vector<8x256xf32>
    %56 = vector.broadcast %cst_37 : f32 to vector<8x256xf32>
    %57 = arith.select %53, %55, %56 : vector<8x256xi1>, vector<8x256xf32>
    %58 = vector.shape_cast %57 : vector<8x256xf32> to vector<1x8x256xf32>
    %cst_38 = arith.constant dense<0.000000e+00> : vector<8x256xf32>
    %59 = vector.multi_reduction <add>, %58, %cst_38 [0] : vector<1x8x256xf32> to vector<8x256xf32>
    %60 = vector.shape_cast %59 : vector<8x256xf32> to vector<1x8x256xf32>
    %61 = arith.addf %51, %60 : vector<1x8x256xf32>
    %c0_39 = arith.constant 0 : index
    %c0_40 = arith.constant 0 : index
    %c0_41 = arith.constant 0 : index
    %62 = vector.load %arg15[%c0_39, %c0_40, %c0_41] : memref<1x8x256xf32, #tpu.memory_space<vmem>>, vector<1x8x256xf32>
    tpu.vector_store %arg15[%c0_39, %c0_40, %c0_41], %61 {strides = array<i32>} : memref<1x8x256xf32, #tpu.memory_space<vmem>>, vector<1x8x256xf32>,
    %c0_42 = arith.constant 0 : index
    %c0_43 = arith.constant 0 : index
    %c0_44 = arith.constant 0 : index
    %63 = vector.load %arg16[%c0_42, %c0_43, %c0_44] : memref<1x8x128xf32, #tpu.memory_space<vmem>>, vector<1x8x128xf32>
    %64 = arith.mulf %38, %38 : vector<8x128xf32>
    %65 = vector.shape_cast %64 : vector<8x128xf32> to vector<1x8x128xf32>
    %cst_45 = arith.constant dense<0.000000e+00> : vector<8x128xf32>
    %66 = vector.multi_reduction <add>, %65, %cst_45 [0] : vector<1x8x128xf32> to vector<8x128xf32>
    %67 = vector.shape_cast %66 : vector<8x128xf32> to vector<1x8x128xf32>
    %68 = arith.addf %63, %67 : vector<1x8x128xf32>
    %c0_46 = arith.constant 0 : index
    %c0_47 = arith.constant 0 : index
    %c0_48 = arith.constant 0 : index
    %69 = vector.load %arg16[%c0_46, %c0_47, %c0_48] : memref<1x8x128xf32, #tpu.memory_space<vmem>>, vector<1x8x128xf32>
    tpu.vector_store %arg16[%c0_46, %c0_47, %c0_48], %68 {strides = array<i32>} : memref<1x8x128xf32, #tpu.memory_space<vmem>>, vector<1x8x128xf32>,
    %70 = arith.mulf %3, %3 : vector<8x128xf32>
    %cst_49 = arith.constant dense<0.000000e+00> : vector<8xf32>
    %71 = vector.multi_reduction <add>, %70, %cst_49 [1] : vector<8x128xf32> to vector<8xf32>
    %72 = vector.shape_cast %71 : vector<8xf32> to vector<8x1xf32>
    %cst_50 = arith.constant dense<0.000000e+00> : vector<8xf32>
    %73 = vector.multi_reduction <add>, %35, %cst_50 [1] : vector<8x256xf32> to vector<8xf32>
    %74 = vector.shape_cast %73 : vector<8xf32> to vector<8x1xf32>
    %cst_51 = arith.constant 0.000000e+00 : f32
    %75 = vector.broadcast %cst_51 : f32 to vector<8x1xf32>
    %76 = arith.cmpf ogt, %72, %75 : vector<8x1xf32>
    %77 = math.rsqrt %72 : vector<8x1xf32>
    %cst_52 = arith.constant 0.000000e+00 : f32
    %78 = vector.broadcast %cst_52 : f32 to vector<8x1xf32>
    %79 = arith.select %76, %77, %78 : vector<8x1xi1>, vector<8x1xf32>
    %80 = vector.broadcast %79 : vector<8x1xf32> to vector<8x128xf32>
    %81 = arith.mulf %3, %80 : vector<8x128xf32>
    %82 = arith.truncf %81 : vector<8x128xf32> to vector<8x128xbf16>
    %cst_53 = arith.constant 0.000000e+00 : f32
    %83 = vector.broadcast %cst_53 : f32 to vector<8x1xf32>
    %84 = arith.cmpf ogt, %74, %83 : vector<8x1xf32>
    %85 = math.rsqrt %74 : vector<8x1xf32>
    %cst_54 = arith.constant 0.000000e+00 : f32
    %86 = vector.broadcast %cst_54 : f32 to vector<8x1xf32>
    %87 = arith.select %84, %85, %86 : vector<8x1xi1>, vector<8x1xf32>
    %88 = vector.broadcast %87 : vector<8x1xf32> to vector<8x256xf32>
    %89 = arith.mulf %34, %88 : vector<8x256xf32>
    %90 = arith.truncf %89 : vector<8x256xf32> to vector<8x256xbf16>
    %c0_55 = arith.constant 0 : index
    %c0_56 = arith.constant 0 : index
    %c0_57 = arith.constant 0 : index
    %91 = vector.load %arg10[%c0_55, %c0_56, %c0_57] : memref<1x128x128xf32, #tpu.memory_space<vmem>>, vector<1x128x128xf32>
    %cst_58 = arith.constant dense<0.000000e+00> : vector<128x128xf32>
    %92 = tpu.matmul %82, %82, %cst_58 {dimension_numbers = #tpu.dot_dimension_numbers<[0], [0], [1], [1], [0, 1, 1, 1], [], []>} : vector<8x128xbf16>, vector<8x128xbf16>, vector<128x128xf32> -> vector<128x128xf32>
    %93 = vector.shape_cast %92 : vector<128x128xf32> to vector<1x128x128xf32>
    %94 = arith.addf %91, %93 : vector<1x128x128xf32>
    %c0_59 = arith.constant 0 : index
    %c0_60 = arith.constant 0 : index
    %c0_61 = arith.constant 0 : index
    %95 = vector.load %arg10[%c0_59, %c0_60, %c0_61] : memref<1x128x128xf32, #tpu.memory_space<vmem>>, vector<1x128x128xf32>
    tpu.vector_store %arg10[%c0_59, %c0_60, %c0_61], %94 {strides = array<i32>} : memref<1x128x128xf32, #tpu.memory_space<vmem>>, vector<1x128x128xf32>,
    %c0_62 = arith.constant 0 : index
    %c0_63 = arith.constant 0 : index
    %c0_64 = arith.constant 0 : index
    %96 = vector.load %arg11[%c0_62, %c0_63, %c0_64] : memref<1x128x256xf32, #tpu.memory_space<vmem>>, vector<1x128x256xf32>
    %cst_65 = arith.constant dense<0.000000e+00> : vector<128x256xf32>
    %97 = tpu.matmul %82, %90, %cst_65 {dimension_numbers = #tpu.dot_dimension_numbers<[0], [0], [1], [1], [0, 1, 1, 1], [], []>} : vector<8x128xbf16>, vector<8x256xbf16>, vector<128x256xf32> -> vector<128x256xf32>
    %98 = vector.shape_cast %97 : vector<128x256xf32> to vector<1x128x256xf32>
    %99 = arith.addf %96, %98 : vector<1x128x256xf32>
    %c0_66 = arith.constant 0 : index
    %c0_67 = arith.constant 0 : index
    %c0_68 = arith.constant 0 : index
    %100 = vector.load %arg11[%c0_66, %c0_67, %c0_68] : memref<1x128x256xf32, #tpu.memory_space<vmem>>, vector<1x128x256xf32>
    tpu.vector_store %arg11[%c0_66, %c0_67, %c0_68], %99 {strides = array<i32>} : memref<1x128x256xf32, #tpu.memory_space<vmem>>, vector<1x128x256xf32>,
    %c0_69 = arith.constant 0 : index
    %c0_70 = arith.constant 0 : index
    %c0_71 = arith.constant 0 : index
    %101 = vector.load %arg12[%c0_69, %c0_70, %c0_71] : memref<1x256x256xf32, #tpu.memory_space<vmem>>, vector<1x256x256xf32>
    %cst_72 = arith.constant dense<0.000000e+00> : vector<256x256xf32>
    %102 = tpu.matmul %90, %90, %cst_72 {dimension_numbers = #tpu.dot_dimension_numbers<[0], [0], [1], [1], [0, 1, 1, 1], [], []>} : vector<8x256xbf16>, vector<8x256xbf16>, vector<256x256xf32> -> vector<256x256xf32>
    %103 = vector.shape_cast %102 : vector<256x256xf32> to vector<1x256x256xf32>
    %104 = arith.addf %101, %103 : vector<1x256x256xf32>
    %c0_73 = arith.constant 0 : index
    %c0_74 = arith.constant 0 : index
    %c0_75 = arith.constant 0 : index
    %105 = vector.load %arg12[%c0_73, %c0_74, %c0_75] : memref<1x256x256xf32, #tpu.memory_space<vmem>>, vector<1x256x256xf32>
    tpu.vector_store %arg12[%c0_73, %c0_74, %c0_75], %104 {strides = array<i32>} : memref<1x256x256xf32, #tpu.memory_space<vmem>>, vector<1x256x256xf32>,
    return
  }
  func.func @transform_0(%arg0: i32, %arg1: i32) -> (i32, i32) {
    %c4_i32 = arith.constant 4 : i32
    %0 = arith.muli %arg0, %c4_i32 : i32
    %1 = arith.addi %0, %arg1 : i32
    %c0_i32 = arith.constant 0 : i32
    %c0_i32_0 = arith.constant 0 : i32
    return %1, %c0_i32 : i32, i32
  }
  func.func @transform_1(%arg0: i32, %arg1: i32) -> (i32, i32) {
    %c4_i32 = arith.constant 4 : i32
    %0 = arith.muli %arg0, %c4_i32 : i32
    %1 = arith.addi %0, %arg1 : i32
    %c0_i32 = arith.constant 0 : i32
    %c0_i32_0 = arith.constant 0 : i32
    return %1, %c0_i32 : i32, i32
  }
  func.func @transform_2(%arg0: i32, %arg1: i32) -> (i32, i32) {
    %c0_i32 = arith.constant 0 : i32
    %c0_i32_0 = arith.constant 0 : i32
    %c0_i32_1 = arith.constant 0 : i32
    return %c0_i32, %c0_i32_0 : i32, i32
  }
  func.func @transform_3(%arg0: i32, %arg1: i32) -> (i32, i32) {
    %c0_i32 = arith.constant 0 : i32
    %c0_i32_0 = arith.constant 0 : i32
    %c0_i32_1 = arith.constant 0 : i32
    return %c0_i32, %c0_i32_0 : i32, i32
  }
  func.func @transform_4(%arg0: i32, %arg1: i32) -> (i32, i32) {
    %c0_i32 = arith.constant 0 : i32
    %c0_i32_0 = arith.constant 0 : i32
    %c0_i32_1 = arith.constant 0 : i32
    return %c0_i32, %c0_i32_0 : i32, i32
  }
  func.func @transform_5(%arg0: i32, %arg1: i32) -> (i32, i32) {
    %c0_i32 = arith.constant 0 : i32
    %c0_i32_0 = arith.constant 0 : i32
    %c0_i32_1 = arith.constant 0 : i32
    return %c0_i32, %c0_i32_0 : i32, i32
  }
  func.func @transform_6(%arg0: i32, %arg1: i32) -> (i32, i32) {
    %c4_i32 = arith.constant 4 : i32
    %0 = arith.muli %arg0, %c4_i32 : i32
    %1 = arith.addi %0, %arg1 : i32
    %c0_i32 = arith.constant 0 : i32
    %c0_i32_0 = arith.constant 0 : i32
    return %1, %c0_i32 : i32, i32
  }
  func.func @transform_7(%arg0: i32, %arg1: i32) -> (i32, i32) {
    %c4_i32 = arith.constant 4 : i32
    %0 = arith.muli %arg0, %c4_i32 : i32
    %1 = arith.addi %0, %arg1 : i32
    %c0_i32 = arith.constant 0 : i32
    %c0_i32_0 = arith.constant 0 : i32
    return %1, %c0_i32 : i32, i32
  }
  func.func @transform_8(%arg0: i32, %arg1: i32) -> (i32, i32, i32) {
    %c0_i32 = arith.constant 0 : i32
    %c0_i32_0 = arith.constant 0 : i32
    %c0_i32_1 = arith.constant 0 : i32
    return %arg0, %c0_i32, %c0_i32_0 : i32, i32, i32
  }
  func.func @transform_9(%arg0: i32, %arg1: i32) -> (i32, i32, i32) {
    %c0_i32 = arith.constant 0 : i32
    %c0_i32_0 = arith.constant 0 : i32
    %c0_i32_1 = arith.constant 0 : i32
    return %arg0, %c0_i32, %c0_i32_0 : i32, i32, i32
  }
  func.func @transform_10(%arg0: i32, %arg1: i32) -> (i32, i32, i32) {
    %c0_i32 = arith.constant 0 : i32
    %c0_i32_0 = arith.constant 0 : i32
    %c0_i32_1 = arith.constant 0 : i32
    return %arg0, %c0_i32, %c0_i32_0 : i32, i32, i32
  }
  func.func @transform_11(%arg0: i32, %arg1: i32) -> (i32, i32, i32) {
    %c0_i32 = arith.constant 0 : i32
    %c0_i32_0 = arith.constant 0 : i32
    %c0_i32_1 = arith.constant 0 : i32
    return %arg0, %c0_i32, %c0_i32_0 : i32, i32, i32
  }
  func.func @transform_12(%arg0: i32, %arg1: i32) -> (i32, i32, i32) {
    %c0_i32 = arith.constant 0 : i32
    %c0_i32_0 = arith.constant 0 : i32
    %c0_i32_1 = arith.constant 0 : i32
    return %arg0, %c0_i32, %c0_i32_0 : i32, i32, i32
  }
  func.func @transform_13(%arg0: i32, %arg1: i32) -> (i32, i32, i32) {
    %c0_i32 = arith.constant 0 : i32
    %c0_i32_0 = arith.constant 0 : i32
    %c0_i32_1 = arith.constant 0 : i32
    return %arg0, %c0_i32, %c0_i32_0 : i32, i32, i32
  }
  func.func @transform_14(%arg0: i32, %arg1: i32) -> (i32, i32, i32) {
    %c0_i32 = arith.constant 0 : i32
    %c0_i32_0 = arith.constant 0 : i32
    %c0_i32_1 = arith.constant 0 : i32
    return %arg0, %c0_i32, %c0_i32_0 : i32, i32, i32
  }
}

</mosaic_0001>

<bundles_post_ra>
// kernel: tpu_custom_call.1
= control target key start
LH: loop header
LB: loop body
LE: loop exit
PB: predicated region body
PF: predicated region fallthrough
CT: control target
= control target key end

     0   :  { %s3999_s0 = inlined_call_operand.hbm [shape: f32[32,128], index: 0, kind: input, shape index: {}]   ;;  %s4000_s1 = inlined_call_operand.hbm [shape: f32[32,128], index: 1, kind: input, shape index: {}]   ;;  %s4001_s2 = inlined_call_operand.hbm [shape: bf16[128,256], index: 2, kind: input, shape index: {}]   ;;  %s4002_s3 = inlined_call_operand.vmem [shape: f32[1,256], index: 3, kind: input, shape index: {}]   ;;  %s4003_s4 = inlined_call_operand.hbm [shape: bf16[256,128], index: 4, kind: input, shape index: {}]   ;;  %s4004_s5 = inlined_call_operand.vmem [shape: f32[1,128], index: 5, kind: input, shape index: {}]   ;;  %s4005_s6 = inlined_call_operand.hbm [shape: f32[32,128], index: 6, kind: output, shape index: {0}]   ;;  %s4006_s7 = inlined_call_operand.hbm [shape: f32[32,256], index: 7, kind: output, shape index: {1}]   ;;  %s4007_s8 = inlined_call_operand.hbm [shape: f32[1,128,128], index: 8, kind: output, shape index: {2}]   ;;  %s4008_s9 = inlined_call_operand.hbm [shape: f32[1,128,256], index: 9, kind: output, shape index: {3}]   ;;  %s4009_s10 = inlined_call_operand.hbm [shape: f32[1,256,256], index: 10, kind: output, shape index: {4}]   ;;  %s4010_s11 = inlined_call_operand.hbm [shape: f32[1,8,256], index: 11, kind: output, shape index: {5}]   ;;  %s4011_s12 = inlined_call_operand.hbm [shape: f32[1,8,256], index: 12, kind: output, shape index: {6}]   ;;  %s4012_s13 = inlined_call_operand.hbm [shape: f32[1,8,256], index: 13, kind: output, shape index: {7}]   ;;  %s4013_s14 = inlined_call_operand.hbm [shape: f32[1,8,128], index: 14, kind: output, shape index: {8}]  }
   0x1   :  { %4029 = sst [smem:[#allocation38_spill]] %s4001_s2 }
   0x2   :  { %4030 = sst [smem:[#allocation39_spill]] %s4003_s4 }
   0x3   :  { %4031 = sst [smem:[#allocation40_spill]] %s4005_s6 }
   0x4   :  { %4032 = sst [smem:[#allocation41_spill]] %s4007_s8 }
   0x5   :  { %4033 = sst [smem:[#allocation42_spill]] %s4008_s9 }
   0x6   :  { %4034 = sst [smem:[#allocation43_spill]] %s4009_s10 }
   0x7   :  { %4035 = sst [smem:[#allocation44_spill]] %s4011_s12 }
   0x8   :  { %4036 = sst [smem:[#allocation45_spill]] %s4013_s14 }
   0x9   :  { %20 = vsyncpa [#allocation3], 0 }
   0xa   :  { %22 = vsyncpa [#allocation3 + $0x1], 0 }
   0xb   :  { %23 = vsyncpa [#allocation6], 0 }
   0xc   :  { %25 = vsyncpa [#allocation6 + $0x1], 0 }
   0xd   :  { %26 = vsyncpa [#allocation9], 0 }
   0xe   :  { %27 = vsyncpa [#allocation4], 0 }
   0xf   :  { %29 = vsyncpa [#allocation4 + $0x1], 0 }
  0x10   :  { %30 = vsyncpa [#allocation12], 0 }
  0x11   :  { %32 = vsyncpa [#allocation12 + $0x1], 0 }
  0x12   :  { %33 = vsyncpa [#allocation15], 0 }
  0x13   :  { %34 = vsyncpa [#allocation18], 0 }
  0x14   :  { %35 = vsyncpa [#allocation21], 0  ;;  %s3300_s29 = smov 0   ;;  %s3302_s30 = smov 0  }
  0x15   :  { %s3304_s15 = smov 0   ;;  %s3306_s16 = smov 0  }
  0x16   :  { %s3308_s17 = smov 0   ;;  %s3310_s18 = smov 0  }
  0x17 LB: > { %4037 = sst [smem:[#allocation33_spill]] %s3179_s29  ;;  %s3331_s19 = sadd.s32 4294967295, %s3199_s18   ;;  %s3199_s18 = sphi %s3310_s18, %s41_s18   ;;  %s3195_s17 = sphi %s3308_s17, %s4097_s17   ;;  %s3191_s16 = sphi %s3306_s16, %s4096_s16   ;;  %s3187_s15 = sphi %s3304_s15, %s4100_s15   ;;  %s3183_s30 = sphi %s3302_s30, %s4099_s30   ;;  %s3179_s29 = sphi %s3300_s29, %s4098_s29  }
  0x18   : > { %4038 = sst [smem:[#allocation34_spill]] %s3195_s17  ;;  %s4014_s20 = sadd.s32 4294967294, %s3199_s18  }
  0x19   : > { %p77_p0 = scmp.ne.s32.totalorder %s3183_s30, %s3179_s29  ;;  %p4020_p1 = scmp.eq.s32.totalorder %s3331_s19, 0 }
  0x1a   : > { %p225_p3 = scmp.eq.s32.totalorder %s4014_s20, 3  ;;  %p2403_p5 = scmp.ge.s32.totalorder %s3199_s18, 1 }
  0x1b   : > { %p3342_p4 = por %p4020_p1, %p77_p0  ;;  %p444_p7 = scmp.lt.s32.totalorder %s3199_s18, 5 }
  0x1c   : > { %p3347_p6 = por %p225_p3, %p77_p0  ;;  %s3201_s24 = smov [#allocation7]  }
  0x1d   : > { %s4039_s21 = scalar_select %p3342_p4, 1, 0 }
  0x1e   : > { %s4040_s22 = scalar_select %p3347_p6, 1, 0 }
  0x1f   : > { %p3352_p8 = pnand %p2403_p5, %p444_p7  ;;  %s456_s25 = sshll.u32 %s3201_s24, 4  ;;  %s457_s25 = int_to_ptr.vmem [resolvable:$true] %s456_s25 }
  0x20   : > { %4041 = sst [smem:[#allocation35_spill]] %s4040_s22  ;;  %s3202_s27 = smov [#allocation8]  }
  0x21   : > { %s4042_s23 = scalar_select %p3352_p8, 1, 0 }
  0x22   : > { %p2606_p9 = pneg %p3352_p8  ;;  %s472_s28 = sshll.u32 %s3202_s27, 4  ;;  %s3364_s28 = int_to_ptr.vmem [resolvable:$true] %s472_s28 }
  0x23   : > { %s4044_s2 = sld [smem:[#allocation38_spill]] }
  0x24   : > { %p3360_p10 = pnand %p2606_p9, %p4020_p1 }
  0x26   : > { %p2761_p12 = pneg %p3360_p10 }
  0x29   : > { %s2759_s29 = scalar_lea.hbm %s4044_s2, 2048 }
  0x2a   : > { %p2760_p11 = scmp.ne.s32.totalorder %s4044_s2, %s2759_s29  ;;  %p2766_p3 = scmp.lt.u32.totalorder %s2759_s29, %s4044_s2 }
  0x2c   : > { %p2762_p13 = pnand %p2761_p12, %p2760_p11 }
  0x2e   : > { %p2763_p0 = pneg %p2762_p13 }
  0x30   : > { %p2768_p5 = pnand %p2766_p3, %p2763_p0 }
  0x32   : > { %2771 = shalt.err (!%p2768_p5)
}
  0x33   : > { %s2772_s27 = scalar_lea.vmem %s457_s25, 2048  ;;  %p2780_p2 = scmp.lt.s32.totalorder %s457_s25, %s457_s25 }
  0x34   : > { %p2773_p7 = scmp.ne.s32.totalorder %s457_s25, %s2772_s27  ;;  %p2781_p6 = scmp.lt.s32.totalorder %s2772_s27, %s2772_s27 }
  0x36   : > { %p2775_p9 = pnand %p2773_p7, %p2761_p12  ;;  %p2782_p4 = por %p2781_p6, %p2780_p2 }
  0x38   : > { %p2776_p1 = pneg %p2775_p9 }
  0x3a   : > { %p2783_p8 = pnand %p2782_p4, %p2776_p1 }
  0x3c   : > { %2786 = shalt.err (!%p2783_p8)
}
  0x3d   : > { %s3203_s10 = smov 128   ;;  %s3204_s20 = smov 8  }
  0x3e   : > { %2609 = dma.hbm_to_vmem [thread:$0]  (!%p3360_p10), %s4044_s2, 2048, %s457_s25, [#allocation6], %s3203_s10, %s3203_s10, %s3204_s20  }
  0x3f   : > { %s4045_s4 = sld [smem:[#allocation39_spill]] }
  0x45   : > { %s2787_s24 = scalar_lea.hbm %s4045_s4, 2048 }
  0x46   : > { %p2788_p11 = scmp.ne.s32.totalorder %s4045_s4, %s2787_s24  ;;  %p2794_p4 = scmp.lt.u32.totalorder %s2787_s24, %s4045_s4 }
  0x48   : > { %p2790_p1 = pnand %p2788_p11, %p2761_p12 }
  0x4a   : > { %p2791_p2 = pneg %p2790_p1 }
  0x4c   : > { %p2796_p6 = pnand %p2794_p4, %p2791_p2 }
  0x4e   : > { %2799 = shalt.err (!%p2796_p6)
}
  0x4f   : > { %s2800_s25 = scalar_lea.vmem %s3364_s28, 2048  ;;  %p2808_p3 = scmp.lt.s32.totalorder %s3364_s28, %s3364_s28 }
  0x50   : > { %p2801_p8 = scmp.ne.s32.totalorder %s3364_s28, %s2800_s25  ;;  %p2809_p5 = scmp.lt.s32.totalorder %s2800_s25, %s2800_s25 }
  0x52   : > { %p2803_p13 = pnand %p2801_p8, %p2761_p12  ;;  %p2810_p7 = por %p2809_p5, %p2808_p3 }
  0x54   : > { %p2804_p0 = pneg %p2803_p13 }
  0x56   : > { %p2811_p9 = pnand %p2810_p7, %p2804_p0 }
  0x58   : > { %2814 = shalt.err (!%p2811_p9)
}
  0x59   : > { %s3205_s6 = smov 64   ;;  %s3206_s8 = smov 4  }
  0x5a   : > { %2612 = dma.hbm_to_vmem [thread:$0]  (!%p3360_p10), %s4045_s4, 2048, %s3364_s28, [#allocation9], %s3205_s6, %s3205_s6, %s3206_s8  }
  0x5b   : > { %s50_s20 = sadd.s32 1, %s3195_s17  ;;  %s64_s12 = sadd.s32 1, %s3187_s15 }
  0x5c   : > { %p51_p12 = scmp.ge.s32.totalorder %s50_s20, 4  ;;  %p71_p11 = scmp.ne.s32.totalorder %s3187_s15, %s3183_s30 }
  0x5d   : > { %p72_p1 = scmp.eq.s32.totalorder %s3199_s18, 0  ;;  %p2629_p2 = scmp.lt.s32.totalorder %s3199_s18, 4 }
  0x5e   : > { %s4102_s20 = smov (%p51_p12, %s50_s20), 0  ;;  %p4047_p6 = scmp.eq.s32.totalorder %s3331_s19, 3 }
  0x5f   : > { %4046 = sst [smem:[#allocation36_spill]] %s4102_s20  ;;  %p73_p4 = por %p72_p1, %p71_p11 }
  0x60   : > { %p3423_p8 = por %p4047_p6, %p71_p11  ;;  %s61_s26 = ssub.s32 %s3195_s17, %s4102_s20 }
  0x61   : > { %s489_s29 = sand.u32 1, %s3187_s15   ;;  %p62_p13 = scmp.eq.s32.totalorder %s61_s26, 0 }
  0x62   : > { %s4048_s14 = scalar_select %p3423_p8, 1, 0 }
  0x63   : > { %s3430_s28 = sshll.u32 %s489_s29, 3  ;;  %s2408_s22 = sshll.u32 %s3195_s17, 7 }
  0x64   : > { %s3434_s24 = scalar_select %p62_p13, %s3187_s15, %s64_s12  }
  0x65   : > { %s3439_s6 = scalar_lea.hbm %s3999_s0, %s2408_s22  ;;  %s493_s8 = scalar_lea.vmem [#allocation2], %s3430_s28 }
  0x66   : > { %4049 = sst [smem:[#allocation37_spill]] %s3434_s24  ;;  %s502_s9 = sshll.u32 %s493_s8, 4  ;;  %s3448_s9 = int_to_ptr.vmem [resolvable:$true] %s502_s9 }
  0x67   : > { %p3444_p10 = pnand %p2629_p2, %p73_p4  ;;  %s3453_s27 = scalar_lea.hbm %s4000_s1, %s2408_s22 }
  0x68   : > { %s490_s25 = scalar_lea.sflag [#allocation3], %s489_s29  ;;  %s2815_s2 = scalar_lea.hbm %s3439_s6, 128 }
  0x69   : > { %p2816_p0 = scmp.ne.s32.totalorder %s3439_s6, %s2815_s2  ;;  %p2817_p3 = pneg %p3444_p10 }
  0x6a   : > { %s2820_s20 = scalar_lea.hbm %s3999_s0, 512  ;;  %p2821_p9 = scmp.lt.u32.totalorder %s3439_s6, %s3999_s0 }
  0x6b   : > { %p2818_p5 = pnand %p2817_p3, %p2816_p0  ;;  %p2822_p12 = scmp.lt.u32.totalorder %s2820_s20, %s2815_s2 }
  0x6c   : > { %p2824_p1 = scmp.lt.u32.totalorder %s2815_s2, %s3439_s6 }
  0x6d   : > { %p2819_p7 = pneg %p2818_p5  ;;  %p2823_p11 = por %p2822_p12, %p2821_p9 }
  0x6f   : > { %p2825_p2 = por %p2824_p1, %p2823_p11 }
  0x71   : > { %p2826_p4 = pnand %p2825_p2, %p2819_p7 }
  0x73   : > { %2829 = shalt.err (!%p2826_p4)
}
  0x74   : > { %s2830_s29 = scalar_lea.vmem %s3448_s9, 128  ;;  %s3207_s4 = smov [#allocation2]  }
  0x75   : > { %p2831_p6 = scmp.ne.s32.totalorder %s3448_s9, %s2830_s29  ;;  %s2835_s22 = sshll.u32 %s3207_s4, 4  ;;  %s2836_s22 = int_to_ptr.vmem [resolvable:$false] %s2835_s22 }
  0x76   : > { %s2837_s17 = scalar_lea.vmem %s2836_s22, 256  ;;  %p2838_p5 = scmp.lt.s32.totalorder %s3448_s9, %s2836_s22 }
  0x77   : > { %p2833_p13 = pnand %p2831_p6, %p2817_p3  ;;  %p2839_p9 = scmp.lt.s32.totalorder %s2837_s17, %s2830_s29 }
  0x79   : > { %p2834_p0 = pneg %p2833_p13  ;;  %p2840_p12 = por %p2839_p9, %p2838_p5 }
  0x7b   : > { %p2841_p11 = pnand %p2840_p12, %p2834_p0 }
  0x7d   : > { %2844 = shalt.err (!%p2841_p11)
}
  0x7e   : > { %2616 = dma.hbm_to_vmem [thread:$0]  (!%p3444_p10), %s3439_s6, 128, %s3448_s9, %s490_s25  }
  0x7f   : > { %s509_s2 = sand.u32 1, %s3199_s18   ;;  %s513_s20 = scalar_lea.vmem [#allocation5], %s3430_s28 }
  0x80   : > { %s522_s24 = sshll.u32 %s513_s20, 4  ;;  %s510_s12 = scalar_lea.sflag [#allocation6], %s509_s2  ;;  %s523_s24 = int_to_ptr.vmem [resolvable:$true] %s522_s24 }
  0x81   : > { %s2845_s26 = scalar_lea.hbm %s3453_s27, 128  ;;  %s2850_s4 = scalar_lea.hbm %s4000_s1, 512 }
  0x82   : > { %p2846_p7 = scmp.ne.s32.totalorder %s3453_s27, %s2845_s26  ;;  %p2851_p4 = scmp.lt.u32.totalorder %s3453_s27, %s4000_s1 }
  0x83   : > { %p2852_p6 = scmp.lt.u32.totalorder %s2850_s4, %s2845_s26  ;;  %p2854_p0 = scmp.lt.u32.totalorder %s2845_s26, %s3453_s27 }
  0x84   : > { %p2848_p1 = pnand %p2846_p7, %p2817_p3 }
  0x85   : > { %p2853_p13 = por %p2852_p6, %p2851_p4 }
  0x86   : > { %p2849_p2 = pneg %p2848_p1 }
  0x87   : > { %p2855_p5 = por %p2854_p0, %p2853_p13 }
  0x89   : > { %p2856_p9 = pnand %p2855_p5, %p2849_p2 }
  0x8b   : > { %2859 = shalt.err (!%p2856_p9)
}
  0x8c   : > { %s2860_s28 = scalar_lea.vmem %s523_s24, 128  ;;  %s3208_s6 = smov [#allocation5]  }
  0x8d   : > { %p2861_p12 = scmp.ne.s32.totalorder %s523_s24, %s2860_s28  ;;  %s2865_s9 = sshll.u32 %s3208_s6, 4  ;;  %s2866_s9 = int_to_ptr.vmem [resolvable:$false] %s2865_s9 }
  0x8e   : > { %s2867_s25 = scalar_lea.vmem %s2866_s9, 256  ;;  %p2868_p1 = scmp.lt.s32.totalorder %s523_s24, %s2866_s9 }
  0x8f   : > { %p2863_p11 = pnand %p2861_p12, %p2817_p3  ;;  %p2869_p8 = scmp.lt.s32.totalorder %s2867_s25, %s2860_s28 }
  0x91   : > { %p2864_p7 = pneg %p2863_p11  ;;  %p2870_p4 = por %p2869_p8, %p2868_p1 }
  0x93   : > { %p2871_p6 = pnand %p2870_p4, %p2864_p7 }
  0x95   : > { %2874 = shalt.err (!%p2871_p6)
}
  0x96   : > { %2619 = dma.hbm_to_vmem [thread:$0]  (!%p3444_p10), %s3453_s27, 128, %s523_s24, %s510_s12  }
  0x97   : > { %p4051_p2 = scmp.ne.s32.totalorder %s4042_s23, 0 }
  0x98   : > { %s3504_s2 = sand.u32 (!%p4051_p2), 1, %s3183_s30   ;;  %p4052_p8 = scmp.ne.s32.totalorder (!%p4051_p2), %s4039_s21, 0 }
  0x99   : > { %531 = sbr.rel (%p4051_p2) target bundleno = 1194 (0x4aa), region = 44  ;;  %s3507_s20 = sshll.u32 (!%p4051_p2), %s3504_s2, 3 }
  0x9a   : > { %s534_s26 = scalar_lea.sflag (!%p4051_p2), [#allocation3], %s3504_s2  ;;  %s537_s8 = scalar_lea.vmem (!%p4051_p2), [#allocation2], %s3507_s20 }
  0xa0   : > { %3138 = dma.done.wait (%p4052_p8), %s534_s26, 128  }
  0xa1   : > { %3140 = vsyncadd (%p4052_p8), %s534_s26, 4294967168  ;;  %s542_s23 = sand.u32 1, %s3331_s19   ;;  %s546_s27 = scalar_lea.vmem [#allocation5], %s3507_s20 }
  0xa2   : > { %s543_s10 = scalar_lea.sflag [#allocation6], %s542_s23 }
  0xa3   : > { %3142 = dma.done.wait (%p4052_p8), %s543_s10, 128  }
  0xa4   : > { %3144 = vsyncadd (%p4052_p8), %s543_s10, 4294967168  ;;  %p4053_p10 = scmp.eq.s32.totalorder %s3331_s19, 0 }
  0xa6   : > { %3146 = dma.done.wait (%p4053_p10), [#allocation6], 2048   ;;  %p4054_p3 = pmov %p4053_p10 }
  0xa8   : > { %3148 = vsyncadd (%p4054_p3), [#allocation6], 4294965248  ;;  %p4055_p13 = pmov %p4054_p3 }
  0xa9   : > { %p4056_p0 = pmov %p4054_p3 }
  0xaa   : > { %3150 = dma.done.wait (%p4055_p13), [#allocation9], 2048  }
  0xab   : > { %3152 = vsyncadd (%p4056_p0), [#allocation9], 4294965248  ;;  %s2417_s24 = sshll.u32 %s3504_s2, 4  ;;  %s587_s12 = scalar_lea.vmem [#allocation10], %s3507_s20 }
  0xac   : > { %s3533_s29 = scalar_lea.vmem [#allocation11], %s2417_s24  ;;  %p2418_p5 = scmp.ne.s32.totalorder %s3191_s16, 0 }
  0xad   : > { %v3209_v0 = vmov (!%p2418_p5), 0.0  }
  0xae   : > { %621 = sbr.rel (%p2418_p5) target bundleno = 234 (0xea), region = 64  ;;  %622 = vst [vmem:[#allocation13] sm:$0xff] (!%p2418_p5), %v3209_v0  ;;  %623 = vst [vmem:[#allocation13 + $0x8] sm:$0xff] (!%p2418_p5), %v3209_v0 }
  0xaf   : > { %624 = vst [vmem:[#allocation13 + $0x10] sm:$0xff] (!%p2418_p5), %v3209_v0  ;;  %625 = vst [vmem:[#allocation13 + $0x18] sm:$0xff] (!%p2418_p5), %v3209_v0 }
  0xb0   : > { %626 = vst [vmem:[#allocation13 + $0x20] sm:$0xff] (!%p2418_p5), %v3209_v0  ;;  %627 = vst [vmem:[#allocation13 + $0x28] sm:$0xff] (!%p2418_p5), %v3209_v0 }
  0xb1   : > { %628 = vst [vmem:[#allocation13 + $0x30] sm:$0xff] (!%p2418_p5), %v3209_v0  ;;  %629 = vst [vmem:[#allocation13 + $0x38] sm:$0xff] (!%p2418_p5), %v3209_v0 }
  0xb2   : > { %630 = vst [vmem:[#allocation13 + $0x40] sm:$0xff] (!%p2418_p5), %v3209_v0  ;;  %631 = vst [vmem:[#allocation13 + $0x48] sm:$0xff] (!%p2418_p5), %v3209_v0 }
  0xb3   : > { %632 = vst [vmem:[#allocation13 + $0x50] sm:$0xff] (!%p2418_p5), %v3209_v0  ;;  %633 = vst [vmem:[#allocation13 + $0x58] sm:$0xff] (!%p2418_p5), %v3209_v0 }
  0xb4   : > { %634 = vst [vmem:[#allocation13 + $0x60] sm:$0xff] (!%p2418_p5), %v3209_v0  ;;  %635 = vst [vmem:[#allocation13 + $0x68] sm:$0xff] (!%p2418_p5), %v3209_v0 }
  0xb5   : > { %636 = vst [vmem:[#allocation13 + $0x70] sm:$0xff] %v3209_v0  ;;  %637 = vst [vmem:[#allocation13 + $0x78] sm:$0xff] %v3209_v0 }
  0xb6   : > { %638 = vst [vmem:[#allocation14] sm:$0xff] %v3209_v0  ;;  %639 = vst [vmem:[#allocation14 + $0x8] sm:$0xff] %v3209_v0 }
  0xb7   : > { %640 = vst [vmem:[#allocation14 + $0x10] sm:$0xff] %v3209_v0  ;;  %641 = vst [vmem:[#allocation14 + $0x18] sm:$0xff] %v3209_v0 }
  0xb8   : > { %642 = vst [vmem:[#allocation14 + $0x20] sm:$0xff] %v3209_v0  ;;  %643 = vst [vmem:[#allocation14 + $0x28] sm:$0xff] %v3209_v0 }
  0xb9   : > { %644 = vst [vmem:[#allocation14 + $0x30] sm:$0xff] %v3209_v0  ;;  %645 = vst [vmem:[#allocation14 + $0x38] sm:$0xff] %v3209_v0 }
  0xba   : > { %646 = vst [vmem:[#allocation14 + $0x40] sm:$0xff] %v3209_v0  ;;  %647 = vst [vmem:[#allocation14 + $0x48] sm:$0xff] %v3209_v0 }
  0xbb   : > { %648 = vst [vmem:[#allocation14 + $0x50] sm:$0xff] %v3209_v0  ;;  %649 = vst [vmem:[#allocation14 + $0x58] sm:$0xff] %v3209_v0 }
  0xbc   : > { %650 = vst [vmem:[#allocation14 + $0x60] sm:$0xff] %v3209_v0  ;;  %651 = vst [vmem:[#allocation14 + $0x68] sm:$0xff] %v3209_v0 }
  0xbd   : > { %652 = vst [vmem:[#allocation14 + $0x70] sm:$0xff] %v3209_v0  ;;  %653 = vst [vmem:[#allocation14 + $0x78] sm:$0xff] %v3209_v0 }
  0xbe   : > { %654 = vst [vmem:[#allocation14 + $0x80] sm:$0xff] %v3209_v0  ;;  %655 = vst [vmem:[#allocation14 + $0x88] sm:$0xff] %v3209_v0 }
  0xbf   : > { %656 = vst [vmem:[#allocation14 + $0x90] sm:$0xff] %v3209_v0  ;;  %657 = vst [vmem:[#allocation14 + $0x98] sm:$0xff] %v3209_v0 }
  0xc0   : > { %658 = vst [vmem:[#allocation14 + $0xa0] sm:$0xff] %v3209_v0  ;;  %659 = vst [vmem:[#allocation14 + $0xa8] sm:$0xff] %v3209_v0 }
  0xc1   : > { %660 = vst [vmem:[#allocation14 + $0xb0] sm:$0xff] %v3209_v0  ;;  %661 = vst [vmem:[#allocation14 + $0xb8] sm:$0xff] %v3209_v0 }
  0xc2   : > { %662 = vst [vmem:[#allocation14 + $0xc0] sm:$0xff] %v3209_v0  ;;  %663 = vst [vmem:[#allocation14 + $0xc8] sm:$0xff] %v3209_v0 }
  0xc3   : > { %664 = vst [vmem:[#allocation14 + $0xd0] sm:$0xff] %v3209_v0  ;;  %665 = vst [vmem:[#allocation14 + $0xd8] sm:$0xff] %v3209_v0 }
  0xc4   : > { %666 = vst [vmem:[#allocation14 + $0xe0] sm:$0xff] %v3209_v0  ;;  %667 = vst [vmem:[#allocation14 + $0xe8] sm:$0xff] %v3209_v0 }
  0xc5   : > { %668 = vst [vmem:[#allocation14 + $0xf0] sm:$0xff] %v3209_v0  ;;  %669 = vst [vmem:[#allocation14 + $0xf8] sm:$0xff] %v3209_v0 }
  0xc6   : > { %670 = vst [vmem:[#allocation16] sm:$0xff] %v3209_v0  ;;  %671 = vst [vmem:[#allocation16 + $0x8] sm:$0xff] %v3209_v0 }
  0xc7   : > { %672 = vst [vmem:[#allocation16 + $0x10] sm:$0xff] %v3209_v0  ;;  %673 = vst [vmem:[#allocation16 + $0x18] sm:$0xff] %v3209_v0 }
  0xc8   : > { %674 = vst [vmem:[#allocation16 + $0x20] sm:$0xff] %v3209_v0  ;;  %675 = vst [vmem:[#allocation16 + $0x28] sm:$0xff] %v3209_v0 }
  0xc9   : > { %676 = vst [vmem:[#allocation16 + $0x30] sm:$0xff] %v3209_v0  ;;  %677 = vst [vmem:[#allocation16 + $0x38] sm:$0xff] %v3209_v0 }
  0xca   : > { %678 = vst [vmem:[#allocation16 + $0x40] sm:$0xff] %v3209_v0  ;;  %679 = vst [vmem:[#allocation16 + $0x48] sm:$0xff] %v3209_v0 }
  0xcb   : > { %680 = vst [vmem:[#allocation16 + $0x50] sm:$0xff] %v3209_v0  ;;  %681 = vst [vmem:[#allocation16 + $0x58] sm:$0xff] %v3209_v0 }
  0xcc   : > { %682 = vst [vmem:[#allocation16 + $0x60] sm:$0xff] %v3209_v0  ;;  %683 = vst [vmem:[#allocation16 + $0x68] sm:$0xff] %v3209_v0 }
  0xcd   : > { %684 = vst [vmem:[#allocation16 + $0x70] sm:$0xff] %v3209_v0  ;;  %685 = vst [vmem:[#allocation16 + $0x78] sm:$0xff] %v3209_v0 }
  0xce   : > { %686 = vst [vmem:[#allocation16 + $0x80] sm:$0xff] %v3209_v0  ;;  %687 = vst [vmem:[#allocation16 + $0x88] sm:$0xff] %v3209_v0 }
  0xcf   : > { %688 = vst [vmem:[#allocation16 + $0x90] sm:$0xff] %v3209_v0  ;;  %689 = vst [vmem:[#allocation16 + $0x98] sm:$0xff] %v3209_v0 }
  0xd0   : > { %690 = vst [vmem:[#allocation16 + $0xa0] sm:$0xff] %v3209_v0  ;;  %691 = vst [vmem:[#allocation16 + $0xa8] sm:$0xff] %v3209_v0 }
  0xd1   : > { %692 = vst [vmem:[#allocation16 + $0xb0] sm:$0xff] %v3209_v0  ;;  %693 = vst [vmem:[#allocation16 + $0xb8] sm:$0xff] %v3209_v0 }
  0xd2   : > { %694 = vst [vmem:[#allocation16 + $0xc0] sm:$0xff] %v3209_v0  ;;  %695 = vst [vmem:[#allocation16 + $0xc8] sm:$0xff] %v3209_v0 }
  0xd3   : > { %696 = vst [vmem:[#allocation16 + $0xd0] sm:$0xff] %v3209_v0  ;;  %697 = vst [vmem:[#allocation16 + $0xd8] sm:$0xff] %v3209_v0 }
  0xd4   : > { %698 = vst [vmem:[#allocation16 + $0xe0] sm:$0xff] %v3209_v0  ;;  %699 = vst [vmem:[#allocation16 + $0xe8] sm:$0xff] %v3209_v0 }
  0xd5   : > { %700 = vst [vmem:[#allocation16 + $0xf0] sm:$0xff] %v3209_v0  ;;  %701 = vst [vmem:[#allocation16 + $0xf8] sm:$0xff] %v3209_v0 }
  0xd6   : > { %702 = vst [vmem:[#allocation16 + $0x100] sm:$0xff] %v3209_v0  ;;  %703 = vst [vmem:[#allocation16 + $0x108] sm:$0xff] %v3209_v0 }
  0xd7   : > { %704 = vst [vmem:[#allocation16 + $0x110] sm:$0xff] %v3209_v0  ;;  %705 = vst [vmem:[#allocation16 + $0x118] sm:$0xff] %v3209_v0 }
  0xd8   : > { %706 = vst [vmem:[#allocation16 + $0x120] sm:$0xff] %v3209_v0  ;;  %707 = vst [vmem:[#allocation16 + $0x128] sm:$0xff] %v3209_v0 }
  0xd9   : > { %708 = vst [vmem:[#allocation16 + $0x130] sm:$0xff] %v3209_v0  ;;  %709 = vst [vmem:[#allocation16 + $0x138] sm:$0xff] %v3209_v0 }
  0xda   : > { %710 = vst [vmem:[#allocation16 + $0x140] sm:$0xff] %v3209_v0  ;;  %711 = vst [vmem:[#allocation16 + $0x148] sm:$0xff] %v3209_v0 }
  0xdb   : > { %712 = vst [vmem:[#allocation16 + $0x150] sm:$0xff] %v3209_v0  ;;  %713 = vst [vmem:[#allocation16 + $0x158] sm:$0xff] %v3209_v0 }
  0xdc   : > { %714 = vst [vmem:[#allocation16 + $0x160] sm:$0xff] %v3209_v0  ;;  %715 = vst [vmem:[#allocation16 + $0x168] sm:$0xff] %v3209_v0 }
  0xdd   : > { %716 = vst [vmem:[#allocation16 + $0x170] sm:$0xff] %v3209_v0  ;;  %717 = vst [vmem:[#allocation16 + $0x178] sm:$0xff] %v3209_v0 }
  0xde   : > { %718 = vst [vmem:[#allocation16 + $0x180] sm:$0xff] %v3209_v0  ;;  %719 = vst [vmem:[#allocation16 + $0x188] sm:$0xff] %v3209_v0 }
  0xdf   : > { %720 = vst [vmem:[#allocation16 + $0x190] sm:$0xff] %v3209_v0  ;;  %721 = vst [vmem:[#allocation16 + $0x198] sm:$0xff] %v3209_v0 }
  0xe0   : > { %722 = vst [vmem:[#allocation16 + $0x1a0] sm:$0xff] %v3209_v0  ;;  %723 = vst [vmem:[#allocation16 + $0x1a8] sm:$0xff] %v3209_v0 }
  0xe1   : > { %724 = vst [vmem:[#allocation16 + $0x1b0] sm:$0xff] %v3209_v0  ;;  %725 = vst [vmem:[#allocation16 + $0x1b8] sm:$0xff] %v3209_v0 }
  0xe2   : > { %726 = vst [vmem:[#allocation16 + $0x1c0] sm:$0xff] %v3209_v0  ;;  %727 = vst [vmem:[#allocation16 + $0x1c8] sm:$0xff] %v3209_v0 }
  0xe3   : > { %728 = vst [vmem:[#allocation16 + $0x1d0] sm:$0xff] %v3209_v0  ;;  %729 = vst [vmem:[#allocation16 + $0x1d8] sm:$0xff] %v3209_v0 }
  0xe4   : > { %730 = vst [vmem:[#allocation16 + $0x1e0] sm:$0xff] %v3209_v0  ;;  %731 = vst [vmem:[#allocation16 + $0x1e8] sm:$0xff] %v3209_v0 }
  0xe5   : > { %732 = vst [vmem:[#allocation16 + $0x1f0] sm:$0xff] %v3209_v0  ;;  %733 = vst [vmem:[#allocation16 + $0x1f8] sm:$0xff] %v3209_v0 }
  0xe6   : > { %734 = vst [vmem:[#allocation17] sm:$0xff] %v3209_v0  ;;  %735 = vst [vmem:[#allocation17 + $0x8] sm:$0xff] %v3209_v0 }
  0xe7   : > { %736 = vst [vmem:[#allocation19] sm:$0xff] %v3209_v0  ;;  %737 = vst [vmem:[#allocation19 + $0x8] sm:$0xff] %v3209_v0 }
  0xe8   : > { %738 = vst [vmem:[#allocation20] sm:$0xff] %v3209_v0  ;;  %739 = vst [vmem:[#allocation20 + $0x8] sm:$0xff] %v3209_v0 }
  0xe9   : > { %740 = vst [vmem:[#allocation22] sm:$0xff] %v3209_v0 }
  0xea PF: > { %v2715_v1 = vld [vmem:[#allocation7 + $0x4] ss:$8 sps:$4 sm:$0xff]   ;;  %v2717_v2 = vld [vmem:[#allocation7] ss:$8 sps:$4 sm:$0xff]   ;;  %v3210_v3 = vmov 0   ;;  %v2743_v18 = vld [vmem:[#allocation8 + $0x50] sm:$0xff]   ;;  %v762_v43 = vlaneseq }
  0xeb   : > { %884 = vmatprep.mubr.bf16.mxu0 %v3210_v3  ;;  %852 = vmatprep.subr.bf16.mxu0 %v2715_v1  ;;  %v2718_v4 = vld [vmem:[#allocation7 + $0x14] ss:$8 sps:$4 sm:$0xff]   ;;  %v2720_v5 = vld [vmem:[#allocation7 + $0x10] ss:$8 sps:$4 sm:$0xff]   ;;  %v2721_v6 = vld [vmem:[#allocation7 + $0x24] ss:$8 sps:$4 sm:$0xff]  }
  0xec   : > { %853 = vmatpush1.bf16.msra.mxu0 %v2717_v2  ;;  %v2723_v7 = vld [vmem:[#allocation7 + $0x20] ss:$8 sps:$4 sm:$0xff]   ;;  %v2724_v8 = vld [vmem:[#allocation7 + $0x34] ss:$8 sps:$4 sm:$0xff]   ;;  %v2726_v9 = vld [vmem:[#allocation7 + $0x30] ss:$8 sps:$4 sm:$0xff]  }
  0xed   : > { %854 = vmatprep.subr.bf16.mxu0 %v2718_v4  ;;  %v2727_v10 = vld [vmem:[#allocation7 + $0x44] ss:$8 sps:$4 sm:$0xff]   ;;  %v2729_v15 = vld [vmem:[#allocation7 + $0x40] ss:$8 sps:$4 sm:$0xff]   ;;  %v2730_v19 = vld [vmem:[#allocation7 + $0x54] ss:$8 sps:$4 sm:$0xff]  }
  0xee   : > { %v741_v11 = vld [vmem:[%s537_s8] sm:$0xff]  ;;  %v2732_v20 = vld [vmem:[#allocation7 + $0x50] ss:$8 sps:$4 sm:$0xff]   ;;  %v2736_v26 = vld [vmem:[#allocation7 + $0x74] ss:$8 sps:$4 sm:$0xff]   ;;  %vm1201_vm1 = vcmask 1043456  }
  0xef   : > { %v1126_v12 = vmul.f32 %v741_v11, %v741_v11  ;;  %v2739_v13 = vld [vmem:[#allocation8 + $0x40] sm:$0xff]   ;;  %v2741_v16 = vld [vmem:[#allocation8 + $0x48] sm:$0xff]   ;;  %v2744_v21 = vld [vmem:[#allocation8 + $0x10] sm:$0xff]   ;;  %v743_v31 = vpack.c.bf16 %v741_v11, %v741_v11  ;;  %v763_v44 = vshrl.u32 %v762_v43, 7  ;;  %s2452_s21 = sshll.u32 %s3191_s16, 3  ;;  %v3211_v60 = vmov 0.0  }
  0xf0   : > { %855 = vmatpush1.bf16.msra.mxu0 %v2720_v5  ;;  %v2740_v14 = vld [vmem:[#allocation8] sm:$0xff]   ;;  %2510 = vmatprep.subr.bf16.mxu1 %v2739_v13  ;;  %v2742_v17 = vld [vmem:[#allocation8 + $0x8] sm:$0xff]   ;;  %v2745_v22 = vld [vmem:[#allocation8 + $0x58] sm:$0xff]   ;;  %v1082_v47 = vstv %s2452_s21  ;;  %vm1176_vm5 = vcmask 64512   ;;  %s2509_s6 = sshll.u32 %s3191_s16, 8  ;;  %s2051_s9 = sshll.u32 %s3533_s29, 4  ;;  %s3753_s9 = int_to_ptr.vmem [resolvable:$true] %s2051_s9 }
  0xf1   : > { %856 = vmatprep.subr.bf16.mxu0 %v2721_v6  ;;  %1127 = vadd.xlane.f32.xlu0 %v1126_v12  ;;  %v2733_v23 = vld [vmem:[#allocation7 + $0x64] ss:$8 sps:$4 sm:$0xff]   ;;  %v2735_v24 = vld [vmem:[#allocation7 + $0x60] ss:$8 sps:$4 sm:$0xff]   ;;  %v2746_v25 = vld [vmem:[#allocation8 + $0x18] sm:$0xff]   ;;  %v764_v45 = vsub.s32 0, %v763_v44  ;;  %v1083_v50 = vadd.s32 %v1082_v47, %v763_v44  ;;  %s3751_s8 = scalar_lea.hbm %s4006_s7, %s2509_s6 }
  0xf2   : > { %2511 = vmatpush3.bf16.msra.mxu1 %v2740_v14  ;;  %v2747_v27 = vld [vmem:[#allocation8 + $0x60] sm:$0xff]   ;;  %v2738_v29 = vld [vmem:[#allocation7 + $0x70] ss:$8 sps:$4 sm:$0xff]   ;;  %v2749_v30 = vld [vmem:[#allocation8 + $0x68] sm:$0xff]   ;;  %v768_v48 = vsub.s32 1, %v763_v44  ;;  %s3212_s10 = smov [#allocation14]  }
  0xf3   : > { %2512 = vmatprep.subr.bf16.mxu1 %v2741_v16  ;;  %v2748_v28 = vld [vmem:[#allocation8 + $0x20] sm:$0xff]   ;;  %v2750_v32 = vld [vmem:[#allocation8 + $0x28] sm:$0xff]   ;;  %v2751_v33 = vld [vmem:[#allocation8 + $0x70] sm:$0xff]   ;;  %vm1084_vm2 = vcmp.lt.s32.totalorder %v1083_v50, 30  ;;  %s2020_s24 = scalar_lea.sflag [#allocation12], %s542_s23  ;;  %p4057_p12 = scmp.ne.s32.totalorder %s4048_s14, 0 }
  0xf4   : > { %857 = vmatpush1.bf16.msra.mxu0 %v2723_v7  ;;  %v2752_v34 = vld [vmem:[#allocation8 + $0x30] sm:$0xff]   ;;  %v2753_v35 = vld [vmem:[#allocation8 + $0x78] sm:$0xff]   ;;  %v760_v46 = vld [vmem:[%s4002_s3] sm:$0x3]  ;;  %v3664_v61 = vsel %vm1084_vm2, 1.0, %v3211_v60  ;;  %s3213_s21 = smov [#allocation11]  }
  0xf5   : > { %858 = vmatprep.subr.bf16.mxu0 %v2724_v8  ;;  %v2754_v36 = vld [vmem:[#allocation8 + $0x38] sm:$0xff]   ;;  %v765_v49 = vrot.slane %v760_v46, %v764_v45  ;;  %v769_v51 = vrot.slane %v760_v46, %v768_v48  ;;  %v1093_v0 = vld [vmem:[#allocation17] sm:$0xff]  ;;  %v1121_v48 = vld [vmem:[#allocation22] sm:$0xff]  ;;  %s2879_s4 = sshll.u32 %s3213_s21, 4  ;;  %s2880_s4 = int_to_ptr.vmem [resolvable:$false] %s2879_s4 }
  0xf6   : > { %2513 = vmatpush3.bf16.msra.mxu1 %v2742_v17  ;;  %v1109_v1 = vld [vmem:[#allocation20] sm:$0xff]  ;;  %v1094_v5 = vld [vmem:[#allocation17 + $0x8] sm:$0xff]  ;;  %s2881_s22 = scalar_lea.vmem %s2880_s4, 512  ;;  %p2882_p1 = scmp.lt.s32.totalorder %s3753_s9, %s2880_s4 }
  0xf7   : > { %2514 = vmatprep.subr.bf16.mxu1 %v2743_v18  ;;  %v1110_v6 = vld [vmem:[#allocation20 + $0x8] sm:$0xff] }
  0xf8   : > { %859 = vmatpush1.bf16.msra.mxu0 %v2726_v9  ;;  %v742_v43 = vld [vmem:[%s546_s27] sm:$0xff]  ;;  %s3755_s27 = sshll.u32 %s3212_s10, 4  ;;  %s3781_s27 = int_to_ptr.vmem [resolvable:$true] %s3755_s27 }
  0xf9   : > { %860 = vmatprep.subr.bf16.mxu0 %v2727_v10  ;;  %v1101_v10 = vld [vmem:[#allocation19] sm:$0xff]  ;;  %v1145_v60 = vld [vmem:[#allocation13 + $0x8] sm:$0xff] }
  0xfa   : > { %2515 = vmatpush3.bf16.msra.mxu1 %v2744_v21 }
  0xfb   : > { %2516 = vmatprep.subr.bf16.mxu1 %v2745_v22 }
  0xfc   : > { %861 = vmatpush1.bf16.msra.mxu0 %v2729_v15  ;;  %v1102_v15 = vld [vmem:[#allocation19 + $0x8] sm:$0xff] }
  0xfd   : > { %862 = vmatprep.subr.bf16.mxu0 %v2730_v19 }
  0xfe   : > { %2517 = vmatpush3.bf16.msra.mxu1 %v2746_v25 }
  0xff   : > { %2518 = vmatprep.subr.bf16.mxu1 %v2747_v27 }
 0x100   : > { %863 = vmatpush1.bf16.msra.mxu0 %v2732_v20 }
 0x101   : > { %864 = vmatprep.subr.bf16.mxu0 %v2733_v23 }
 0x102   : > { %2519 = vmatpush3.bf16.msra.mxu1 %v2748_v28 }
 0x103   : > { %2520 = vmatprep.subr.bf16.mxu1 %v2749_v30 }
 0x104   : > { %865 = vmatpush1.bf16.msra.mxu0 %v2735_v24 }
 0x105   : > { %866 = vmatprep.subr.bf16.mxu0 %v2736_v26 }
 0x106   : > { %2521 = vmatpush3.bf16.msra.mxu1 %v2750_v32 }
 0x107   : > { %2522 = vmatprep.subr.bf16.mxu1 %v2751_v33 }
 0x108   : > { %867 = vmatpush1.bf16.msra.mxu0 %v2738_v29 }
 0x10a   : > { %2523 = vmatpush3.bf16.msra.mxu1 %v2752_v34 }
 0x10b   : > { %885 = vmatmul.mubr.bf16.vlgmr.msra.gmra.mrb[0].mxu0 %v743_v31  ;;  %2524 = vmatprep.subr.bf16.mxu1 %v2753_v35 }
 0x10e   : > { %2525 = vmatpush3.bf16.msra.mxu1 %v2754_v36 }
 0x17e   : > { %v1128_v37 = vpop.xlane.xlu0 %1127 }
 0x17f   : > { %2755 = vrsqrt.f32 %v1128_v37  ;;  %vm1132_vm0 = vcmp.gt.f32.partialorder %v1128_v37, 0.0 }
 0x189   : > { %v2756_v38 = vpop.eup %2755 }
 0x18a   : > { %v1134_v39 = vsel %vm1132_vm0, %v2756_v38, 0.0 }
 0x18b   : > { %v1135_v40 = vmul.f32 %v1134_v39, %v741_v11  ;;  %v2435_v39 = vld [vmem:[%s4004_s5] ss:$0 sm:$0xff] }
 0x18d   : > { %v1136_v41 = vpack.c.bf16 %v1135_v40, %v1135_v40 }
 0x18f   : > { %1160 = vxpose.xlu1.c.b16.start.end [1/1] (short) %v1136_v41, 128  ;;  %2561 = vmatprep.subr.msk.bf16.mxu0 %vm1201_vm1, %v1136_v41  ;;  %v1203_v42 = vsel %vm1201_vm1, %v1136_v41, 0 }
 0x190   : > { %2542 = vmatpush3.bf16.msra.mxu0 %v1203_v42 }
 0x1de   : > { %v886_v52 = vpop.f32.mrb[0].mxu0 }
 0x1df   : > { %v887_v53 = vadd.f32 %v886_v52, %v765_v49  ;;  %v888_v54 = vpop.f32.mrb[1].mxu0 }
 0x1e0   : > { %v889_v55 = vadd.f32 %v888_v54, %v769_v51  ;;  %v890_v56 = vpop.f32.mrb[2].mxu0  ;;  %v1146_v51 = vld [vmem:[#allocation13 + $0x10] sm:$0xff]  ;;  %v1144_v54 = vld [vmem:[#allocation13] sm:$0xff] }
 0x1e1   : > { %v893_v57 = vmax.f32 %v887_v53, 0.0  ;;  %v891_v58 = vpop.f32.mrb[3].mxu0 }
 0x1e2   : > { %v894_v59 = vmax.f32 %v889_v55, 0.0 }
 0x1e3   : > { %v895_v62 = vmin.f32 %v893_v57, 1.0  ;;  %v1147_v57 = vld [vmem:[#allocation13 + $0x18] sm:$0xff] }
 0x1e4   : > { %v896_v63 = vmin.f32 %v894_v59, 1.0 }
 0x1e5   : > { %1075 = vst [vmem:[%s3533_s29] sm:$0xff] %v895_v62  ;;  %v897_v2 = vpack.c.bf16 %v895_v62, %v895_v62  ;;  %v1087_v4 = vmul.f32 %v3664_v61, %v895_v62  ;;  %vm1111_vm3 = vcmp.eq.f32.partialorder %v895_v62, 0.0 }
 0x1e6   : > { %1076 = vst [vmem:[%s3533_s29 + $0x8] sm:$0xff] %v896_v63  ;;  %v898_v7 = vpack.c.bf16 %v896_v63, %v896_v63  ;;  %v1088_v8 = vmul.f32 %v3664_v61, %v896_v63  ;;  %vm1112_vm4 = vcmp.eq.f32.partialorder %v896_v63, 0.0  ;;  %v1113_v9 = vsel %vm1111_vm3, %v3664_v61, 0.0  ;;  %s2875_s29 = scalar_lea.vmem %s3753_s9, 256 }
 0x1e7   : > { %v1089_v11 = vmul.f32 %v1087_v4, %v1087_v4  ;;  %v1097_v12 = vadd.f32 %v1093_v0, %v1087_v4  ;;  %v1114_v13 = vsel %vm1112_vm4, %v3664_v61, 0.0  ;;  %v1117_v14 = vadd.f32 %v1113_v9, %v1109_v1  ;;  %p2876_p9 = scmp.ne.s32.totalorder %s3753_s9, %s2875_s29  ;;  %p2883_p4 = scmp.lt.s32.totalorder %s2881_s22, %s2875_s29 }
 0x1e8   : > { %1066 = vmatprep.mubr.bf16.mxu1 %v898_v7  ;;  %v1090_v16 = vmul.f32 %v1088_v8, %v1088_v8  ;;  %v1098_v17 = vadd.f32 %v1094_v5, %v1088_v8  ;;  %v1118_v18 = vadd.f32 %v1114_v13, %v1110_v6 }
 0x1e9   : > { %1067 = vmatmul.mubr.bf16.vlgmr.msra.gmra.mrb[0].mxu1 %v897_v2  ;;  %1099 = vst [vmem:[#allocation17] sm:$0xff] %v1097_v12  ;;  %1119 = vst [vmem:[#allocation20] sm:$0xff] %v1117_v14  ;;  %v1105_v19 = vadd.f32 %v1101_v10, %v1089_v11  ;;  %v1148_v12 = vld [vmem:[#allocation13 + $0x20] sm:$0xff]  ;;  %p2877_p11 = pnand %p2876_p9, %p4057_p12  ;;  %p2884_p6 = por %p2883_p4, %p2882_p1 }
 0x1ea   : > { %v1129_v20 = vadd.f32 %v1090_v16, %v1089_v11  ;;  %1404 = vmatprep.mubr.bf16.mxu1 %v3210_v3  ;;  %1100 = vst [vmem:[#allocation17 + $0x8] sm:$0xff] %v1098_v17  ;;  %1120 = vst [vmem:[#allocation20 + $0x8] sm:$0xff] %v1118_v18  ;;  %v1106_v21 = vadd.f32 %v1102_v15, %v1090_v16  ;;  %v1150_v11 = vld [vmem:[#allocation13 + $0x30] sm:$0xff]  ;;  %v1151_v15 = vld [vmem:[#allocation13 + $0x38] sm:$0xff] }
 0x1eb   : > { %1107 = vst [vmem:[#allocation19] sm:$0xff] %v1105_v19  ;;  %v1149_v19 = vld [vmem:[#allocation13 + $0x28] sm:$0xff]  ;;  %p2878_p7 = pneg %p2877_p11 }
 0x1ec   : > { %1130 = vadd.xlane.f32.xlu0 %v1129_v20  ;;  %1108 = vst [vmem:[#allocation19 + $0x8] sm:$0xff] %v1106_v21 }
 0x1ed   : > { %p2885_p2 = pnand %p2884_p6, %p2878_p7 }
 0x1f5   : > { %v1168_v22 = vpop.trf.xlu1 }
 0x1f6   : > { %2543 = vmatprep.mubr.msk.bf16.mxu0 %vm1176_vm5, %v1168_v22 }
 0x1f9   : > { %v1169_v23 = vpop.trf.xlu1 }
 0x1fa   : > { %2544 = vmatmul.mubr.msk.bf16.vlgmr.msra.gmra.mrb[4].mxu0 %vm1176_vm5, %v1169_v23 }
 0x1fd   : > { %v1170_v24 = vpop.trf.xlu1 }
 0x1fe   : > { %2547 = vmatprep.mubr.msk.bf16.mxu0 %vm1176_vm5, %v1170_v24 }
 0x201   : > { %v1171_v25 = vpop.trf.xlu1 }
 0x202   : > { %2548 = vmatmul.mubr.msk.bf16.gmra.mrb[8].mxu0 %vm1176_vm5, %v1171_v25 }
 0x205   : > { %v1172_v26 = vpop.trf.xlu1 }
 0x206   : > { %2551 = vmatprep.mubr.msk.bf16.mxu0 %vm1176_vm5, %v1172_v26 }
 0x209   : > { %v1173_v27 = vpop.trf.xlu1 }
 0x20a   : > { %2552 = vmatmul.mubr.msk.bf16.gmra.mrb[12].mxu0 %vm1176_vm5, %v1173_v27 }
 0x20d   : > { %v1174_v28 = vpop.trf.xlu1 }
 0x20e   : > { %2555 = vmatprep.mubr.msk.bf16.mxu0 %vm1176_vm5, %v1174_v28 }
 0x211   : > { %v1175_v29 = vpop.trf.xlu1 }
 0x212   : > { %2556 = vmatmul.mubr.msk.bf16.gmra.mrb[16].mxu0 %vm1176_vm5, %v1175_v29 }
 0x213   : > { %1725 = vmatprep.mubr.bf16.mxu0 %v3210_v3 }
 0x279   : > { %v1131_v30 = vpop.xlane.xlu0 %1130 }
 0x27a   : > { %2757 = vrsqrt.f32 %v1131_v30  ;;  %vm1137_vm6 = vcmp.gt.f32.partialorder %v1131_v30, 0.0 }
 0x284   : > { %v2758_v31 = vpop.eup %2757 }
 0x285   : > { %v1139_v32 = vsel %vm1137_vm6, %v2758_v31, 0.0 }
 0x286   : > { %v1141_v33 = vmul.f32 %v1139_v32, %v1088_v8  ;;  %v1140_v34 = vmul.f32 %v1139_v32, %v1087_v4 }
 0x288   : > { %v1143_v35 = vpack.c.bf16 %v1141_v33, %v1141_v33  ;;  %v1142_v36 = vpack.c.bf16 %v1140_v34, %v1140_v34  ;;  %v1153_v33 = vld [vmem:[#allocation13 + $0x48] sm:$0xff] }
 0x28a   : > { %1629 = vxpose.xlu0.c.b16.start.end [1/1] (short) %v1143_v35, 128  ;;  %2462 = vmatprep.subr.msk.bf16.mxu1 %vm1201_vm1, %v1143_v35  ;;  %v1367_v37 = vsel %vm1201_vm1, %v1142_v36, 0 }
 0x28b   : > { %2471 = vmatprep.subr.msk.bf16.mxu0 %vm1201_vm1, %v1143_v35  ;;  %1613 = vxpose.xlu1.c.b16.start.end [1/1] (short) %v1142_v36, 128 }
 0x28c   : > { %1373 = vmatpush1.bf16.msra.mxu1 %v1367_v37  ;;  %1694 = vmatpush1.bf16.msra.mxu0 %v1367_v37 }
 0x28d   : > { %2559 = vmatprep.subr.msk.bf16.mxu1 %vm1201_vm1, %v1143_v35 }
 0x28f   : > { %2463 = vmatmul.mubr.msk.bf16.vlgmr.msra.gmra.mrb[4].mxu1 %vm1176_vm5, %v1168_v22 }
 0x290   : > { %2560 = vmatpush1.bf16.msra.mxu1 %v1367_v37  ;;  %1414 = vmatprep.mubr.bf16.mxu1 %v3210_v3 }
 0x297   : > { %2464 = vmatmul.mubr.msk.bf16.gmra.mrb[8].mxu1 %vm1176_vm5, %v1169_v23 }
 0x298   : > { %1424 = vmatprep.mubr.bf16.mxu1 %v3210_v3 }
 0x29f   : > { %2465 = vmatmul.mubr.msk.bf16.gmra.mrb[12].mxu1 %vm1176_vm5, %v1170_v24 }
 0x2a0   : > { %1434 = vmatprep.mubr.bf16.mxu1 %v3210_v3 }
 0x2a7   : > { %2466 = vmatmul.mubr.msk.bf16.gmra.mrb[16].mxu1 %vm1176_vm5, %v1171_v25  ;;  %v1154_v25 = vld [vmem:[#allocation13 + $0x50] sm:$0xff] }
 0x2a8   : > { %1444 = vmatprep.mubr.bf16.mxu1 %v3210_v3 }
 0x2af   : > { %2467 = vmatmul.mubr.msk.bf16.gmra.mrb[20].mxu1 %vm1176_vm5, %v1172_v26  ;;  %v1152_v26 = vld [vmem:[#allocation13 + $0x40] sm:$0xff] }
 0x2b0   : > { %1454 = vmatprep.mubr.bf16.mxu1 %v3210_v3 }
 0x2b7   : > { %2468 = vmatmul.mubr.msk.bf16.gmra.mrb[24].mxu1 %vm1176_vm5, %v1173_v27 }
 0x2b8   : > { %1464 = vmatprep.mubr.bf16.mxu1 %v3210_v3 }
 0x2bc   : > { %v2526_v38 = vpop.f32.mrb[0].mxu1 }
 0x2bd   : > { %v2527_v40 = vpop.f32.mrb[1].mxu1 }
 0x2be   : > { %v2528_v41 = vadd.f32 %v2527_v40, %v2526_v38  ;;  %v2529_v42 = vpop.f32.mrb[2].mxu1  ;;  %v1156_v40 = vld [vmem:[#allocation13 + $0x60] sm:$0xff] }
 0x2bf   : > { %v2530_v44 = vpop.f32.mrb[3].mxu1  ;;  %2469 = vmatmul.mubr.msk.bf16.gmra.mrb[28].mxu1 %vm1176_vm5, %v1174_v28  ;;  %v1159_v42 = vld [vmem:[#allocation13 + $0x78] sm:$0xff] }
 0x2c0   : > { %v1069_v45 = vadd.f32 %v2528_v41, %v2435_v39  ;;  %1474 = vmatprep.mubr.bf16.mxu1 %v3210_v3  ;;  %v1158_v39 = vld [vmem:[#allocation13 + $0x70] sm:$0xff] }
 0x2c2   : > { %v1091_v46 = vsub.f32 %v1069_v45, %v742_v43  ;;  %1074 = vst [vmem:[%s587_s12] sm:$0xff] %v1069_v45 }
 0x2c4   : > { %v1092_v47 = vmul.f32 %v3664_v61, %v1091_v46  ;;  %v1157_v46 = vld [vmem:[#allocation13 + $0x68] sm:$0xff] }
 0x2c6   : > { %v1122_v49 = vmul.f32 %v1092_v47, %v1092_v47 }
 0x2c7   : > { %2470 = vmatmul.mubr.msk.bf16.gmra.mrb[32].mxu1 %vm1176_vm5, %v1175_v29  ;;  %v1155_v29 = vld [vmem:[#allocation13 + $0x58] sm:$0xff] }
 0x2c8   : > { %1825 = vmatprep.mubr.bf16.mxu1 %v3210_v3  ;;  %v1124_v50 = vadd.f32 %v1122_v49, %v1121_v48 }
 0x2ca   : > { %1125 = vst [vmem:[#allocation22] sm:$0xff] %v1124_v50 }
 0x2cd   : > { %v2545_v52 = vpop.f32.mrb[4].mxu0 }
 0x2ce   : > { %v1304_v53 = vadd.f32 %v2545_v52, %v1146_v51  ;;  %v1239_v55 = vpop.f32.mrb[5].mxu0  ;;  %v1334_v52 = vld [vmem:[#allocation14] sm:$0xff] }
 0x2cf   : > { %v1302_v56 = vadd.f32 %v1239_v55, %v1144_v54  ;;  %v2546_v58 = vpop.f32.mrb[6].mxu0  ;;  %v1336_v55 = vld [vmem:[#allocation14 + $0x10] sm:$0xff] }
 0x2d0   : > { %1320 = vst [vmem:[#allocation13 + $0x10] sm:$0xff] %v1304_v53  ;;  %v1305_v59 = vadd.f32 %v2546_v58, %v1147_v57  ;;  %v1242_v61 = vpop.f32.mrb[7].mxu0  ;;  %v1335_v53 = vld [vmem:[#allocation14 + $0x8] sm:$0xff]  ;;  %v1337_v58 = vld [vmem:[#allocation14 + $0x18] sm:$0xff] }
 0x2d1   : > { %1318 = vst [vmem:[#allocation13] sm:$0xff] %v1302_v56  ;;  %v1303_v63 = vadd.f32 %v1242_v61, %v1145_v60 }
 0x2d2   : > { %1321 = vst [vmem:[#allocation13 + $0x18] sm:$0xff] %v1305_v59 }
 0x2d3   : > { %1319 = vst [vmem:[#allocation13 + $0x8] sm:$0xff] %v1303_v63 }
 0x2d5   : > { %v2549_v14 = vpop.f32.mrb[8].mxu0 }
 0x2d6   : > { %v1308_v17 = vadd.f32 %v2549_v14, %v1150_v11  ;;  %v1255_v18 = vpop.f32.mrb[9].mxu0 }
 0x2d7   : > { %v1306_v20 = vadd.f32 %v1255_v18, %v1148_v12  ;;  %v2550_v21 = vpop.f32.mrb[10].mxu0  ;;  %v1342_v12 = vld [vmem:[#allocation14 + $0x40] sm:$0xff]  ;;  %v1345_v18 = vld [vmem:[#allocation14 + $0x58] sm:$0xff] }
 0x2d8   : > { %1324 = vst [vmem:[#allocation13 + $0x30] sm:$0xff] %v1308_v17  ;;  %v1309_v22 = vadd.f32 %v2550_v21, %v1151_v15  ;;  %v1258_v23 = vpop.f32.mrb[11].mxu0  ;;  %v1344_v15 = vld [vmem:[#allocation14 + $0x50] sm:$0xff] }
 0x2d9   : > { %1322 = vst [vmem:[#allocation13 + $0x20] sm:$0xff] %v1306_v20  ;;  %v1307_v24 = vadd.f32 %v1258_v23, %v1149_v19 }
 0x2da   : > { %1325 = vst [vmem:[#allocation13 + $0x38] sm:$0xff] %v1309_v22 }
 0x2db   : > { %1323 = vst [vmem:[#allocation13 + $0x28] sm:$0xff] %v1307_v24  ;;  %v1346_v24 = vld [vmem:[#allocation14 + $0x60] sm:$0xff] }
 0x2dd   : > { %v2553_v28 = vpop.f32.mrb[12].mxu0 }
 0x2de   : > { %v1312_v31 = vadd.f32 %v2553_v28, %v1154_v25  ;;  %v1271_v32 = vpop.f32.mrb[13].mxu0  ;;  %v1347_v25 = vld [vmem:[#allocation14 + $0x68] sm:$0xff] }
 0x2df   : > { %v1310_v34 = vadd.f32 %v1271_v32, %v1152_v26  ;;  %v2554_v35 = vpop.f32.mrb[14].mxu0 }
 0x2e0   : > { %1328 = vst [vmem:[#allocation13 + $0x50] sm:$0xff] %v1312_v31  ;;  %v1313_v36 = vadd.f32 %v2554_v35, %v1155_v29  ;;  %v1274_v37 = vpop.f32.mrb[15].mxu0 }
 0x2e1   : > { %1326 = vst [vmem:[#allocation13 + $0x40] sm:$0xff] %v1310_v34  ;;  %v1311_v38 = vadd.f32 %v1274_v37, %v1153_v33  ;;  %v1351_v37 = vld [vmem:[#allocation14 + $0x88] sm:$0xff] }
 0x2e2   : > { %1329 = vst [vmem:[#allocation13 + $0x58] sm:$0xff] %v1313_v36  ;;  %v1350_v36 = vld [vmem:[#allocation14 + $0x80] sm:$0xff] }
 0x2e3   : > { %1327 = vst [vmem:[#allocation13 + $0x48] sm:$0xff] %v1311_v38 }
 0x2e5   : > { %v2557_v41 = vpop.f32.mrb[16].mxu0 }
 0x2e6   : > { %v1316_v44 = vadd.f32 %v2557_v41, %v1158_v39  ;;  %v1287_v45 = vpop.f32.mrb[17].mxu0  ;;  %v1352_v39 = vld [vmem:[#allocation14 + $0x90] sm:$0xff] }
 0x2e7   : > { %v1314_v47 = vadd.f32 %v1287_v45, %v1156_v40  ;;  %v2558_v48 = vpop.f32.mrb[18].mxu0 }
 0x2e8   : > { %1332 = vst [vmem:[#allocation13 + $0x70] sm:$0xff] %v1316_v44  ;;  %v1317_v49 = vadd.f32 %v2558_v48, %v1159_v42  ;;  %v1290_v50 = vpop.f32.mrb[19].mxu0  ;;  %v1353_v42 = vld [vmem:[#allocation14 + $0x98] sm:$0xff]  ;;  %v1354_v48 = vld [vmem:[#allocation14 + $0xa0] sm:$0xff] }
 0x2e9   : > { %1330 = vst [vmem:[#allocation13 + $0x60] sm:$0xff] %v1314_v47  ;;  %v1315_v51 = vadd.f32 %v1290_v50, %v1157_v46 }
 0x2ea   : > { %1333 = vst [vmem:[#allocation13 + $0x78] sm:$0xff] %v1317_v49  ;;  %v1355_v49 = vld [vmem:[#allocation14 + $0xa8] sm:$0xff] }
 0x2eb   : > { %1331 = vst [vmem:[#allocation13 + $0x68] sm:$0xff] %v1315_v51  ;;  %v1356_v51 = vld [vmem:[#allocation14 + $0xb0] sm:$0xff] }
 0x2f0   : > { %v3710_v62 = vpop.trf.xlu0 }
 0x2f1   : > { %v1621_v0 = vpop.trf.xlu1 }
 0x2f2   : > { %2472 = vmatmul.mubr.msk.bf16.vlgmr.msra.gmra.mrb[20].mxu0 %vm1176_vm5, %v1621_v0 }
 0x2f3   : > { %1735 = vmatprep.mubr.bf16.mxu0 %v3210_v3 }
 0x2f4   : > { %v3714_v1 = vpop.trf.xlu0 }
 0x2f5   : > { %v1622_v2 = vpop.trf.xlu1 }
 0x2f8   : > { %v1639_v4 = vpop.trf.xlu0 }
 0x2f9   : > { %2482 = vmatmul.mubr.msk.bf16.vlgmr.msra.gmra.mrb[36].mxu1 %vm1176_vm5, %v1639_v4  ;;  %v1623_v6 = vpop.trf.xlu1 }
 0x2fa   : > { %2473 = vmatmul.mubr.msk.bf16.gmra.mrb[24].mxu0 %vm1176_vm5, %v1622_v2  ;;  %1835 = vmatprep.mubr.bf16.mxu1 %v3210_v3 }
 0x2fb   : > { %1745 = vmatprep.mubr.bf16.mxu0 %v3210_v3 }
 0x2fc   : > { %v1640_v5 = vpop.trf.xlu0 }
 0x2fd   : > { %v1624_v8 = vpop.trf.xlu1 }
 0x300   : > { %v1641_v7 = vpop.trf.xlu0 }
 0x301   : > { %2483 = vmatmul.mubr.msk.bf16.gmra.mrb[40].mxu1 %vm1176_vm5, %v1640_v5  ;;  %v1625_v10 = vpop.trf.xlu1 }
 0x302   : > { %2474 = vmatmul.mubr.msk.bf16.gmra.mrb[28].mxu0 %vm1176_vm5, %v1623_v6  ;;  %1845 = vmatprep.mubr.bf16.mxu1 %v3210_v3  ;;  %v1341_v6 = vld [vmem:[#allocation14 + $0x38] sm:$0xff] }
 0x303   : > { %1755 = vmatprep.mubr.bf16.mxu0 %v3210_v3 }
 0x304   : > { %v1642_v9 = vpop.trf.xlu0 }
 0x305   : > { %v1626_v16 = vpop.trf.xlu1 }
 0x308   : > { %v1643_v13 = vpop.trf.xlu0 }
 0x309   : > { %2484 = vmatmul.mubr.msk.bf16.gmra.mrb[44].mxu1 %vm1176_vm5, %v1641_v7  ;;  %v1627_v30 = vpop.trf.xlu1 }
 0x30a   : > { %2475 = vmatmul.mubr.msk.bf16.gmra.mrb[32].mxu0 %vm1176_vm5, %v1624_v8  ;;  %1855 = vmatprep.mubr.bf16.mxu1 %v3210_v3 }
 0x30b   : > { %1765 = vmatprep.mubr.bf16.mxu0 %v3210_v3 }
 0x30c   : > { %v1644_v27 = vpop.trf.xlu0 }
 0x30d   : > { %v1628_v43 = vpop.trf.xlu1 }
 0x311   : > { %2485 = vmatmul.mubr.msk.bf16.gmra.mrb[48].mxu1 %vm1176_vm5, %v1642_v9 }
 0x312   : > { %2476 = vmatmul.mubr.msk.bf16.gmra.mrb[36].mxu0 %vm1176_vm5, %v1625_v10  ;;  %1865 = vmatprep.mubr.bf16.mxu1 %v3210_v3 }
 0x313   : > { %1775 = vmatprep.mubr.bf16.mxu0 %v3210_v3 }
 0x319   : > { %2486 = vmatmul.mubr.msk.bf16.gmra.mrb[52].mxu1 %vm1176_vm5, %v1643_v13  ;;  %v1343_v13 = vld [vmem:[#allocation14 + $0x48] sm:$0xff] }
 0x31a   : > { %2477 = vmatmul.mubr.msk.bf16.gmra.mrb[40].mxu0 %vm1176_vm5, %v1626_v16  ;;  %1875 = vmatprep.mubr.bf16.mxu1 %v3210_v3 }
 0x31b   : > { %1785 = vmatprep.mubr.bf16.mxu0 %v3210_v3 }
 0x321   : > { %2487 = vmatmul.mubr.msk.bf16.gmra.mrb[56].mxu1 %vm1176_vm5, %v1644_v27  ;;  %v1348_v27 = vld [vmem:[#allocation14 + $0x70] sm:$0xff] }
 0x322   : > { %2478 = vmatmul.mubr.msk.bf16.gmra.mrb[44].mxu0 %vm1176_vm5, %v1627_v30  ;;  %v1349_v30 = vld [vmem:[#allocation14 + $0x78] sm:$0xff] }
 0x323   : > { %1795 = vmatprep.mubr.bf16.mxu0 %v3210_v3 }
 0x32a   : > { %2479 = vmatmul.mubr.msk.bf16.gmra.mrb[48].mxu0 %vm1176_vm5, %v1628_v43 }
 0x32b   : > { %1805 = vmatprep.mubr.bf16.mxu0 %v3210_v3 }
 0x332   : > { %2480 = vmatmul.mubr.msk.bf16.gmra.mrb[52].mxu0 %vm1176_vm5, %v3710_v62  ;;  %v1339_v62 = vld [vmem:[#allocation14 + $0x28] sm:$0xff] }
 0x333   : > { %1815 = vmatprep.mubr.bf16.mxu0 %v3210_v3  ;;  %v1338_v3 = vld [vmem:[#allocation14 + $0x20] sm:$0xff] }
 0x33a   : > { %2481 = vmatmul.mubr.msk.bf16.gmra.mrb[56].mxu0 %vm1176_vm5, %v3714_v1  ;;  %v1340_v1 = vld [vmem:[#allocation14 + $0x30] sm:$0xff] }
 0x362   : > { %v1406_v54 = vpop.f32.mrb[4].mxu1 }
 0x363   : > { %v1485_v56 = vadd.f32 %v1406_v54, %v1334_v52  ;;  %v1408_v57 = vpop.f32.mrb[5].mxu1  ;;  %v1357_v54 = vld [vmem:[#allocation14 + $0xb8] sm:$0xff] }
 0x364   : > { %v1486_v59 = vadd.f32 %v1408_v57, %v1335_v53  ;;  %v1410_v60 = vpop.f32.mrb[6].mxu1 }
 0x365   : > { %1517 = vst [vmem:[#allocation14] sm:$0xff] %v1485_v56  ;;  %v1487_v61 = vadd.f32 %v1410_v60, %v1336_v55  ;;  %v1412_v63 = vpop.f32.mrb[7].mxu1  ;;  %v1358_v60 = vld [vmem:[#allocation14 + $0xc0] sm:$0xff] }
 0x366   : > { %1518 = vst [vmem:[#allocation14 + $0x8] sm:$0xff] %v1486_v59  ;;  %v1488_v0 = vadd.f32 %v1412_v63, %v1337_v58 }
 0x367   : > { %1519 = vst [vmem:[#allocation14 + $0x10] sm:$0xff] %v1487_v61  ;;  %v1359_v61 = vld [vmem:[#allocation14 + $0xc8] sm:$0xff] }
 0x368   : > { %1520 = vst [vmem:[#allocation14 + $0x18] sm:$0xff] %v1488_v0  ;;  %v1360_v0 = vld [vmem:[#allocation14 + $0xd0] sm:$0xff] }
 0x36a   : > { %v1416_v2 = vpop.f32.mrb[8].mxu1 }
 0x36b   : > { %v1489_v4 = vadd.f32 %v1416_v2, %v1338_v3  ;;  %v1418_v5 = vpop.f32.mrb[9].mxu1  ;;  %v1361_v2 = vld [vmem:[#allocation14 + $0xd8] sm:$0xff] }
 0x36c   : > { %v1490_v7 = vadd.f32 %v1418_v5, %v1339_v62  ;;  %v1420_v8 = vpop.f32.mrb[10].mxu1 }
 0x36d   : > { %1521 = vst [vmem:[#allocation14 + $0x20] sm:$0xff] %v1489_v4  ;;  %v1491_v9 = vadd.f32 %v1420_v8, %v1340_v1  ;;  %v1422_v10 = vpop.f32.mrb[11].mxu1 }
 0x36e   : > { %1522 = vst [vmem:[#allocation14 + $0x28] sm:$0xff] %v1490_v7  ;;  %v1492_v11 = vadd.f32 %v1422_v10, %v1341_v6 }
 0x36f   : > { %1523 = vst [vmem:[#allocation14 + $0x30] sm:$0xff] %v1491_v9 }
 0x370   : > { %1524 = vst [vmem:[#allocation14 + $0x38] sm:$0xff] %v1492_v11 }
 0x372   : > { %v1426_v14 = vpop.f32.mrb[12].mxu1 }
 0x373   : > { %v1493_v16 = vadd.f32 %v1426_v14, %v1342_v12  ;;  %v1428_v17 = vpop.f32.mrb[13].mxu1 }
 0x374   : > { %v1494_v19 = vadd.f32 %v1428_v17, %v1343_v13  ;;  %v1430_v20 = vpop.f32.mrb[14].mxu1 }
 0x375   : > { %1525 = vst [vmem:[#allocation14 + $0x40] sm:$0xff] %v1493_v16  ;;  %v1495_v21 = vadd.f32 %v1430_v20, %v1344_v15  ;;  %v1432_v22 = vpop.f32.mrb[15].mxu1 }
 0x376   : > { %1526 = vst [vmem:[#allocation14 + $0x48] sm:$0xff] %v1494_v19  ;;  %v1496_v23 = vadd.f32 %v1432_v22, %v1345_v18 }
 0x377   : > { %1527 = vst [vmem:[#allocation14 + $0x50] sm:$0xff] %v1495_v21 }
 0x378   : > { %1528 = vst [vmem:[#allocation14 + $0x58] sm:$0xff] %v1496_v23 }
 0x37a   : > { %v1436_v26 = vpop.f32.mrb[16].mxu1 }
 0x37b   : > { %v1497_v28 = vadd.f32 %v1436_v26, %v1346_v24  ;;  %v1438_v29 = vpop.f32.mrb[17].mxu1 }
 0x37c   : > { %v1498_v31 = vadd.f32 %v1438_v29, %v1347_v25  ;;  %v1440_v32 = vpop.f32.mrb[18].mxu1 }
 0x37d   : > { %1529 = vst [vmem:[#allocation14 + $0x60] sm:$0xff] %v1497_v28  ;;  %v1499_v33 = vadd.f32 %v1440_v32, %v1348_v27  ;;  %v1442_v34 = vpop.f32.mrb[19].mxu1 }
 0x37e   : > { %1530 = vst [vmem:[#allocation14 + $0x68] sm:$0xff] %v1498_v31  ;;  %v1500_v35 = vadd.f32 %v1442_v34, %v1349_v30 }
 0x37f   : > { %1531 = vst [vmem:[#allocation14 + $0x70] sm:$0xff] %v1499_v33 }
 0x380   : > { %1532 = vst [vmem:[#allocation14 + $0x78] sm:$0xff] %v1500_v35 }
 0x382   : > { %v1446_v38 = vpop.f32.mrb[20].mxu1 }
 0x383   : > { %v1501_v40 = vadd.f32 %v1446_v38, %v1350_v36  ;;  %v1448_v41 = vpop.f32.mrb[21].mxu1 }
 0x384   : > { %v1502_v43 = vadd.f32 %v1448_v41, %v1351_v37  ;;  %v1450_v44 = vpop.f32.mrb[22].mxu1 }
 0x385   : > { %1533 = vst [vmem:[#allocation14 + $0x80] sm:$0xff] %v1501_v40  ;;  %v1503_v45 = vadd.f32 %v1450_v44, %v1352_v39  ;;  %v1452_v46 = vpop.f32.mrb[23].mxu1 }
 0x386   : > { %1534 = vst [vmem:[#allocation14 + $0x88] sm:$0xff] %v1502_v43  ;;  %v1504_v47 = vadd.f32 %v1452_v46, %v1353_v42 }
 0x387   : > { %1535 = vst [vmem:[#allocation14 + $0x90] sm:$0xff] %v1503_v45 }
 0x388   : > { %1536 = vst [vmem:[#allocation14 + $0x98] sm:$0xff] %v1504_v47 }
 0x38a   : > { %v1456_v50 = vpop.f32.mrb[24].mxu1 }
 0x38b   : > { %v1505_v52 = vadd.f32 %v1456_v50, %v1354_v48  ;;  %v1458_v53 = vpop.f32.mrb[25].mxu1 }
 0x38c   : > { %v1506_v55 = vadd.f32 %v1458_v53, %v1355_v49  ;;  %v1460_v56 = vpop.f32.mrb[26].mxu1 }
 0x38d   : > { %1537 = vst [vmem:[#allocation14 + $0xa0] sm:$0xff] %v1505_v52  ;;  %v1507_v57 = vadd.f32 %v1460_v56, %v1356_v51  ;;  %v1462_v58 = vpop.f32.mrb[27].mxu1 }
 0x38e   : > { %1538 = vst [vmem:[#allocation14 + $0xa8] sm:$0xff] %v1506_v55  ;;  %v1508_v59 = vadd.f32 %v1462_v58, %v1357_v54 }
 0x38f   : > { %1539 = vst [vmem:[#allocation14 + $0xb0] sm:$0xff] %v1507_v57 }
 0x390   : > { %1540 = vst [vmem:[#allocation14 + $0xb8] sm:$0xff] %v1508_v59 }
 0x392   : > { %v1466_v63 = vpop.f32.mrb[28].mxu1 }
 0x393   : > { %v1509_v3 = vadd.f32 %v1466_v63, %v1358_v60  ;;  %v1468_v62 = vpop.f32.mrb[29].mxu1 }
 0x394   : > { %v1510_v1 = vadd.f32 %v1468_v62, %v1359_v61  ;;  %v1470_v4 = vpop.f32.mrb[30].mxu1 }
 0x395   : > { %2888 = shalt.err (!%p2885_p2)
}
 0x396   : > { %s2889_s23 = scalar_lea.hbm %s3751_s8, 256  ;;  %s2893_s6 = scalar_lea.hbm %s4006_s7, 1024 }
 0x397   : > { %p2890_p8 = scmp.ne.s32.totalorder %s3751_s8, %s2889_s23  ;;  %p2894_p13 = scmp.lt.u32.totalorder %s3751_s8, %s4006_s7 }
 0x398   : > { %p2895_p0 = scmp.lt.u32.totalorder %s2893_s6, %s2889_s23  ;;  %p2897_p9 = scmp.lt.u32.totalorder %s2889_s23, %s3751_s8 }
 0x399   : > { %p2891_p10 = pnand %p2890_p8, %p4057_p12 }
 0x39a   : > { %p2896_p5 = por %p2895_p0, %p2894_p13 }
 0x39b   : > { %p2892_p3 = pneg %p2891_p10 }
 0x39c   : > { %p2898_p11 = por %p2897_p9, %p2896_p5 }
 0x39e   : > { %p2899_p7 = pnand %p2898_p11, %p2892_p3 }
 0x3a0   : > { %2902 = shalt.err (!%p2899_p7)
}
 0x3a1   : > { %2575 = dma.vmem_to_hbm [thread:$0]  (%p4057_p12), %s3753_s9, 256, %s3751_s8, %s2020_s24   ;;  %1541 = vst [vmem:[#allocation14 + $0xc0] sm:$0xff] %v1509_v3  ;;  %v1511_v5 = vadd.f32 %v1470_v4, %v1360_v0  ;;  %v1472_v6 = vpop.f32.mrb[31].mxu1  ;;  %1542 = vst [vmem:[#allocation14 + $0xc8] sm:$0xff] %v1510_v1  ;;  %v1362_v8 = vld [vmem:[#allocation14 + $0xe0] sm:$0xff] }
 0x3a2   : > { %v1512_v7 = vadd.f32 %v1472_v6, %v1361_v2  ;;  %s3214_s10 = smov [#allocation17]   ;;  %p4058_p4 = scmp.eq.s32.totalorder %s3331_s19, 3 }
 0x3a3   : > { %s2113_s29 = sshll.u32 %s3214_s10, 4  ;;  %1543 = vst [vmem:[#allocation14 + $0xd0] sm:$0xff] %v1511_v5  ;;  %s2114_s29 = int_to_ptr.vmem [resolvable:$true] %s2113_s29 }
 0x3a4   : > { %1544 = vst [vmem:[#allocation14 + $0xd8] sm:$0xff] %v1512_v7  ;;  %s2903_s21 = scalar_lea.vmem %s2114_s29, 256  ;;  %p2910_p8 = scmp.lt.s32.totalorder %s2114_s29, %s2114_s29 }
 0x3a5   : > { %p2904_p1 = scmp.ne.s32.totalorder %s2114_s29, %s2903_s21  ;;  %p2911_p10 = scmp.lt.s32.totalorder %s2903_s21, %s2903_s21 }
 0x3a7   : > { %p2905_p6 = pnand %p2904_p1, %p4058_p4  ;;  %p2912_p3 = por %p2911_p10, %p2910_p8 }
 0x3a9   : > { %p2906_p2 = pneg %p2905_p6 }
 0x3ab   : > { %p2913_p13 = pnand %p2912_p3, %p2906_p2 }
 0x3ad   : > { %2916 = shalt.err (!%p2913_p13)
}
 0x3ae   : > { %s2917_s24 = scalar_lea.hbm %s4010_s11, 256  ;;  %p4059_p5 = pmov %p4058_p4 }
 0x3af   : > { %p2918_p0 = scmp.ne.s32.totalorder %s4010_s11, %s2917_s24  ;;  %p2923_p7 = scmp.lt.u32.totalorder %s2917_s24, %s4010_s11 }
 0x3b1   : > { %p2919_p9 = pnand %p2918_p0, %p4059_p5 }
 0x3b3   : > { %p2920_p11 = pneg %p2919_p9 }
 0x3b5   : > { %p2925_p1 = pnand %p2923_p7, %p2920_p11 }
 0x3b7   : > { %2928 = shalt.err (!%p2925_p1)
}
 0x3b8   : > { %2583 = dma.vmem_to_hbm [thread:$0]  (%p4058_p4), %s2114_s29, 256, %s4010_s11, [#allocation18]   ;;  %v1363_v9 = vld [vmem:[#allocation14 + $0xe8] sm:$0xff]  ;;  %v1476_v10 = vpop.f32.mrb[32].mxu1  ;;  %v1364_v11 = vld [vmem:[#allocation14 + $0xf0] sm:$0xff]  ;;  %v1365_v14 = vld [vmem:[#allocation14 + $0xf8] sm:$0xff] }
 0x3b9   : > { %s3215_s25 = smov [#allocation20]   ;;  %s2490_s10 = sshll.u32 %s3191_s16, 7  ;;  %v1513_v12 = vadd.f32 %v1476_v10, %v1362_v8  ;;  %v1478_v13 = vpop.f32.mrb[33].mxu1 }
 0x3ba   : > { %s2141_s26 = sshll.u32 %s3215_s25, 4  ;;  %p4060_p2 = pmov %p4058_p4  ;;  %s2142_s26 = int_to_ptr.vmem [resolvable:$true] %s2141_s26 }
 0x3bb   : > { %s2929_s21 = scalar_lea.vmem %s2142_s26, 256  ;;  %p2936_p3 = scmp.lt.s32.totalorder %s2142_s26, %s2142_s26 }
 0x3bc   : > { %p2930_p6 = scmp.ne.s32.totalorder %s2142_s26, %s2929_s21  ;;  %p2937_p13 = scmp.lt.s32.totalorder %s2929_s21, %s2929_s21 }
 0x3be   : > { %p2931_p8 = pnand %p2930_p6, %p4060_p2  ;;  %p2938_p0 = por %p2937_p13, %p2936_p3 }
 0x3c0   : > { %p2932_p10 = pneg %p2931_p8 }
 0x3c2   : > { %p2939_p5 = pnand %p2938_p0, %p2932_p10 }
 0x3c4   : > { %2942 = shalt.err (!%p2939_p5)
}
 0x3c5   : > { %s2943_s8 = scalar_lea.hbm %s4012_s13, 256  ;;  %p4061_p11 = pmov %p4060_p2 }
 0x3c6   : > { %p2944_p9 = scmp.ne.s32.totalorder %s4012_s13, %s2943_s8  ;;  %p2949_p4 = scmp.lt.u32.totalorder %s2943_s8, %s4012_s13 }
 0x3c8   : > { %p2945_p7 = pnand %p2944_p9, %p4061_p11 }
 0x3ca   : > { %p2946_p1 = pneg %p2945_p7 }
 0x3cc   : > { %p2951_p6 = pnand %p2949_p4, %p2946_p1 }
 0x3ce   : > { %2954 = shalt.err (!%p2951_p6)
}
 0x3cf   : > { %2587 = dma.vmem_to_hbm [thread:$0]  (%p4060_p2), %s2142_s26, 256, %s4012_s13, [#allocation21]   ;;  %v1514_v15 = vadd.f32 %v1478_v13, %v1363_v9  ;;  %v1480_v16 = vpop.f32.mrb[34].mxu1  ;;  %1545 = vst [vmem:[#allocation14 + $0xe0] sm:$0xff] %v1513_v12 }
 0x3d0   : > { %s4062_s25 = sld [smem:[#allocation40_spill]]  ;;  %s2035_s29 = sshll.u32 %s587_s12, 4  ;;  %v1515_v17 = vadd.f32 %v1480_v16, %v1364_v11  ;;  %v1482_v18 = vpop.f32.mrb[35].mxu1  ;;  %s3827_s29 = int_to_ptr.vmem [resolvable:$true] %s2035_s29 }
 0x3d1   : > { %1546 = vst [vmem:[#allocation14 + $0xe8] sm:$0xff] %v1514_v15  ;;  %v1516_v19 = vadd.f32 %v1482_v18, %v1365_v14  ;;  %s2015_s26 = scalar_lea.sflag [#allocation4], %s3504_s2  ;;  %s2955_s9 = scalar_lea.vmem %s3827_s29, 128 }
 0x3d2   : > { %p2956_p8 = scmp.ne.s32.totalorder %s3827_s29, %s2955_s9 }
 0x3d4   : > { %p2957_p10 = pnand %p2956_p8, %p4057_p12 }
 0x3d6   : > { %s3823_s21 = scalar_lea.hbm %s4062_s25, %s2490_s10  ;;  %p2958_p3 = pneg %p2957_p10 }
 0x3d7   : > { %s3216_s10 = smov [#allocation10]  }
 0x3d8   : > { %s2959_s8 = sshll.u32 %s3216_s10, 4  ;;  %s2960_s8 = int_to_ptr.vmem [resolvable:$false] %s2959_s8 }
 0x3d9   : > { %s2961_s20 = scalar_lea.vmem %s2960_s8, 256  ;;  %p2962_p13 = scmp.lt.s32.totalorder %s3827_s29, %s2960_s8 }
 0x3da   : > { %p2963_p0 = scmp.lt.s32.totalorder %s2961_s20, %s2955_s9 }
 0x3dc   : > { %p2964_p5 = por %p2963_p0, %p2962_p13 }
 0x3de   : > { %p2965_p9 = pnand %p2964_p5, %p2958_p3 }
 0x3e0   : > { %2968 = shalt.err (!%p2965_p9)
}
 0x3e1   : > { %s2969_s2 = scalar_lea.hbm %s3823_s21, 128  ;;  %s2973_s16 = scalar_lea.hbm %s4062_s25, 512 }
 0x3e2   : > { %p2970_p11 = scmp.ne.s32.totalorder %s3823_s21, %s2969_s2  ;;  %p2974_p4 = scmp.lt.u32.totalorder %s3823_s21, %s4062_s25 }
 0x3e3   : > { %p2975_p6 = scmp.lt.u32.totalorder %s2973_s16, %s2969_s2  ;;  %p2977_p8 = scmp.lt.u32.totalorder %s2969_s2, %s3823_s21 }
 0x3e4   : > { %p2971_p7 = pnand %p2970_p11, %p4057_p12 }
 0x3e5   : > { %p2976_p2 = por %p2975_p6, %p2974_p4 }
 0x3e6   : > { %p2972_p1 = pneg %p2971_p7 }
 0x3e7   : > { %p2978_p10 = por %p2977_p8, %p2976_p2 }
 0x3e9   : > { %p2979_p3 = pnand %p2978_p10, %p2972_p1 }
 0x3eb   : > { %2982 = shalt.err (!%p2979_p3)
}
 0x3ec   : > { %2574 = dma.vmem_to_hbm [thread:$0]  (%p4057_p12), %s3827_s29, 128, %s3823_s21, %s2015_s26   ;;  %1547 = vst [vmem:[#allocation14 + $0xf0] sm:$0xff] %v1515_v17  ;;  %1548 = vst [vmem:[#allocation14 + $0xf8] sm:$0xff] %v1516_v19 }
 0x3ed   : > { %s3217_s23 = smov [#allocation13]   ;;  %s2983_s28 = scalar_lea.vmem %s3781_s27, 4096 }
 0x3ee   : > { %s2064_s17 = sshll.u32 %s3217_s23, 4  ;;  %p2984_p13 = scmp.ne.s32.totalorder %s3781_s27, %s2983_s28  ;;  %s3851_s17 = int_to_ptr.vmem [resolvable:$true] %s2064_s17 }
 0x3ef   : > { %p4063_p0 = scmp.eq.s32.totalorder %s3331_s19, 3  ;;  %p2990_p11 = scmp.lt.s32.totalorder %s3781_s27, %s3781_s27 }
 0x3f0   : > { %p2991_p7 = scmp.lt.s32.totalorder %s2983_s28, %s2983_s28 }
 0x3f1   : > { %p2985_p5 = pnand %p2984_p13, %p4063_p0 }
 0x3f2   : > { %p2992_p1 = por %p2991_p7, %p2990_p11 }
 0x3f3   : > { %p2986_p9 = pneg %p2985_p5 }
 0x3f5   : > { %p2993_p4 = pnand %p2992_p1, %p2986_p9 }
 0x3f7   : > { %2996 = shalt.err (!%p2993_p4)
}
 0x3f8   : > { %s4064_s21 = sld [smem:[#allocation42_spill]]  ;;  %p4065_p6 = pmov %p4063_p0 }
 0x3fe   : > { %s2997_s29 = scalar_lea.hbm %s4064_s21, 4096 }
 0x3ff   : > { %p2998_p12 = scmp.ne.s32.totalorder %s4064_s21, %s2997_s29  ;;  %p3003_p10 = scmp.lt.u32.totalorder %s2997_s29, %s4064_s21 }
 0x401   : > { %p2999_p2 = pnand %p2998_p12, %p4065_p6 }
 0x403   : > { %p3000_p8 = pneg %p2999_p2 }
 0x405   : > { %p3005_p3 = pnand %p3003_p10, %p3000_p8 }
 0x407   : > { %3008 = shalt.err (!%p3005_p3)
}
 0x408   : > { %s3218_s20 = smov 256   ;;  %s3219_s2 = smov 16  }
 0x409   : > { %p4066_p13 = pmov %p4063_p0  ;;  %s3009_s16 = scalar_lea.vmem %s3851_s17, 2048 }
 0x40a   : > { %p3010_p0 = scmp.ne.s32.totalorder %s3851_s17, %s3009_s16  ;;  %p4067_p5 = pmov %p4065_p6 }
 0x40b   : > { %2579 = dma.vmem_to_hbm [thread:$0]  (%p4066_p13), %s3781_s27, 4096, %s4064_s21, [#allocation15], %s3218_s20, %s3218_s20, %s3219_s2  }
 0x40c   : > { %p3011_p9 = pnand %p3010_p0, %p4067_p5  ;;  %p3016_p7 = scmp.lt.s32.totalorder %s3851_s17, %s3851_s17 }
 0x40d   : > { %p3017_p1 = scmp.lt.s32.totalorder %s3009_s16, %s3009_s16 }
 0x40e   : > { %p3012_p11 = pneg %p3011_p9 }
 0x40f   : > { %p3018_p4 = por %p3017_p1, %p3016_p7 }
 0x411   : > { %p3019_p12 = pnand %p3018_p4, %p3012_p11 }
 0x413   : > { %3022 = shalt.err (!%p3019_p12)
}
 0x414   : > { %s4068_s23 = sld [smem:[#allocation41_spill]]  ;;  %p4069_p2 = pmov %p4067_p5 }
 0x41a   : > { %s3023_s28 = scalar_lea.hbm %s4068_s23, 2048 }
 0x41b   : > { %p3024_p6 = scmp.ne.s32.totalorder %s4068_s23, %s3023_s28  ;;  %p3029_p3 = scmp.lt.u32.totalorder %s3023_s28, %s4068_s23 }
 0x41d   : > { %p3025_p8 = pnand %p3024_p6, %p4069_p2 }
 0x41f   : > { %p3026_p10 = pneg %p3025_p8 }
 0x421   : > { %p3031_p13 = pnand %p3029_p3, %p3026_p10 }
 0x423   : > { %3034 = shalt.err (!%p3031_p13)
}
 0x424   : > { %s3220_s26 = smov 128   ;;  %s3221_s9 = smov 8  }
 0x425   : > { %p4070_p0 = pmov %p4069_p2  ;;  %s3222_s12 = smov [#allocation19]  }
 0x426   : > { %s2127_s24 = sshll.u32 %s3222_s12, 4  ;;  %s2128_s24 = int_to_ptr.vmem [resolvable:$true] %s2127_s24 }
 0x427   : > { %2577 = dma.vmem_to_hbm [thread:$0]  (%p4070_p0), %s3851_s17, 2048, %s4068_s23, [#allocation12], %s3220_s26, %s3220_s26, %s3221_s9  }
 0x428   : > { %s3035_s16 = scalar_lea.vmem %s2128_s24, 256  ;;  %p4071_p9 = pmov %p4070_p0 }
 0x429   : > { %p3036_p5 = scmp.ne.s32.totalorder %s2128_s24, %s3035_s16  ;;  %p3042_p1 = scmp.lt.s32.totalorder %s2128_s24, %s2128_s24 }
 0x42a   : > { %p3043_p4 = scmp.lt.s32.totalorder %s3035_s16, %s3035_s16 }
 0x42b   : > { %p3037_p11 = pnand %p3036_p5, %p4071_p9 }
 0x42c   : > { %p3044_p12 = por %p3043_p4, %p3042_p1 }
 0x42d   : > { %p3038_p7 = pneg %p3037_p11 }
 0x42f   : > { %p3045_p6 = pnand %p3044_p12, %p3038_p7 }
 0x431   : > { %3048 = shalt.err (!%p3045_p6)
}
 0x432   : > { %s4072_s28 = sld [smem:[#allocation44_spill]]  ;;  %p4073_p8 = pmov %p4070_p0 }
 0x438   : > { %s3049_s14 = scalar_lea.hbm %s4072_s28, 256 }
 0x439   : > { %p3050_p2 = scmp.ne.s32.totalorder %s4072_s28, %s3049_s14  ;;  %p3055_p13 = scmp.lt.u32.totalorder %s3049_s14, %s4072_s28 }
 0x43b   : > { %p3051_p10 = pnand %p3050_p2, %p4073_p8 }
 0x43d   : > { %p3052_p3 = pneg %p3051_p10 }
 0x43f   : > { %p3057_p0 = pnand %p3055_p13, %p3052_p3 }
 0x441   : > { %3060 = shalt.err (!%p3057_p0)
}
 0x442   : > { %p4074_p5 = pmov %p4073_p8  ;;  %s3223_s10 = smov [#allocation22]  }
 0x443   : > { %s2154_s8 = sshll.u32 %s3223_s10, 4  ;;  %s2155_s8 = int_to_ptr.vmem [resolvable:$true] %s2154_s8 }
 0x444   : > { %2585 = dma.vmem_to_hbm [thread:$0]  (%p4074_p5), %s2128_s24, 256, %s4072_s28, [#allocation18]  }
 0x445   : > { %s3061_s12 = scalar_lea.vmem %s2155_s8, 128  ;;  %p4075_p11 = pmov %p4074_p5 }
 0x446   : > { %p3062_p9 = scmp.ne.s32.totalorder %s2155_s8, %s3061_s12  ;;  %p3068_p4 = scmp.lt.s32.totalorder %s2155_s8, %s2155_s8 }
 0x447   : > { %p3069_p12 = scmp.lt.s32.totalorder %s3061_s12, %s3061_s12 }
 0x448   : > { %p3063_p7 = pnand %p3062_p9, %p4075_p11 }
 0x449   : > { %p3070_p6 = por %p3069_p12, %p3068_p4 }
 0x44a   : > { %p3064_p1 = pneg %p3063_p7 }
 0x44c   : > { %p3071_p2 = pnand %p3070_p6, %p3064_p1 }
 0x44e   : > { %3074 = shalt.err (!%p3071_p2)
}
 0x44f   : > { %s4076_s22 = sld [smem:[#allocation45_spill]]  ;;  %p4077_p10 = pmov %p4074_p5 }
 0x455   : > { %s3075_s14 = scalar_lea.hbm %s4076_s22, 128 }
 0x456   : > { %p3076_p8 = scmp.ne.s32.totalorder %s4076_s22, %s3075_s14  ;;  %p3081_p0 = scmp.lt.u32.totalorder %s3075_s14, %s4076_s22 }
 0x458   : > { %p3077_p3 = pnand %p3076_p8, %p4077_p10 }
 0x45a   : > { %p3078_p13 = pneg %p3077_p3 }
 0x45c   : > { %p3083_p5 = pnand %p3081_p0, %p3078_p13 }
 0x45e   : > { %3086 = shalt.err (!%p3083_p5)
}
 0x45f   : > { %p4078_p9 = pmov %p4077_p10  ;;  %v1549_v20 = vld [vmem:[#allocation16] sm:$0xff]  ;;  %v1550_v21 = vld [vmem:[#allocation16 + $0x8] sm:$0xff]  ;;  %v1727_v22 = vpop.f32.mrb[20].mxu0  ;;  %v1551_v23 = vld [vmem:[#allocation16 + $0x10] sm:$0xff]  ;;  %v1827_v36 = vpop.f32.mrb[36].mxu1  ;;  %s3224_s9 = smov [#allocation16]  }
 0x460   : > { %v1886_v24 = vadd.f32 %v1727_v22, %v1549_v20  ;;  %v1729_v25 = vpop.f32.mrb[21].mxu0  ;;  %v1552_v26 = vld [vmem:[#allocation16 + $0x18] sm:$0xff]  ;;  %v1589_v32 = vld [vmem:[#allocation16 + $0x140] sm:$0xff]  ;;  %v1590_v34 = vld [vmem:[#allocation16 + $0x148] sm:$0xff]  ;;  %v1829_v41 = vpop.f32.mrb[37].mxu1  ;;  %s2096_s10 = sshll.u32 %s3224_s9, 4  ;;  %s2097_s10 = int_to_ptr.vmem [resolvable:$true] %s2096_s10 }
 0x461   : > { %2589 = dma.vmem_to_hbm [thread:$0]  (%p4078_p9), %s2155_s8, 128, %s4076_s22, [#allocation21]   ;;  %v1887_v27 = vadd.f32 %v1729_v25, %v1550_v21  ;;  %v1731_v28 = vpop.f32.mrb[22].mxu0  ;;  %v1553_v33 = vld [vmem:[#allocation16 + $0x20] sm:$0xff]  ;;  %v1554_v35 = vld [vmem:[#allocation16 + $0x28] sm:$0xff]  ;;  %v1591_v37 = vld [vmem:[#allocation16 + $0x150] sm:$0xff]  ;;  %v1926_v40 = vadd.f32 %v1827_v36, %v1589_v32  ;;  %v1927_v46 = vadd.f32 %v1829_v41, %v1590_v34 }
 0x462   : > { %1950 = vst [vmem:[#allocation16] sm:$0xff] %v1886_v24  ;;  %v1888_v29 = vadd.f32 %v1731_v28, %v1551_v23  ;;  %v1733_v30 = vpop.f32.mrb[23].mxu0  ;;  %v1555_v39 = vld [vmem:[#allocation16 + $0x30] sm:$0xff]  ;;  %v1592_v42 = vld [vmem:[#allocation16 + $0x158] sm:$0xff]  ;;  %v1831_v47 = vpop.f32.mrb[38].mxu1  ;;  %v1593_v56 = vld [vmem:[#allocation16 + $0x160] sm:$0xff]  ;;  %p4079_p7 = pmov %p4078_p9  ;;  %p3094_p12 = scmp.lt.s32.totalorder %s2097_s10, %s2097_s10 }
 0x463   : > { %1951 = vst [vmem:[#allocation16 + $0x8] sm:$0xff] %v1887_v27  ;;  %v1889_v31 = vadd.f32 %v1733_v30, %v1552_v26  ;;  %v1737_v38 = vpop.f32.mrb[24].mxu0  ;;  %v1556_v45 = vld [vmem:[#allocation16 + $0x38] sm:$0xff]  ;;  %1990 = vst [vmem:[#allocation16 + $0x140] sm:$0xff] %v1926_v40  ;;  %v1928_v50 = vadd.f32 %v1831_v47, %v1591_v37  ;;  %v1833_v51 = vpop.f32.mrb[39].mxu1  ;;  %v1557_v57 = vld [vmem:[#allocation16 + $0x40] sm:$0xff] }
 0x464   : > { %1952 = vst [vmem:[#allocation16 + $0x10] sm:$0xff] %v1888_v29  ;;  %v1890_v43 = vadd.f32 %v1737_v38, %v1553_v33  ;;  %v1739_v44 = vpop.f32.mrb[25].mxu0  ;;  %1991 = vst [vmem:[#allocation16 + $0x148] sm:$0xff] %v1927_v46  ;;  %v1929_v54 = vadd.f32 %v1833_v51, %v1592_v42  ;;  %v1594_v58 = vld [vmem:[#allocation16 + $0x168] sm:$0xff]  ;;  %v1837_v60 = vpop.f32.mrb[40].mxu1  ;;  %v1595_v61 = vld [vmem:[#allocation16 + $0x170] sm:$0xff] }
 0x465   : > { %1953 = vst [vmem:[#allocation16 + $0x18] sm:$0xff] %v1889_v31  ;;  %v1891_v48 = vadd.f32 %v1739_v44, %v1554_v35  ;;  %v1741_v49 = vpop.f32.mrb[26].mxu0  ;;  %1992 = vst [vmem:[#allocation16 + $0x150] sm:$0xff] %v1928_v50  ;;  %v1558_v59 = vld [vmem:[#allocation16 + $0x48] sm:$0xff]  ;;  %v1559_v0 = vld [vmem:[#allocation16 + $0x50] sm:$0xff]  ;;  %v1930_v3 = vadd.f32 %v1837_v60, %v1593_v56  ;;  %v1839_v62 = vpop.f32.mrb[41].mxu1 }
 0x466   : > { %1954 = vst [vmem:[#allocation16 + $0x20] sm:$0xff] %v1890_v43  ;;  %v1892_v52 = vadd.f32 %v1741_v49, %v1555_v39  ;;  %v1743_v53 = vpop.f32.mrb[27].mxu0  ;;  %1993 = vst [vmem:[#allocation16 + $0x158] sm:$0xff] %v1929_v54  ;;  %v1596_v2 = vld [vmem:[#allocation16 + $0x178] sm:$0xff]  ;;  %v1931_v6 = vadd.f32 %v1839_v62, %v1594_v58  ;;  %v1841_v7 = vpop.f32.mrb[42].mxu1  ;;  %v1597_v16 = vld [vmem:[#allocation16 + $0x180] sm:$0xff] }
 0x467   : > { %1955 = vst [vmem:[#allocation16 + $0x28] sm:$0xff] %v1891_v48  ;;  %v1893_v55 = vadd.f32 %v1743_v53, %v1556_v45  ;;  %v1747_v63 = vpop.f32.mrb[28].mxu0  ;;  %v1560_v5 = vld [vmem:[#allocation16 + $0x58] sm:$0xff]  ;;  %1994 = vst [vmem:[#allocation16 + $0x160] sm:$0xff] %v1930_v3  ;;  %v1932_v10 = vadd.f32 %v1841_v7, %v1595_v61  ;;  %v1843_v11 = vpop.f32.mrb[43].mxu1  ;;  %v1561_v17 = vld [vmem:[#allocation16 + $0x60] sm:$0xff] }
 0x468   : > { %1956 = vst [vmem:[#allocation16 + $0x30] sm:$0xff] %v1892_v52  ;;  %v1894_v1 = vadd.f32 %v1747_v63, %v1557_v57  ;;  %v1749_v4 = vpop.f32.mrb[29].mxu0  ;;  %1995 = vst [vmem:[#allocation16 + $0x168] sm:$0xff] %v1931_v6  ;;  %v1933_v14 = vadd.f32 %v1843_v11, %v1596_v2  ;;  %v1598_v18 = vld [vmem:[#allocation16 + $0x188] sm:$0xff]  ;;  %v1847_v20 = vpop.f32.mrb[44].mxu1  ;;  %v1599_v21 = vld [vmem:[#allocation16 + $0x190] sm:$0xff] }
 0x469   : > { %1957 = vst [vmem:[#allocation16 + $0x38] sm:$0xff] %v1893_v55  ;;  %v1895_v8 = vadd.f32 %v1749_v4, %v1558_v59  ;;  %v1751_v9 = vpop.f32.mrb[30].mxu0  ;;  %1996 = vst [vmem:[#allocation16 + $0x170] sm:$0xff] %v1932_v10  ;;  %v1562_v19 = vld [vmem:[#allocation16 + $0x68] sm:$0xff]  ;;  %v1563_v23 = vld [vmem:[#allocation16 + $0x70] sm:$0xff]  ;;  %v1934_v24 = vadd.f32 %v1847_v20, %v1597_v16  ;;  %v1849_v25 = vpop.f32.mrb[45].mxu1 }
 0x46a   : > { %1958 = vst [vmem:[#allocation16 + $0x40] sm:$0xff] %v1894_v1  ;;  %v1896_v12 = vadd.f32 %v1751_v9, %v1559_v0  ;;  %v1753_v13 = vpop.f32.mrb[31].mxu0  ;;  %1997 = vst [vmem:[#allocation16 + $0x178] sm:$0xff] %v1933_v14  ;;  %v1600_v26 = vld [vmem:[#allocation16 + $0x198] sm:$0xff]  ;;  %v1935_v30 = vadd.f32 %v1849_v25, %v1598_v18  ;;  %v1851_v31 = vpop.f32.mrb[46].mxu1  ;;  %v1601_v40 = vld [vmem:[#allocation16 + $0x1a0] sm:$0xff] }
 0x46b   : > { %1959 = vst [vmem:[#allocation16 + $0x48] sm:$0xff] %v1895_v8  ;;  %v1897_v15 = vadd.f32 %v1753_v13, %v1560_v5  ;;  %v1757_v22 = vpop.f32.mrb[32].mxu0  ;;  %v1564_v29 = vld [vmem:[#allocation16 + $0x78] sm:$0xff]  ;;  %1998 = vst [vmem:[#allocation16 + $0x180] sm:$0xff] %v1934_v24  ;;  %v1936_v34 = vadd.f32 %v1851_v31, %v1599_v21  ;;  %v1853_v35 = vpop.f32.mrb[47].mxu1  ;;  %v1565_v41 = vld [vmem:[#allocation16 + $0x80] sm:$0xff] }
 0x46c   : > { %1960 = vst [vmem:[#allocation16 + $0x50] sm:$0xff] %v1896_v12  ;;  %v1898_v27 = vadd.f32 %v1757_v22, %v1561_v17  ;;  %v1759_v28 = vpop.f32.mrb[33].mxu0  ;;  %1999 = vst [vmem:[#allocation16 + $0x188] sm:$0xff] %v1935_v30  ;;  %v1937_v38 = vadd.f32 %v1853_v35, %v1600_v26  ;;  %v1602_v42 = vld [vmem:[#allocation16 + $0x1a8] sm:$0xff]  ;;  %v1857_v44 = vpop.f32.mrb[48].mxu1  ;;  %v1603_v45 = vld [vmem:[#allocation16 + $0x1b0] sm:$0xff] }
 0x46d   : > { %1961 = vst [vmem:[#allocation16 + $0x58] sm:$0xff] %v1897_v15  ;;  %v1899_v32 = vadd.f32 %v1759_v28, %v1562_v19  ;;  %v1761_v33 = vpop.f32.mrb[34].mxu0  ;;  %2000 = vst [vmem:[#allocation16 + $0x190] sm:$0xff] %v1936_v34  ;;  %v1566_v43 = vld [vmem:[#allocation16 + $0x88] sm:$0xff]  ;;  %v1567_v47 = vld [vmem:[#allocation16 + $0x90] sm:$0xff]  ;;  %v1938_v48 = vadd.f32 %v1857_v44, %v1601_v40  ;;  %v1859_v49 = vpop.f32.mrb[49].mxu1 }
 0x46e   : > { %1962 = vst [vmem:[#allocation16 + $0x60] sm:$0xff] %v1898_v27  ;;  %v1900_v36 = vadd.f32 %v1761_v33, %v1563_v23  ;;  %v1763_v37 = vpop.f32.mrb[35].mxu0  ;;  %2001 = vst [vmem:[#allocation16 + $0x198] sm:$0xff] %v1937_v38  ;;  %v1604_v50 = vld [vmem:[#allocation16 + $0x1b8] sm:$0xff]  ;;  %v1939_v54 = vadd.f32 %v1859_v49, %v1602_v42  ;;  %v1861_v55 = vpop.f32.mrb[50].mxu1  ;;  %v1605_v3 = vld [vmem:[#allocation16 + $0x1c0] sm:$0xff] }
 0x46f   : > { %1963 = vst [vmem:[#allocation16 + $0x68] sm:$0xff] %v1899_v32  ;;  %v1901_v39 = vadd.f32 %v1763_v37, %v1564_v29  ;;  %v1767_v46 = vpop.f32.mrb[36].mxu0  ;;  %v1568_v53 = vld [vmem:[#allocation16 + $0x98] sm:$0xff]  ;;  %2002 = vst [vmem:[#allocation16 + $0x1a0] sm:$0xff] %v1938_v48  ;;  %v1940_v58 = vadd.f32 %v1861_v55, %v1603_v45  ;;  %v1863_v59 = vpop.f32.mrb[51].mxu1  ;;  %v1569_v62 = vld [vmem:[#allocation16 + $0xa0] sm:$0xff] }
 0x470   : > { %1964 = vst [vmem:[#allocation16 + $0x70] sm:$0xff] %v1900_v36  ;;  %v1902_v51 = vadd.f32 %v1767_v46, %v1565_v41  ;;  %v1769_v52 = vpop.f32.mrb[37].mxu0  ;;  %2003 = vst [vmem:[#allocation16 + $0x1a8] sm:$0xff] %v1939_v54  ;;  %v1941_v63 = vadd.f32 %v1863_v59, %v1604_v50  ;;  %v1606_v2 = vld [vmem:[#allocation16 + $0x1c8] sm:$0xff]  ;;  %v1867_v4 = vpop.f32.mrb[52].mxu1  ;;  %v1607_v5 = vld [vmem:[#allocation16 + $0x1d0] sm:$0xff] }
 0x471   : > { %1965 = vst [vmem:[#allocation16 + $0x78] sm:$0xff] %v1901_v39  ;;  %v1903_v56 = vadd.f32 %v1769_v52, %v1566_v43  ;;  %v1771_v57 = vpop.f32.mrb[38].mxu0  ;;  %2004 = vst [vmem:[#allocation16 + $0x1b0] sm:$0xff] %v1940_v58  ;;  %v1570_v1 = vld [vmem:[#allocation16 + $0xa8] sm:$0xff]  ;;  %v1571_v7 = vld [vmem:[#allocation16 + $0xb0] sm:$0xff]  ;;  %v1942_v8 = vadd.f32 %v1867_v4, %v1605_v3  ;;  %v1869_v9 = vpop.f32.mrb[53].mxu1 }
 0x472   : > { %1966 = vst [vmem:[#allocation16 + $0x80] sm:$0xff] %v1902_v51  ;;  %v1904_v60 = vadd.f32 %v1771_v57, %v1567_v47  ;;  %v1773_v61 = vpop.f32.mrb[39].mxu0  ;;  %2005 = vst [vmem:[#allocation16 + $0x1b8] sm:$0xff] %v1941_v63  ;;  %v1608_v10 = vld [vmem:[#allocation16 + $0x1d8] sm:$0xff]  ;;  %v1943_v14 = vadd.f32 %v1869_v9, %v1606_v2  ;;  %v1871_v15 = vpop.f32.mrb[54].mxu1  ;;  %v1609_v24 = vld [vmem:[#allocation16 + $0x1e0] sm:$0xff] }
 0x473   : > { %1967 = vst [vmem:[#allocation16 + $0x88] sm:$0xff] %v1903_v56  ;;  %v1905_v0 = vadd.f32 %v1773_v61, %v1568_v53  ;;  %v1777_v6 = vpop.f32.mrb[40].mxu0  ;;  %v1572_v13 = vld [vmem:[#allocation16 + $0xb8] sm:$0xff]  ;;  %2006 = vst [vmem:[#allocation16 + $0x1c0] sm:$0xff] %v1942_v8  ;;  %v1944_v18 = vadd.f32 %v1871_v15, %v1607_v5  ;;  %v1873_v19 = vpop.f32.mrb[55].mxu1  ;;  %v1573_v25 = vld [vmem:[#allocation16 + $0xc0] sm:$0xff] }
 0x474   : > { %1968 = vst [vmem:[#allocation16 + $0x90] sm:$0xff] %v1904_v60  ;;  %v1906_v11 = vadd.f32 %v1777_v6, %v1569_v62  ;;  %v1779_v12 = vpop.f32.mrb[41].mxu0  ;;  %2007 = vst [vmem:[#allocation16 + $0x1c8] sm:$0xff] %v1943_v14  ;;  %v1945_v22 = vadd.f32 %v1873_v19, %v1608_v10  ;;  %v1610_v26 = vld [vmem:[#allocation16 + $0x1e8] sm:$0xff]  ;;  %v1877_v28 = vpop.f32.mrb[56].mxu1  ;;  %v1611_v29 = vld [vmem:[#allocation16 + $0x1f0] sm:$0xff] }
 0x475   : > { %1969 = vst [vmem:[#allocation16 + $0x98] sm:$0xff] %v1905_v0  ;;  %v1907_v16 = vadd.f32 %v1779_v12, %v1570_v1  ;;  %v1781_v17 = vpop.f32.mrb[42].mxu0  ;;  %2008 = vst [vmem:[#allocation16 + $0x1d0] sm:$0xff] %v1944_v18  ;;  %v1574_v27 = vld [vmem:[#allocation16 + $0xc8] sm:$0xff]  ;;  %v1575_v31 = vld [vmem:[#allocation16 + $0xd0] sm:$0xff]  ;;  %v1946_v32 = vadd.f32 %v1877_v28, %v1609_v24  ;;  %v1879_v33 = vpop.f32.mrb[57].mxu1 }
 0x476   : > { %1970 = vst [vmem:[#allocation16 + $0xa0] sm:$0xff] %v1906_v11  ;;  %v1908_v20 = vadd.f32 %v1781_v17, %v1571_v7  ;;  %v1783_v21 = vpop.f32.mrb[43].mxu0  ;;  %2009 = vst [vmem:[#allocation16 + $0x1d8] sm:$0xff] %v1945_v22  ;;  %v1612_v34 = vld [vmem:[#allocation16 + $0x1f8] sm:$0xff]  ;;  %v1947_v38 = vadd.f32 %v1879_v33, %v1610_v26  ;;  %v1881_v39 = vpop.f32.mrb[58].mxu1  ;;  %v1577_v48 = vld [vmem:[#allocation16 + $0xe0] sm:$0xff] }
 0x477   : > { %1971 = vst [vmem:[#allocation16 + $0xa8] sm:$0xff] %v1907_v16  ;;  %v1909_v23 = vadd.f32 %v1783_v21, %v1572_v13  ;;  %v1787_v30 = vpop.f32.mrb[44].mxu0  ;;  %v1576_v37 = vld [vmem:[#allocation16 + $0xd8] sm:$0xff]  ;;  %2010 = vst [vmem:[#allocation16 + $0x1e0] sm:$0xff] %v1946_v32  ;;  %v1948_v42 = vadd.f32 %v1881_v39, %v1611_v29  ;;  %v1883_v43 = vpop.f32.mrb[59].mxu1  ;;  %v1578_v49 = vld [vmem:[#allocation16 + $0xe8] sm:$0xff] }
 0x478   : > { %1972 = vst [vmem:[#allocation16 + $0xb0] sm:$0xff] %v1908_v20  ;;  %v1910_v35 = vadd.f32 %v1787_v30, %v1573_v25  ;;  %v1789_v36 = vpop.f32.mrb[45].mxu0  ;;  %2011 = vst [vmem:[#allocation16 + $0x1e8] sm:$0xff] %v1947_v38  ;;  %v1949_v46 = vadd.f32 %v1883_v43, %v1612_v34  ;;  %v1579_v51 = vld [vmem:[#allocation16 + $0xf0] sm:$0xff]  ;;  %v1580_v54 = vld [vmem:[#allocation16 + $0xf8] sm:$0xff]  ;;  %s3087_s8 = scalar_lea.vmem %s2097_s10, 8192 }
 0x479   : > { %1973 = vst [vmem:[#allocation16 + $0xb8] sm:$0xff] %v1909_v23  ;;  %v1911_v40 = vadd.f32 %v1789_v36, %v1574_v27  ;;  %v1791_v41 = vpop.f32.mrb[46].mxu0  ;;  %2012 = vst [vmem:[#allocation16 + $0x1f0] sm:$0xff] %v1948_v42  ;;  %v1581_v60 = vld [vmem:[#allocation16 + $0x100] sm:$0xff]  ;;  %v1582_v61 = vld [vmem:[#allocation16 + $0x108] sm:$0xff]  ;;  %p3088_p11 = scmp.ne.s32.totalorder %s2097_s10, %s3087_s8  ;;  %p3095_p6 = scmp.lt.s32.totalorder %s3087_s8, %s3087_s8 }
 0x47a   : > { %1974 = vst [vmem:[#allocation16 + $0xc0] sm:$0xff] %v1910_v35  ;;  %v1912_v44 = vadd.f32 %v1791_v41, %v1575_v31  ;;  %v1793_v45 = vpop.f32.mrb[47].mxu0  ;;  %2013 = vst [vmem:[#allocation16 + $0x1f8] sm:$0xff] %v1949_v46  ;;  %v1583_v0 = vld [vmem:[#allocation16 + $0x110] sm:$0xff]  ;;  %v1584_v2 = vld [vmem:[#allocation16 + $0x118] sm:$0xff] }
 0x47b   : > { %1975 = vst [vmem:[#allocation16 + $0xc8] sm:$0xff] %v1911_v40  ;;  %v1913_v47 = vadd.f32 %v1793_v45, %v1576_v37  ;;  %v1797_v50 = vpop.f32.mrb[48].mxu0  ;;  %v1585_v8 = vld [vmem:[#allocation16 + $0x120] sm:$0xff]  ;;  %v1586_v9 = vld [vmem:[#allocation16 + $0x128] sm:$0xff]  ;;  %v1587_v11 = vld [vmem:[#allocation16 + $0x130] sm:$0xff]  ;;  %p3089_p1 = pnand %p3088_p11, %p4079_p7  ;;  %p3096_p2 = por %p3095_p6, %p3094_p12 }
 0x47c   : > { %1976 = vst [vmem:[#allocation16 + $0xd0] sm:$0xff] %v1912_v44  ;;  %v1914_v52 = vadd.f32 %v1797_v50, %v1577_v48  ;;  %v1799_v53 = vpop.f32.mrb[49].mxu0  ;;  %v1588_v14 = vld [vmem:[#allocation16 + $0x138] sm:$0xff] }
 0x47d   : > { %1977 = vst [vmem:[#allocation16 + $0xd8] sm:$0xff] %v1913_v47  ;;  %v1915_v55 = vadd.f32 %v1799_v53, %v1578_v49  ;;  %v1801_v56 = vpop.f32.mrb[50].mxu0  ;;  %p3090_p4 = pneg %p3089_p1 }
 0x47e   : > { %1978 = vst [vmem:[#allocation16 + $0xe0] sm:$0xff] %v1914_v52  ;;  %v1916_v57 = vadd.f32 %v1801_v56, %v1579_v51  ;;  %v1803_v58 = vpop.f32.mrb[51].mxu0 }
 0x47f   : > { %1979 = vst [vmem:[#allocation16 + $0xe8] sm:$0xff] %v1915_v55  ;;  %v1917_v59 = vadd.f32 %v1803_v58, %v1580_v54  ;;  %v1807_v63 = vpop.f32.mrb[52].mxu0  ;;  %p3097_p8 = pnand %p3096_p2, %p3090_p4 }
 0x480   : > { %1980 = vst [vmem:[#allocation16 + $0xf0] sm:$0xff] %v1916_v57  ;;  %v1918_v3 = vadd.f32 %v1807_v63, %v1581_v60  ;;  %v1809_v62 = vpop.f32.mrb[53].mxu0 }
 0x481   : > { %1981 = vst [vmem:[#allocation16 + $0xf8] sm:$0xff] %v1917_v59  ;;  %v1919_v1 = vadd.f32 %v1809_v62, %v1582_v61  ;;  %v1811_v4 = vpop.f32.mrb[54].mxu0 }
 0x482   : > { %1982 = vst [vmem:[#allocation16 + $0x100] sm:$0xff] %v1918_v3  ;;  %v1920_v5 = vadd.f32 %v1811_v4, %v1583_v0  ;;  %v1813_v6 = vpop.f32.mrb[55].mxu0 }
 0x483   : > { %1983 = vst [vmem:[#allocation16 + $0x108] sm:$0xff] %v1919_v1  ;;  %v1921_v7 = vadd.f32 %v1813_v6, %v1584_v2  ;;  %v1817_v10 = vpop.f32.mrb[56].mxu0 }
 0x484   : > { %1984 = vst [vmem:[#allocation16 + $0x110] sm:$0xff] %v1920_v5  ;;  %v1922_v12 = vadd.f32 %v1817_v10, %v1585_v8  ;;  %v1819_v13 = vpop.f32.mrb[57].mxu0 }
 0x485   : > { %1985 = vst [vmem:[#allocation16 + $0x118] sm:$0xff] %v1921_v7  ;;  %v1923_v15 = vadd.f32 %v1819_v13, %v1586_v9  ;;  %v1821_v16 = vpop.f32.mrb[58].mxu0 }
 0x486   : > { %1986 = vst [vmem:[#allocation16 + $0x120] sm:$0xff] %v1922_v12  ;;  %v1924_v17 = vadd.f32 %v1821_v16, %v1587_v11  ;;  %v1823_v18 = vpop.f32.mrb[59].mxu0 }
 0x487   : > { %1987 = vst [vmem:[#allocation16 + $0x128] sm:$0xff] %v1923_v15  ;;  %v1925_v19 = vadd.f32 %v1823_v18, %v1588_v14 }
 0x488   : > { %1988 = vst [vmem:[#allocation16 + $0x130] sm:$0xff] %v1924_v17 }
 0x489   : > { %1989 = vst [vmem:[#allocation16 + $0x138] sm:$0xff] %v1925_v19 }
 0x48a   : > { %3100 = shalt.err (!%p3097_p8)
}
 0x48b   : > { %s4080_s4 = sld [smem:[#allocation43_spill]]  ;;  %p4081_p3 = pmov %p4079_p7 }
 0x491   : > { %s3101_s14 = scalar_lea.hbm %s4080_s4, 8192 }
 0x492   : > { %p3102_p10 = scmp.ne.s32.totalorder %s4080_s4, %s3101_s14  ;;  %p3107_p5 = scmp.lt.u32.totalorder %s3101_s14, %s4080_s4 }
 0x494   : > { %p3103_p13 = pnand %p3102_p10, %p4081_p3 }
 0x496   : > { %p3104_p0 = pneg %p3103_p13 }
 0x498   : > { %p3109_p9 = pnand %p3107_p5, %p3104_p0 }
 0x49a   : > { %3112 = shalt.err (!%p3109_p9)
}
 0x49b   : > { %p4082_p11 = pmov %p4081_p3  ;;  %p4083_p7 = pmov %p4081_p3 }
 0x49d   : > { %2581 = dma.vmem_to_hbm [thread:$0]  (%p4082_p11), %s2097_s10, 8192, %s4080_s4, [#allocation15], %s3218_s20, %s3218_s20, %s3219_s2  }
 0x49e   : > { %3154 = dma.done.wait (%p4083_p7), [#allocation12], 2048   ;;  %p4084_p1 = pmov %p4081_p3 }
 0x4a0   : > { %3156 = vsyncadd (%p4084_p1), [#allocation12], 4294965248  ;;  %p4085_p4 = pmov %p4084_p1 }
 0x4a1   : > { %p4086_p12 = pmov %p4084_p1 }
 0x4a2   : > { %3158 = dma.done.wait (%p4085_p4), [#allocation15], 12288  }
 0x4a3   : > { %3160 = vsyncadd (%p4086_p12), [#allocation15], 4294955008  ;;  %p4087_p6 = pmov %p4084_p1 }
 0x4a4   : > { %p4088_p2 = pmov %p4084_p1 }
 0x4a5   : > { %3162 = dma.done.wait (%p4087_p6), [#allocation18], 512  }
 0x4a6   : > { %3164 = vsyncadd (%p4088_p2), [#allocation18], 4294966784  ;;  %p4089_p8 = pmov %p4084_p1 }
 0x4a7   : > { %p4090_p10 = pmov %p4084_p1 }
 0x4a8   : > { %3166 = dma.done.wait (%p4089_p8), [#allocation21], 384  }
 0x4a9   : > { %3168 = vsyncadd (%p4090_p10), [#allocation21], 4294966912 }
 0x4aa PF: > { %s4091_s20 = sld [smem:[#allocation33_spill]]  ;;  %s4092_s2 = sld [smem:[#allocation35_spill]] }
 0x4ab   : > { %p2646_p3 = scmp.ge.s32.totalorder %s3199_s18, 2 }
 0x4b0   : > { %s2194_s9 = sand.u32 1, %s4091_s20   ;;  %p4093_p13 = scmp.ne.s32.totalorder %s4092_s2, 0 }
 0x4b1   : > { %s2195_s10 = scalar_lea.sflag [#allocation4], %s2194_s9 }
 0x4b2   : > { %p2621_p0 = pnand %p2646_p3, %p4093_p13 }
 0x4b4   : > { %3170 = dma.done.wait (!%p2621_p0), %s2195_s10, 128  }
 0x4b5   : > { %3172 = vsyncadd (!%p2621_p0), %s2195_s10, 4294967168  ;;  %s4094_s8 = sadd.s32 4294967294, %s3199_s18  }
 0x4b6   : > { %s2203_s12 = sand.u32 1, %s4094_s8  }
 0x4b7   : > { %s2204_s16 = scalar_lea.sflag [#allocation12], %s2203_s12 }
 0x4b8   : > { %3174 = dma.done.wait (!%p2621_p0), %s2204_s16, 256  }
 0x4b9   : > { %3176 = vsyncadd (!%p2621_p0), %s2204_s16, 4294967040  ;;  %s41_s18 = sadd.s32 1, %s3199_s18   ;;  %s4095_s19 = sld [smem:[#allocation37_spill]] }
 0x4ba   : > { %p38_p5 = scmp.ge.s32.totalorder %s41_s18, 6   ;;  %s4096_s16 = sld [smem:[#allocation34_spill]] }
 0x4bb   : > { %s4097_s17 = sld [smem:[#allocation36_spill]]  ;;  %s4098_s29 = smov %s3183_s30 }
 0x4bc   : > { %s4099_s30 = smov %s3187_s15  ;;  %40 = sbr.rel (!%p38_p5) target bundleno = 23 (0x17), region = 194 }
 0x4bf   : > { %s4100_s15 = smov %s4095_s19 }
 0x4c3   :  { %2209 = vsyncpa [#allocation3], 1 }
 0x4c4   :  { %2211 = vsyncpa [#allocation3 + $0x1], 1 }
 0x4c5   :  { %2212 = vsyncpa [#allocation6], 1 }
 0x4c6   :  { %2214 = vsyncpa [#allocation6 + $0x1], 1 }
 0x4c7   :  { %2215 = vsyncpa [#allocation9], 1 }
 0x4c8   :  { %2216 = vsyncpa [#allocation4], 1 }
 0x4c9   :  { %2218 = vsyncpa [#allocation4 + $0x1], 1 }
 0x4ca   :  { %2219 = vsyncpa [#allocation12], 1 }
 0x4cb   :  { %2221 = vsyncpa [#allocation12 + $0x1], 1 }
 0x4cc   :  { %2222 = vsyncpa [#allocation15], 1 }
 0x4cd   :  { %2223 = vsyncpa [#allocation18], 1 }
 0x4ce   :  { %2224 = vsyncpa [#allocation21], 1 }

// kernel: tpu_custom_call.1
= control target key start
LH: loop header
LB: loop body
LE: loop exit
PB: predicated region body
PF: predicated region fallthrough
CT: control target
= control target key end

     0   :  { %s3999_s0 = inlined_call_operand.hbm [shape: f32[32,128], index: 0, kind: input, shape index: {}]   ;;  %s4000_s1 = inlined_call_operand.hbm [shape: f32[32,128], index: 1, kind: input, shape index: {}]   ;;  %s4001_s2 = inlined_call_operand.hbm [shape: bf16[128,256], index: 2, kind: input, shape index: {}]   ;;  %s4002_s3 = inlined_call_operand.vmem [shape: f32[1,256], index: 3, kind: input, shape index: {}]   ;;  %s4003_s4 = inlined_call_operand.hbm [shape: bf16[256,128], index: 4, kind: input, shape index: {}]   ;;  %s4004_s5 = inlined_call_operand.vmem [shape: f32[1,128], index: 5, kind: input, shape index: {}]   ;;  %s4005_s6 = inlined_call_operand.hbm [shape: f32[32,128], index: 6, kind: output, shape index: {0}]   ;;  %s4006_s7 = inlined_call_operand.hbm [shape: f32[32,256], index: 7, kind: output, shape index: {1}]   ;;  %s4007_s8 = inlined_call_operand.hbm [shape: f32[1,128,128], index: 8, kind: output, shape index: {2}]   ;;  %s4008_s9 = inlined_call_operand.hbm [shape: f32[1,128,256], index: 9, kind: output, shape index: {3}]   ;;  %s4009_s10 = inlined_call_operand.hbm [shape: f32[1,256,256], index: 10, kind: output, shape index: {4}]   ;;  %s4010_s11 = inlined_call_operand.hbm [shape: f32[1,8,256], index: 11, kind: output, shape index: {5}]   ;;  %s4011_s12 = inlined_call_operand.hbm [shape: f32[1,8,256], index: 12, kind: output, shape index: {6}]   ;;  %s4012_s13 = inlined_call_operand.hbm [shape: f32[1,8,256], index: 13, kind: output, shape index: {7}]   ;;  %s4013_s14 = inlined_call_operand.hbm [shape: f32[1,8,128], index: 14, kind: output, shape index: {8}]  }
   0x1   :  { %4029 = sst [smem:[#allocation38_spill]] %s4001_s2 }
   0x2   :  { %4030 = sst [smem:[#allocation39_spill]] %s4003_s4 }
   0x3   :  { %4031 = sst [smem:[#allocation40_spill]] %s4005_s6 }
   0x4   :  { %4032 = sst [smem:[#allocation41_spill]] %s4007_s8 }
   0x5   :  { %4033 = sst [smem:[#allocation42_spill]] %s4008_s9 }
   0x6   :  { %4034 = sst [smem:[#allocation43_spill]] %s4009_s10 }
   0x7   :  { %4035 = sst [smem:[#allocation44_spill]] %s4011_s12 }
   0x8   :  { %4036 = sst [smem:[#allocation45_spill]] %s4013_s14 }
   0x9   :  { %20 = vsyncpa [#allocation3], 0 }
   0xa   :  { %22 = vsyncpa [#allocation3 + $0x1], 0 }
   0xb   :  { %23 = vsyncpa [#allocation6], 0 }
   0xc   :  { %25 = vsyncpa [#allocation6 + $0x1], 0 }
   0xd   :  { %26 = vsyncpa [#allocation9], 0 }
   0xe   :  { %27 = vsyncpa [#allocation4], 0 }
   0xf   :  { %29 = vsyncpa [#allocation4 + $0x1], 0 }
  0x10   :  { %30 = vsyncpa [#allocation12], 0 }
  0x11   :  { %32 = vsyncpa [#allocation12 + $0x1], 0 }
  0x12   :  { %33 = vsyncpa [#allocation15], 0 }
  0x13   :  { %34 = vsyncpa [#allocation18], 0 }
  0x14   :  { %35 = vsyncpa [#allocation21], 0  ;;  %s3300_s29 = smov 0   ;;  %s3302_s30 = smov 0  }
  0x15   :  { %s3304_s15 = smov 0   ;;  %s3306_s16 = smov 0  }
  0x16   :  { %s3308_s17 = smov 0   ;;  %s3310_s18 = smov 0  }
  0x17 LB: > { %4037 = sst [smem:[#allocation33_spill]] %s3179_s29  ;;  %s3331_s19 = sadd.s32 4294967295, %s3199_s18   ;;  %s3199_s18 = sphi %s3310_s18, %s41_s18   ;;  %s3195_s17 = sphi %s3308_s17, %s4097_s17   ;;  %s3191_s16 = sphi %s3306_s16, %s4096_s16   ;;  %s3187_s15 = sphi %s3304_s15, %s4100_s15   ;;  %s3183_s30 = sphi %s3302_s30, %s4099_s30   ;;  %s3179_s29 = sphi %s3300_s29, %s4098_s29  }
  0x18   : > { %4038 = sst [smem:[#allocation34_spill]] %s3195_s17  ;;  %s4014_s20 = sadd.s32 4294967294, %s3199_s18  }
  0x19   : > { %p77_p0 = scmp.ne.s32.totalorder %s3183_s30, %s3179_s29  ;;  %p4020_p1 = scmp.eq.s32.totalorder %s3331_s19, 0 }
  0x1a   : > { %p225_p3 = scmp.eq.s32.totalorder %s4014_s20, 3  ;;  %p2403_p5 = scmp.ge.s32.totalorder %s3199_s18, 1 }
  0x1b   : > { %p3342_p4 = por %p4020_p1, %p77_p0  ;;  %p444_p7 = scmp.lt.s32.totalorder %s3199_s18, 5 }
  0x1c   : > { %p3347_p6 = por %p225_p3, %p77_p0  ;;  %s3201_s24 = smov [#allocation7]  }
  0x1d   : > { %s4039_s21 = scalar_select %p3342_p4, 1, 0 }
  0x1e   : > { %s4040_s22 = scalar_select %p3347_p6, 1, 0 }
  0x1f   : > { %p3352_p8 = pnand %p2403_p5, %p444_p7  ;;  %s456_s25 = sshll.u32 %s3201_s24, 4  ;;  %s457_s25 = int_to_ptr.vmem [resolvable:$true] %s456_s25 }
  0x20   : > { %4041 = sst [smem:[#allocation35_spill]] %s4040_s22  ;;  %s3202_s27 = smov [#allocation8]  }
  0x21   : > { %s4042_s23 = scalar_select %p3352_p8, 1, 0 }
  0x22   : > { %p2606_p9 = pneg %p3352_p8  ;;  %s472_s28 = sshll.u32 %s3202_s27, 4  ;;  %s3364_s28 = int_to_ptr.vmem [resolvable:$true] %s472_s28 }
  0x23   : > { %s4044_s2 = sld [smem:[#allocation38_spill]] }
  0x24   : > { %p3360_p10 = pnand %p2606_p9, %p4020_p1 }
  0x26   : > { %p2761_p12 = pneg %p3360_p10 }
  0x29   : > { %s2759_s29 = scalar_lea.hbm %s4044_s2, 2048 }
  0x2a   : > { %p2760_p11 = scmp.ne.s32.totalorder %s4044_s2, %s2759_s29  ;;  %p2766_p3 = scmp.lt.u32.totalorder %s2759_s29, %s4044_s2 }
  0x2c   : > { %p2762_p13 = pnand %p2761_p12, %p2760_p11 }
  0x2e   : > { %p2763_p0 = pneg %p2762_p13 }
  0x30   : > { %p2768_p5 = pnand %p2766_p3, %p2763_p0 }
  0x32   : > { %2771 = shalt.err (!%p2768_p5)
}
  0x33   : > { %s2772_s27 = scalar_lea.vmem %s457_s25, 2048  ;;  %p2780_p2 = scmp.lt.s32.totalorder %s457_s25, %s457_s25 }
  0x34   : > { %p2773_p7 = scmp.ne.s32.totalorder %s457_s25, %s2772_s27  ;;  %p2781_p6 = scmp.lt.s32.totalorder %s2772_s27, %s2772_s27 }
  0x36   : > { %p2775_p9 = pnand %p2773_p7, %p2761_p12  ;;  %p2782_p4 = por %p2781_p6, %p2780_p2 }
  0x38   : > { %p2776_p1 = pneg %p2775_p9 }
  0x3a   : > { %p2783_p8 = pnand %p2782_p4, %p2776_p1 }
  0x3c   : > { %2786 = shalt.err (!%p2783_p8)
}
  0x3d   : > { %s3203_s10 = smov 128   ;;  %s3204_s20 = smov 8  }
  0x3e   : > { %2609 = dma.hbm_to_vmem [thread:$0]  (!%p3360_p10), %s4044_s2, 2048, %s457_s25, [#allocation6], %s3203_s10, %s3203_s10, %s3204_s20  }
  0x3f   : > { %s4045_s4 = sld [smem:[#allocation39_spill]] }
  0x45   : > { %s2787_s24 = scalar_lea.hbm %s4045_s4, 2048 }
  0x46   : > { %p2788_p11 = scmp.ne.s32.totalorder %s4045_s4, %s2787_s24  ;;  %p2794_p4 = scmp.lt.u32.totalorder %s2787_s24, %s4045_s4 }
  0x48   : > { %p2790_p1 = pnand %p2788_p11, %p2761_p12 }
  0x4a   : > { %p2791_p2 = pneg %p2790_p1 }
  0x4c   : > { %p2796_p6 = pnand %p2794_p4, %p2791_p2 }
  0x4e   : > { %2799 = shalt.err (!%p2796_p6)
}
  0x4f   : > { %s2800_s25 = scalar_lea.vmem %s3364_s28, 2048  ;;  %p2808_p3 = scmp.lt.s32.totalorder %s3364_s28, %s3364_s28 }
  0x50   : > { %p2801_p8 = scmp.ne.s32.totalorder %s3364_s28, %s2800_s25  ;;  %p2809_p5 = scmp.lt.s32.totalorder %s2800_s25, %s2800_s25 }
  0x52   : > { %p2803_p13 = pnand %p2801_p8, %p2761_p12  ;;  %p2810_p7 = por %p2809_p5, %p2808_p3 }
  0x54   : > { %p2804_p0 = pneg %p2803_p13 }
  0x56   : > { %p2811_p9 = pnand %p2810_p7, %p2804_p0 }
  0x58   : > { %2814 = shalt.err (!%p2811_p9)
}
  0x59   : > { %s3205_s6 = smov 64   ;;  %s3206_s8 = smov 4  }
  0x5a   : > { %2612 = dma.hbm_to_vmem [thread:$0]  (!%p3360_p10), %s4045_s4, 2048, %s3364_s28, [#allocation9], %s3205_s6, %s3205_s6, %s3206_s8  }
  0x5b   : > { %s50_s20 = sadd.s32 1, %s3195_s17  ;;  %s64_s12 = sadd.s32 1, %s3187_s15 }
  0x5c   : > { %p51_p12 = scmp.ge.s32.totalorder %s50_s20, 4  ;;  %p71_p11 = scmp.ne.s32.totalorder %s3187_s15, %s3183_s30 }
  0x5d   : > { %p72_p1 = scmp.eq.s32.totalorder %s3199_s18, 0  ;;  %p2629_p2 = scmp.lt.s32.totalorder %s3199_s18, 4 }
  0x5e   : > { %s4102_s20 = smov (%p51_p12, %s50_s20), 0  ;;  %p4047_p6 = scmp.eq.s32.totalorder %s3331_s19, 3 }
  0x5f   : > { %4046 = sst [smem:[#allocation36_spill]] %s4102_s20  ;;  %p73_p4 = por %p72_p1, %p71_p11 }
  0x60   : > { %p3423_p8 = por %p4047_p6, %p71_p11  ;;  %s61_s26 = ssub.s32 %s3195_s17, %s4102_s20 }
  0x61   : > { %s489_s29 = sand.u32 1, %s3187_s15   ;;  %p62_p13 = scmp.eq.s32.totalorder %s61_s26, 0 }
  0x62   : > { %s4048_s14 = scalar_select %p3423_p8, 1, 0 }
  0x63   : > { %s3430_s28 = sshll.u32 %s489_s29, 3  ;;  %s2408_s22 = sshll.u32 %s3195_s17, 7 }
  0x64   : > { %s3434_s24 = scalar_select %p62_p13, %s3187_s15, %s64_s12  }
  0x65   : > { %s3439_s6 = scalar_lea.hbm %s3999_s0, %s2408_s22  ;;  %s493_s8 = scalar_lea.vmem [#allocation2], %s3430_s28 }
  0x66   : > { %4049 = sst [smem:[#allocation37_spill]] %s3434_s24  ;;  %s502_s9 = sshll.u32 %s493_s8, 4  ;;  %s3448_s9 = int_to_ptr.vmem [resolvable:$true] %s502_s9 }
  0x67   : > { %p3444_p10 = pnand %p2629_p2, %p73_p4  ;;  %s3453_s27 = scalar_lea.hbm %s4000_s1, %s2408_s22 }
  0x68   : > { %s490_s25 = scalar_lea.sflag [#allocation3], %s489_s29  ;;  %s2815_s2 = scalar_lea.hbm %s3439_s6, 128 }
  0x69   : > { %p2816_p0 = scmp.ne.s32.totalorder %s3439_s6, %s2815_s2  ;;  %p2817_p3 = pneg %p3444_p10 }
  0x6a   : > { %s2820_s20 = scalar_lea.hbm %s3999_s0, 512  ;;  %p2821_p9 = scmp.lt.u32.totalorder %s3439_s6, %s3999_s0 }
  0x6b   : > { %p2818_p5 = pnand %p2817_p3, %p2816_p0  ;;  %p2822_p12 = scmp.lt.u32.totalorder %s2820_s20, %s2815_s2 }
  0x6c   : > { %p2824_p1 = scmp.lt.u32.totalorder %s2815_s2, %s3439_s6 }
  0x6d   : > { %p2819_p7 = pneg %p2818_p5  ;;  %p2823_p11 = por %p2822_p12, %p2821_p9 }
  0x6f   : > { %p2825_p2 = por %p2824_p1, %p2823_p11 }
  0x71   : > { %p2826_p4 = pnand %p2825_p2, %p2819_p7 }
  0x73   : > { %2829 = shalt.err (!%p2826_p4)
}
  0x74   : > { %s2830_s29 = scalar_lea.vmem %s3448_s9, 128  ;;  %s3207_s4 = smov [#allocation2]  }
  0x75   : > { %p2831_p6 = scmp.ne.s32.totalorder %s3448_s9, %s2830_s29  ;;  %s2835_s22 = sshll.u32 %s3207_s4, 4  ;;  %s2836_s22 = int_to_ptr.vmem [resolvable:$false] %s2835_s22 }
  0x76   : > { %s2837_s17 = scalar_lea.vmem %s2836_s22, 256  ;;  %p2838_p5 = scmp.lt.s32.totalorder %s3448_s9, %s2836_s22 }
  0x77   : > { %p2833_p13 = pnand %p2831_p6, %p2817_p3  ;;  %p2839_p9 = scmp.lt.s32.totalorder %s2837_s17, %s2830_s29 }
  0x79   : > { %p2834_p0 = pneg %p2833_p13  ;;  %p2840_p12 = por %p2839_p9, %p2838_p5 }
  0x7b   : > { %p2841_p11 = pnand %p2840_p12, %p2834_p0 }
  0x7d   : > { %2844 = shalt.err (!%p2841_p11)
}
  0x7e   : > { %2616 = dma.hbm_to_vmem [thread:$0]  (!%p3444_p10), %s3439_s6, 128, %s3448_s9, %s490_s25  }
  0x7f   : > { %s509_s2 = sand.u32 1, %s3199_s18   ;;  %s513_s20 = scalar_lea.vmem [#allocation5], %s3430_s28 }
  0x80   : > { %s522_s24 = sshll.u32 %s513_s20, 4  ;;  %s510_s12 = scalar_lea.sflag [#allocation6], %s509_s2  ;;  %s523_s24 = int_to_ptr.vmem [resolvable:$true] %s522_s24 }
  0x81   : > { %s2845_s26 = scalar_lea.hbm %s3453_s27, 128  ;;  %s2850_s4 = scalar_lea.hbm %s4000_s1, 512 }
  0x82   : > { %p2846_p7 = scmp.ne.s32.totalorder %s3453_s27, %s2845_s26  ;;  %p2851_p4 = scmp.lt.u32.totalorder %s3453_s27, %s4000_s1 }
  0x83   : > { %p2852_p6 = scmp.lt.u32.totalorder %s2850_s4, %s2845_s26  ;;  %p2854_p0 = scmp.lt.u32.totalorder %s2845_s26, %s3453_s27 }
  0x84   : > { %p2848_p1 = pnand %p2846_p7, %p2817_p3 }
  0x85   : > { %p2853_p13 = por %p2852_p6, %p2851_p4 }
  0x86   : > { %p2849_p2 = pneg %p2848_p1 }
  0x87   : > { %p2855_p5 = por %p2854_p0, %p2853_p13 }
  0x89   : > { %p2856_p9 = pnand %p2855_p5, %p2849_p2 }
  0x8b   : > { %2859 = shalt.err (!%p2856_p9)
}
  0x8c   : > { %s2860_s28 = scalar_lea.vmem %s523_s24, 128  ;;  %s3208_s6 = smov [#allocation5]  }
  0x8d   : > { %p2861_p12 = scmp.ne.s32.totalorder %s523_s24, %s2860_s28  ;;  %s2865_s9 = sshll.u32 %s3208_s6, 4  ;;  %s2866_s9 = int_to_ptr.vmem [resolvable:$false] %s2865_s9 }
  0x8e   : > { %s2867_s25 = scalar_lea.vmem %s2866_s9, 256  ;;  %p2868_p1 = scmp.lt.s32.totalorder %s523_s24, %s2866_s9 }
  0x8f   : > { %p2863_p11 = pnand %p2861_p12, %p2817_p3  ;;  %p2869_p8 = scmp.lt.s32.totalorder %s2867_s25, %s2860_s28 }
  0x91   : > { %p2864_p7 = pneg %p2863_p11  ;;  %p2870_p4 = por %p2869_p8, %p2868_p1 }
  0x93   : > { %p2871_p6 = pnand %p2870_p4, %p2864_p7 }
  0x95   : > { %2874 = shalt.err (!%p2871_p6)
}
  0x96   : > { %2619 = dma.hbm_to_vmem [thread:$0]  (!%p3444_p10), %s3453_s27, 128, %s523_s24, %s510_s12  }
  0x97   : > { %p4051_p2 = scmp.ne.s32.totalorder %s4042_s23, 0 }
  0x98   : > { %s3504_s2 = sand.u32 (!%p4051_p2), 1, %s3183_s30   ;;  %p4052_p8 = scmp.ne.s32.totalorder (!%p4051_p2), %s4039_s21, 0 }
  0x99   : > { %531 = sbr.rel (%p4051_p2) target bundleno = 1194 (0x4aa), region = 44  ;;  %s3507_s20 = sshll.u32 (!%p4051_p2), %s3504_s2, 3 }
  0x9a   : > { %s534_s26 = scalar_lea.sflag (!%p4051_p2), [#allocation3], %s3504_s2  ;;  %s537_s8 = scalar_lea.vmem (!%p4051_p2), [#allocation2], %s3507_s20 }
  0xa0   : > { %3138 = dma.done.wait (%p4052_p8), %s534_s26, 128  }
  0xa1   : > { %3140 = vsyncadd (%p4052_p8), %s534_s26, 4294967168  ;;  %s542_s23 = sand.u32 1, %s3331_s19   ;;  %s546_s27 = scalar_lea.vmem [#allocation5], %s3507_s20 }
  0xa2   : > { %s543_s10 = scalar_lea.sflag [#allocation6], %s542_s23 }
  0xa3   : > { %3142 = dma.done.wait (%p4052_p8), %s543_s10, 128  }
  0xa4   : > { %3144 = vsyncadd (%p4052_p8), %s543_s10, 4294967168  ;;  %p4053_p10 = scmp.eq.s32.totalorder %s3331_s19, 0 }
  0xa6   : > { %3146 = dma.done.wait (%p4053_p10), [#allocation6], 2048   ;;  %p4054_p3 = pmov %p4053_p10 }
  0xa8   : > { %3148 = vsyncadd (%p4054_p3), [#allocation6], 4294965248  ;;  %p4055_p13 = pmov %p4054_p3 }
  0xa9   : > { %p4056_p0 = pmov %p4054_p3 }
  0xaa   : > { %3150 = dma.done.wait (%p4055_p13), [#allocation9], 2048  }
  0xab   : > { %3152 = vsyncadd (%p4056_p0), [#allocation9], 4294965248  ;;  %s2417_s24 = sshll.u32 %s3504_s2, 4  ;;  %s587_s12 = scalar_lea.vmem [#allocation10], %s3507_s20 }
  0xac   : > { %s3533_s29 = scalar_lea.vmem [#allocation11], %s2417_s24  ;;  %p2418_p5 = scmp.ne.s32.totalorder %s3191_s16, 0 }
  0xad   : > { %v3209_v0 = vmov (!%p2418_p5), 0.0  }
  0xae   : > { %621 = sbr.rel (%p2418_p5) target bundleno = 234 (0xea), region = 64  ;;  %622 = vst [vmem:[#allocation13] sm:$0xff] (!%p2418_p5), %v3209_v0  ;;  %623 = vst [vmem:[#allocation13 + $0x8] sm:$0xff] (!%p2418_p5), %v3209_v0 }
  0xaf   : > { %624 = vst [vmem:[#allocation13 + $0x10] sm:$0xff] (!%p2418_p5), %v3209_v0  ;;  %625 = vst [vmem:[#allocation13 + $0x18] sm:$0xff] (!%p2418_p5), %v3209_v0 }
  0xb0   : > { %626 = vst [vmem:[#allocation13 + $0x20] sm:$0xff] (!%p2418_p5), %v3209_v0  ;;  %627 = vst [vmem:[#allocation13 + $0x28] sm:$0xff] (!%p2418_p5), %v3209_v0 }
  0xb1   : > { %628 = vst [vmem:[#allocation13 + $0x30] sm:$0xff] (!%p2418_p5), %v3209_v0  ;;  %629 = vst [vmem:[#allocation13 + $0x38] sm:$0xff] (!%p2418_p5), %v3209_v0 }
  0xb2   : > { %630 = vst [vmem:[#allocation13 + $0x40] sm:$0xff] (!%p2418_p5), %v3209_v0  ;;  %631 = vst [vmem:[#allocation13 + $0x48] sm:$0xff] (!%p2418_p5), %v3209_v0 }
  0xb3   : > { %632 = vst [vmem:[#allocation13 + $0x50] sm:$0xff] (!%p2418_p5), %v3209_v0  ;;  %633 = vst [vmem:[#allocation13 + $0x58] sm:$0xff] (!%p2418_p5), %v3209_v0 }
  0xb4   : > { %634 = vst [vmem:[#allocation13 + $0x60] sm:$0xff] (!%p2418_p5), %v3209_v0  ;;  %635 = vst [vmem:[#allocation13 + $0x68] sm:$0xff] (!%p2418_p5), %v3209_v0 }
  0xb5   : > { %636 = vst [vmem:[#allocation13 + $0x70] sm:$0xff] %v3209_v0  ;;  %637 = vst [vmem:[#allocation13 + $0x78] sm:$0xff] %v3209_v0 }
  0xb6   : > { %638 = vst [vmem:[#allocation14] sm:$0xff] %v3209_v0  ;;  %639 = vst [vmem:[#allocation14 + $0x8] sm:$0xff] %v3209_v0 }
  0xb7   : > { %640 = vst [vmem:[#allocation14 + $0x10] sm:$0xff] %v3209_v0  ;;  %641 = vst [vmem:[#allocation14 + $0x18] sm:$0xff] %v3209_v0 }
  0xb8   : > { %642 = vst [vmem:[#allocation14 + $0x20] sm:$0xff] %v3209_v0  ;;  %643 = vst [vmem:[#allocation14 + $0x28] sm:$0xff] %v3209_v0 }
  0xb9   : > { %644 = vst [vmem:[#allocation14 + $0x30] sm:$0xff] %v3209_v0  ;;  %645 = vst [vmem:[#allocation14 + $0x38] sm:$0xff] %v3209_v0 }
  0xba   : > { %646 = vst [vmem:[#allocation14 + $0x40] sm:$0xff] %v3209_v0  ;;  %647 = vst [vmem:[#allocation14 + $0x48] sm:$0xff] %v3209_v0 }
  0xbb   : > { %648 = vst [vmem:[#allocation14 + $0x50] sm:$0xff] %v3209_v0  ;;  %649 = vst [vmem:[#allocation14 + $0x58] sm:$0xff] %v3209_v0 }
  0xbc   : > { %650 = vst [vmem:[#allocation14 + $0x60] sm:$0xff] %v3209_v0  ;;  %651 = vst [vmem:[#allocation14 + $0x68] sm:$0xff] %v3209_v0 }
  0xbd   : > { %652 = vst [vmem:[#allocation14 + $0x70] sm:$0xff] %v3209_v0  ;;  %653 = vst [vmem:[#allocation14 + $0x78] sm:$0xff] %v3209_v0 }
  0xbe   : > { %654 = vst [vmem:[#allocation14 + $0x80] sm:$0xff] %v3209_v0  ;;  %655 = vst [vmem:[#allocation14 + $0x88] sm:$0xff] %v3209_v0 }
  0xbf   : > { %656 = vst [vmem:[#allocation14 + $0x90] sm:$0xff] %v3209_v0  ;;  %657 = vst [vmem:[#allocation14 + $0x98] sm:$0xff] %v3209_v0 }
  0xc0   : > { %658 = vst [vmem:[#allocation14 + $0xa0] sm:$0xff] %v3209_v0  ;;  %659 = vst [vmem:[#allocation14 + $0xa8] sm:$0xff] %v3209_v0 }
  0xc1   : > { %660 = vst [vmem:[#allocation14 + $0xb0] sm:$0xff] %v3209_v0  ;;  %661 = vst [vmem:[#allocation14 + $0xb8] sm:$0xff] %v3209_v0 }
  0xc2   : > { %662 = vst [vmem:[#allocation14 + $0xc0] sm:$0xff] %v3209_v0  ;;  %663 = vst [vmem:[#allocation14 + $0xc8] sm:$0xff] %v3209_v0 }
  0xc3   : > { %664 = vst [vmem:[#allocation14 + $0xd0] sm:$0xff] %v3209_v0  ;;  %665 = vst [vmem:[#allocation14 + $0xd8] sm:$0xff] %v3209_v0 }
  0xc4   : > { %666 = vst [vmem:[#allocation14 + $0xe0] sm:$0xff] %v3209_v0  ;;  %667 = vst [vmem:[#allocation14 + $0xe8] sm:$0xff] %v3209_v0 }
  0xc5   : > { %668 = vst [vmem:[#allocation14 + $0xf0] sm:$0xff] %v3209_v0  ;;  %669 = vst [vmem:[#allocation14 + $0xf8] sm:$0xff] %v3209_v0 }
  0xc6   : > { %670 = vst [vmem:[#allocation16] sm:$0xff] %v3209_v0  ;;  %671 = vst [vmem:[#allocation16 + $0x8] sm:$0xff] %v3209_v0 }
  0xc7   : > { %672 = vst [vmem:[#allocation16 + $0x10] sm:$0xff] %v3209_v0  ;;  %673 = vst [vmem:[#allocation16 + $0x18] sm:$0xff] %v3209_v0 }
  0xc8   : > { %674 = vst [vmem:[#allocation16 + $0x20] sm:$0xff] %v3209_v0  ;;  %675 = vst [vmem:[#allocation16 + $0x28] sm:$0xff] %v3209_v0 }
  0xc9   : > { %676 = vst [vmem:[#allocation16 + $0x30] sm:$0xff] %v3209_v0  ;;  %677 = vst [vmem:[#allocation16 + $0x38] sm:$0xff] %v3209_v0 }
  0xca   : > { %678 = vst [vmem:[#allocation16 + $0x40] sm:$0xff] %v3209_v0  ;;  %679 = vst [vmem:[#allocation16 + $0x48] sm:$0xff] %v3209_v0 }
  0xcb   : > { %680 = vst [vmem:[#allocation16 + $0x50] sm:$0xff] %v3209_v0  ;;  %681 = vst [vmem:[#allocation16 + $0x58] sm:$0xff] %v3209_v0 }
  0xcc   : > { %682 = vst [vmem:[#allocation16 + $0x60] sm:$0xff] %v3209_v0  ;;  %683 = vst [vmem:[#allocation16 + $0x68] sm:$0xff] %v3209_v0 }
  0xcd   : > { %684 = vst [vmem:[#allocation16 + $0x70] sm:$0xff] %v3209_v0  ;;  %685 = vst [vmem:[#allocation16 + $0x78] sm:$0xff] %v3209_v0 }
  0xce   : > { %686 = vst [vmem:[#allocation16 + $0x80] sm:$0xff] %v3209_v0  ;;  %687 = vst [vmem:[#allocation16 + $0x88] sm:$0xff] %v3209_v0 }
  0xcf   : > { %688 = vst [vmem:[#allocation16 + $0x90] sm:$0xff] %v3209_v0  ;;  %689 = vst [vmem:[#allocation16 + $0x98] sm:$0xff] %v3209_v0 }
  0xd0   : > { %690 = vst [vmem:[#allocation16 + $0xa0] sm:$0xff] %v3209_v0  ;;  %691 = vst [vmem:[#allocation16 + $0xa8] sm:$0xff] %v3209_v0 }
  0xd1   : > { %692 = vst [vmem:[#allocation16 + $0xb0] sm:$0xff] %v3209_v0  ;;  %693 = vst [vmem:[#allocation16 + $0xb8] sm:$0xff] %v3209_v0 }
  0xd2   : > { %694 = vst [vmem:[#allocation16 + $0xc0] sm:$0xff] %v3209_v0  ;;  %695 = vst [vmem:[#allocation16 + $0xc8] sm:$0xff] %v3209_v0 }
  0xd3   : > { %696 = vst [vmem:[#allocation16 + $0xd0] sm:$0xff] %v3209_v0  ;;  %697 = vst [vmem:[#allocation16 + $0xd8] sm:$0xff] %v3209_v0 }
  0xd4   : > { %698 = vst [vmem:[#allocation16 + $0xe0] sm:$0xff] %v3209_v0  ;;  %699 = vst [vmem:[#allocation16 + $0xe8] sm:$0xff] %v3209_v0 }
  0xd5   : > { %700 = vst [vmem:[#allocation16 + $0xf0] sm:$0xff] %v3209_v0  ;;  %701 = vst [vmem:[#allocation16 + $0xf8] sm:$0xff] %v3209_v0 }
  0xd6   : > { %702 = vst [vmem:[#allocation16 + $0x100] sm:$0xff] %v3209_v0  ;;  %703 = vst [vmem:[#allocation16 + $0x108] sm:$0xff] %v3209_v0 }
  0xd7   : > { %704 = vst [vmem:[#allocation16 + $0x110] sm:$0xff] %v3209_v0  ;;  %705 = vst [vmem:[#allocation16 + $0x118] sm:$0xff] %v3209_v0 }
  0xd8   : > { %706 = vst [vmem:[#allocation16 + $0x120] sm:$0xff] %v3209_v0  ;;  %707 = vst [vmem:[#allocation16 + $0x128] sm:$0xff] %v3209_v0 }
  0xd9   : > { %708 = vst [vmem:[#allocation16 + $0x130] sm:$0xff] %v3209_v0  ;;  %709 = vst [vmem:[#allocation16 + $0x138] sm:$0xff] %v3209_v0 }
  0xda   : > { %710 = vst [vmem:[#allocation16 + $0x140] sm:$0xff] %v3209_v0  ;;  %711 = vst [vmem:[#allocation16 + $0x148] sm:$0xff] %v3209_v0 }
  0xdb   : > { %712 = vst [vmem:[#allocation16 + $0x150] sm:$0xff] %v3209_v0  ;;  %713 = vst [vmem:[#allocation16 + $0x158] sm:$0xff] %v3209_v0 }
  0xdc   : > { %714 = vst [vmem:[#allocation16 + $0x160] sm:$0xff] %v3209_v0  ;;  %715 = vst [vmem:[#allocation16 + $0x168] sm:$0xff] %v3209_v0 }
  0xdd   : > { %716 = vst [vmem:[#allocation16 + $0x170] sm:$0xff] %v3209_v0  ;;  %717 = vst [vmem:[#allocation16 + $0x178] sm:$0xff] %v3209_v0 }
  0xde   : > { %718 = vst [vmem:[#allocation16 + $0x180] sm:$0xff] %v3209_v0  ;;  %719 = vst [vmem:[#allocation16 + $0x188] sm:$0xff] %v3209_v0 }
  0xdf   : > { %720 = vst [vmem:[#allocation16 + $0x190] sm:$0xff] %v3209_v0  ;;  %721 = vst [vmem:[#allocation16 + $0x198] sm:$0xff] %v3209_v0 }
  0xe0   : > { %722 = vst [vmem:[#allocation16 + $0x1a0] sm:$0xff] %v3209_v0  ;;  %723 = vst [vmem:[#allocation16 + $0x1a8] sm:$0xff] %v3209_v0 }
  0xe1   : > { %724 = vst [vmem:[#allocation16 + $0x1b0] sm:$0xff] %v3209_v0  ;;  %725 = vst [vmem:[#allocation16 + $0x1b8] sm:$0xff] %v3209_v0 }
  0xe2   : > { %726 = vst [vmem:[#allocation16 + $0x1c0] sm:$0xff] %v3209_v0  ;;  %727 = vst [vmem:[#allocation16 + $0x1c8] sm:$0xff] %v3209_v0 }
  0xe3   : > { %728 = vst [vmem:[#allocation16 + $0x1d0] sm:$0xff] %v3209_v0  ;;  %729 = vst [vmem:[#allocation16 + $0x1d8] sm:$0xff] %v3209_v0 }
  0xe4   : > { %730 = vst [vmem:[#allocation16 + $0x1e0] sm:$0xff] %v3209_v0  ;;  %731 = vst [vmem:[#allocation16 + $0x1e8] sm:$0xff] %v3209_v0 }
  0xe5   : > { %732 = vst [vmem:[#allocation16 + $0x1f0] sm:$0xff] %v3209_v0  ;;  %733 = vst [vmem:[#allocation16 + $0x1f8] sm:$0xff] %v3209_v0 }
  0xe6   : > { %734 = vst [vmem:[#allocation17] sm:$0xff] %v3209_v0  ;;  %735 = vst [vmem:[#allocation17 + $0x8] sm:$0xff] %v3209_v0 }
  0xe7   : > { %736 = vst [vmem:[#allocation19] sm:$0xff] %v3209_v0  ;;  %737 = vst [vmem:[#allocation19 + $0x8] sm:$0xff] %v3209_v0 }
  0xe8   : > { %738 = vst [vmem:[#allocation20] sm:$0xff] %v3209_v0  ;;  %739 = vst [vmem:[#allocation20 + $0x8] sm:$0xff] %v3209_v0 }
  0xe9   : > { %740 = vst [vmem:[#allocation22] sm:$0xff] %v3209_v0 }
  0xea PF: > { %v2715_v1 = vld [vmem:[#allocation7 + $0x4] ss:$8 sps:$4 sm:$0xff]   ;;  %v2717_v2 = vld [vmem:[#allocation7] ss:$8 sps:$4 sm:$0xff]   ;;  %v3210_v3 = vmov 0   ;;  %v2743_v18 = vld [vmem:[#allocation8 + $0x50] sm:$0xff]   ;;  %v762_v43 = vlaneseq }
  0xeb   : > { %884 = vmatprep.mubr.bf16.mxu0 %v3210_v3  ;;  %852 = vmatprep.subr.bf16.mxu0 %v2715_v1  ;;  %v2718_v4 = vld [vmem:[#allocation7 + $0x14] ss:$8 sps:$4 sm:$0xff]   ;;  %v2720_v5 = vld [vmem:[#allocation7 + $0x10] ss:$8 sps:$4 sm:$0xff]   ;;  %v2721_v6 = vld [vmem:[#allocation7 + $0x24] ss:$8 sps:$4 sm:$0xff]  }
  0xec   : > { %853 = vmatpush1.bf16.msra.mxu0 %v2717_v2  ;;  %v2723_v7 = vld [vmem:[#allocation7 + $0x20] ss:$8 sps:$4 sm:$0xff]   ;;  %v2724_v8 = vld [vmem:[#allocation7 + $0x34] ss:$8 sps:$4 sm:$0xff]   ;;  %v2726_v9 = vld [vmem:[#allocation7 + $0x30] ss:$8 sps:$4 sm:$0xff]  }
  0xed   : > { %854 = vmatprep.subr.bf16.mxu0 %v2718_v4  ;;  %v2727_v10 = vld [vmem:[#allocation7 + $0x44] ss:$8 sps:$4 sm:$0xff]   ;;  %v2729_v15 = vld [vmem:[#allocation7 + $0x40] ss:$8 sps:$4 sm:$0xff]   ;;  %v2730_v19 = vld [vmem:[#allocation7 + $0x54] ss:$8 sps:$4 sm:$0xff]  }
  0xee   : > { %v741_v11 = vld [vmem:[%s537_s8] sm:$0xff]  ;;  %v2732_v20 = vld [vmem:[#allocation7 + $0x50] ss:$8 sps:$4 sm:$0xff]   ;;  %v2736_v26 = vld [vmem:[#allocation7 + $0x74] ss:$8 sps:$4 sm:$0xff]   ;;  %vm1201_vm1 = vcmask 1043456  }
  0xef   : > { %v1126_v12 = vmul.f32 %v741_v11, %v741_v11  ;;  %v2739_v13 = vld [vmem:[#allocation8 + $0x40] sm:$0xff]   ;;  %v2741_v16 = vld [vmem:[#allocation8 + $0x48] sm:$0xff]   ;;  %v2744_v21 = vld [vmem:[#allocation8 + $0x10] sm:$0xff]   ;;  %v743_v31 = vpack.c.bf16 %v741_v11, %v741_v11  ;;  %v763_v44 = vshrl.u32 %v762_v43, 7  ;;  %s2452_s21 = sshll.u32 %s3191_s16, 3  ;;  %v3211_v60 = vmov 0.0  }
  0xf0   : > { %855 = vmatpush1.bf16.msra.mxu0 %v2720_v5  ;;  %v2740_v14 = vld [vmem:[#allocation8] sm:$0xff]   ;;  %2510 = vmatprep.subr.bf16.mxu1 %v2739_v13  ;;  %v2742_v17 = vld [vmem:[#allocation8 + $0x8] sm:$0xff]   ;;  %v2745_v22 = vld [vmem:[#allocation8 + $0x58] sm:$0xff]   ;;  %v1082_v47 = vstv %s2452_s21  ;;  %vm1176_vm5 = vcmask 64512   ;;  %s2509_s6 = sshll.u32 %s3191_s16, 8  ;;  %s2051_s9 = sshll.u32 %s3533_s29, 4  ;;  %s3753_s9 = int_to_ptr.vmem [resolvable:$true] %s2051_s9 }
  0xf1   : > { %856 = vmatprep.subr.bf16.mxu0 %v2721_v6  ;;  %1127 = vadd.xlane.f32.xlu0 %v1126_v12  ;;  %v2733_v23 = vld [vmem:[#allocation7 + $0x64] ss:$8 sps:$4 sm:$0xff]   ;;  %v2735_v24 = vld [vmem:[#allocation7 + $0x60] ss:$8 sps:$4 sm:$0xff]   ;;  %v2746_v25 = vld [vmem:[#allocation8 + $0x18] sm:$0xff]   ;;  %v764_v45 = vsub.s32 0, %v763_v44  ;;  %v1083_v50 = vadd.s32 %v1082_v47, %v763_v44  ;;  %s3751_s8 = scalar_lea.hbm %s4006_s7, %s2509_s6 }
  0xf2   : > { %2511 = vmatpush3.bf16.msra.mxu1 %v2740_v14  ;;  %v2747_v27 = vld [vmem:[#allocation8 + $0x60] sm:$0xff]   ;;  %v2738_v29 = vld [vmem:[#allocation7 + $0x70] ss:$8 sps:$4 sm:$0xff]   ;;  %v2749_v30 = vld [vmem:[#allocation8 + $0x68] sm:$0xff]   ;;  %v768_v48 = vsub.s32 1, %v763_v44  ;;  %s3212_s10 = smov [#allocation14]  }
  0xf3   : > { %2512 = vmatprep.subr.bf16.mxu1 %v2741_v16  ;;  %v2748_v28 = vld [vmem:[#allocation8 + $0x20] sm:$0xff]   ;;  %v2750_v32 = vld [vmem:[#allocation8 + $0x28] sm:$0xff]   ;;  %v2751_v33 = vld [vmem:[#allocation8 + $0x70] sm:$0xff]   ;;  %vm1084_vm2 = vcmp.lt.s32.totalorder %v1083_v50, 30  ;;  %s2020_s24 = scalar_lea.sflag [#allocation12], %s542_s23  ;;  %p4057_p12 = scmp.ne.s32.totalorder %s4048_s14, 0 }
  0xf4   : > { %857 = vmatpush1.bf16.msra.mxu0 %v2723_v7  ;;  %v2752_v34 = vld [vmem:[#allocation8 + $0x30] sm:$0xff]   ;;  %v2753_v35 = vld [vmem:[#allocation8 + $0x78] sm:$0xff]   ;;  %v760_v46 = vld [vmem:[%s4002_s3] sm:$0x3]  ;;  %v3664_v61 = vsel %vm1084_vm2, 1.0, %v3211_v60  ;;  %s3213_s21 = smov [#allocation11]  }
  0xf5   : > { %858 = vmatprep.subr.bf16.mxu0 %v2724_v8  ;;  %v2754_v36 = vld [vmem:[#allocation8 + $0x38] sm:$0xff]   ;;  %v765_v49 = vrot.slane %v760_v46, %v764_v45  ;;  %v769_v51 = vrot.slane %v760_v46, %v768_v48  ;;  %v1093_v0 = vld [vmem:[#allocation17] sm:$0xff]  ;;  %v1121_v48 = vld [vmem:[#allocation22] sm:$0xff]  ;;  %s2879_s4 = sshll.u32 %s3213_s21, 4  ;;  %s2880_s4 = int_to_ptr.vmem [resolvable:$false] %s2879_s4 }
  0xf6   : > { %2513 = vmatpush3.bf16.msra.mxu1 %v2742_v17  ;;  %v1109_v1 = vld [vmem:[#allocation20] sm:$0xff]  ;;  %v1094_v5 = vld [vmem:[#allocation17 + $0x8] sm:$0xff]  ;;  %s2881_s22 = scalar_lea.vmem %s2880_s4, 512  ;;  %p2882_p1 = scmp.lt.s32.totalorder %s3753_s9, %s2880_s4 }
  0xf7   : > { %2514 = vmatprep.subr.bf16.mxu1 %v2743_v18  ;;  %v1110_v6 = vld [vmem:[#allocation20 + $0x8] sm:$0xff] }
  0xf8   : > { %859 = vmatpush1.bf16.msra.mxu0 %v2726_v9  ;;  %v742_v43 = vld [vmem:[%s546_s27] sm:$0xff]  ;;  %s3755_s27 = sshll.u32 %s3212_s10, 4  ;;  %s3781_s27 = int_to_ptr.vmem [resolvable:$true] %s3755_s27 }
  0xf9   : > { %860 = vmatprep.subr.bf16.mxu0 %v2727_v10  ;;  %v1101_v10 = vld [vmem:[#allocation19] sm:$0xff]  ;;  %v1145_v60 = vld [vmem:[#allocation13 + $0x8] sm:$0xff] }
  0xfa   : > { %2515 = vmatpush3.bf16.msra.mxu1 %v2744_v21 }
  0xfb   : > { %2516 = vmatprep.subr.bf16.mxu1 %v2745_v22 }
  0xfc   : > { %861 = vmatpush1.bf16.msra.mxu0 %v2729_v15  ;;  %v1102_v15 = vld [vmem:[#allocation19 + $0x8] sm:$0xff] }
  0xfd   : > { %862 = vmatprep.subr.bf16.mxu0 %v2730_v19 }
  0xfe   : > { %2517 = vmatpush3.bf16.msra.mxu1 %v2746_v25 }
  0xff   : > { %2518 = vmatprep.subr.bf16.mxu1 %v2747_v27 }
 0x100   : > { %863 = vmatpush1.bf16.msra.mxu0 %v2732_v20 }
 0x101   : > { %864 = vmatprep.subr.bf16.mxu0 %v2733_v23 }
 0x102   : > { %2519 = vmatpush3.bf16.msra.mxu1 %v2748_v28 }
 0x103   : > { %2520 = vmatprep.subr.bf16.mxu1 %v2749_v30 }
 0x104   : > { %865 = vmatpush1.bf16.msra.mxu0 %v2735_v24 }
 0x105   : > { %866 = vmatprep.subr.bf16.mxu0 %v2736_v26 }
 0x106   : > { %2521 = vmatpush3.bf16.msra.mxu1 %v2750_v32 }
 0x107   : > { %2522 = vmatprep.subr.bf16.mxu1 %v2751_v33 }
 0x108   : > { %867 = vmatpush1.bf16.msra.mxu0 %v2738_v29 }
 0x10a   : > { %2523 = vmatpush3.bf16.msra.mxu1 %v2752_v34 }
 0x10b   : > { %885 = vmatmul.mubr.bf16.vlgmr.msra.gmra.mrb[0].mxu0 %v743_v31  ;;  %2524 = vmatprep.subr.bf16.mxu1 %v2753_v35 }
 0x10e   : > { %2525 = vmatpush3.bf16.msra.mxu1 %v2754_v36 }
 0x17e   : > { %v1128_v37 = vpop.xlane.xlu0 %1127 }
 0x17f   : > { %2755 = vrsqrt.f32 %v1128_v37  ;;  %vm1132_vm0 = vcmp.gt.f32.partialorder %v1128_v37, 0.0 }
 0x189   : > { %v2756_v38 = vpop.eup %2755 }
 0x18a   : > { %v1134_v39 = vsel %vm1132_vm0, %v2756_v38, 0.0 }
 0x18b   : > { %v1135_v40 = vmul.f32 %v1134_v39, %v741_v11  ;;  %v2435_v39 = vld [vmem:[%s4004_s5] ss:$0 sm:$0xff] }
 0x18d   : > { %v1136_v41 = vpack.c.bf16 %v1135_v40, %v1135_v40 }
 0x18f   : > { %1160 = vxpose.xlu1.c.b16.start.end [1/1] (short) %v1136_v41, 128  ;;  %2561 = vmatprep.subr.msk.bf16.mxu0 %vm1201_vm1, %v1136_v41  ;;  %v1203_v42 = vsel %vm1201_vm1, %v1136_v41, 0 }
 0x190   : > { %2542 = vmatpush3.bf16.msra.mxu0 %v1203_v42 }
 0x1de   : > { %v886_v52 = vpop.f32.mrb[0].mxu0 }
 0x1df   : > { %v887_v53 = vadd.f32 %v886_v52, %v765_v49  ;;  %v888_v54 = vpop.f32.mrb[1].mxu0 }
 0x1e0   : > { %v889_v55 = vadd.f32 %v888_v54, %v769_v51  ;;  %v890_v56 = vpop.f32.mrb[2].mxu0  ;;  %v1146_v51 = vld [vmem:[#allocation13 + $0x10] sm:$0xff]  ;;  %v1144_v54 = vld [vmem:[#allocation13] sm:$0xff] }
 0x1e1   : > { %v893_v57 = vmax.f32 %v887_v53, 0.0  ;;  %v891_v58 = vpop.f32.mrb[3].mxu0 }
 0x1e2   : > { %v894_v59 = vmax.f32 %v889_v55, 0.0 }
 0x1e3   : > { %v895_v62 = vmin.f32 %v893_v57, 1.0  ;;  %v1147_v57 = vld [vmem:[#allocation13 + $0x18] sm:$0xff] }
 0x1e4   : > { %v896_v63 = vmin.f32 %v894_v59, 1.0 }
 0x1e5   : > { %1075 = vst [vmem:[%s3533_s29] sm:$0xff] %v895_v62  ;;  %v897_v2 = vpack.c.bf16 %v895_v62, %v895_v62  ;;  %v1087_v4 = vmul.f32 %v3664_v61, %v895_v62  ;;  %vm1111_vm3 = vcmp.eq.f32.partialorder %v895_v62, 0.0 }
 0x1e6   : > { %1076 = vst [vmem:[%s3533_s29 + $0x8] sm:$0xff] %v896_v63  ;;  %v898_v7 = vpack.c.bf16 %v896_v63, %v896_v63  ;;  %v1088_v8 = vmul.f32 %v3664_v61, %v896_v63  ;;  %vm1112_vm4 = vcmp.eq.f32.partialorder %v896_v63, 0.0  ;;  %v1113_v9 = vsel %vm1111_vm3, %v3664_v61, 0.0  ;;  %s2875_s29 = scalar_lea.vmem %s3753_s9, 256 }
 0x1e7   : > { %v1089_v11 = vmul.f32 %v1087_v4, %v1087_v4  ;;  %v1097_v12 = vadd.f32 %v1093_v0, %v1087_v4  ;;  %v1114_v13 = vsel %vm1112_vm4, %v3664_v61, 0.0  ;;  %v1117_v14 = vadd.f32 %v1113_v9, %v1109_v1  ;;  %p2876_p9 = scmp.ne.s32.totalorder %s3753_s9, %s2875_s29  ;;  %p2883_p4 = scmp.lt.s32.totalorder %s2881_s22, %s2875_s29 }
 0x1e8   : > { %1066 = vmatprep.mubr.bf16.mxu1 %v898_v7  ;;  %v1090_v16 = vmul.f32 %v1088_v8, %v1088_v8  ;;  %v1098_v17 = vadd.f32 %v1094_v5, %v1088_v8  ;;  %v1118_v18 = vadd.f32 %v1114_v13, %v1110_v6 }
 0x1e9   : > { %1067 = vmatmul.mubr.bf16.vlgmr.msra.gmra.mrb[0].mxu1 %v897_v2  ;;  %1099 = vst [vmem:[#allocation17] sm:$0xff] %v1097_v12  ;;  %1119 = vst [vmem:[#allocation20] sm:$0xff] %v1117_v14  ;;  %v1105_v19 = vadd.f32 %v1101_v10, %v1089_v11  ;;  %v1148_v12 = vld [vmem:[#allocation13 + $0x20] sm:$0xff]  ;;  %p2877_p11 = pnand %p2876_p9, %p4057_p12  ;;  %p2884_p6 = por %p2883_p4, %p2882_p1 }
 0x1ea   : > { %v1129_v20 = vadd.f32 %v1090_v16, %v1089_v11  ;;  %1404 = vmatprep.mubr.bf16.mxu1 %v3210_v3  ;;  %1100 = vst [vmem:[#allocation17 + $0x8] sm:$0xff] %v1098_v17  ;;  %1120 = vst [vmem:[#allocation20 + $0x8] sm:$0xff] %v1118_v18  ;;  %v1106_v21 = vadd.f32 %v1102_v15, %v1090_v16  ;;  %v1150_v11 = vld [vmem:[#allocation13 + $0x30] sm:$0xff]  ;;  %v1151_v15 = vld [vmem:[#allocation13 + $0x38] sm:$0xff] }
 0x1eb   : > { %1107 = vst [vmem:[#allocation19] sm:$0xff] %v1105_v19  ;;  %v1149_v19 = vld [vmem:[#allocation13 + $0x28] sm:$0xff]  ;;  %p2878_p7 = pneg %p2877_p11 }
 0x1ec   : > { %1130 = vadd.xlane.f32.xlu0 %v1129_v20  ;;  %1108 = vst [vmem:[#allocation19 + $0x8] sm:$0xff] %v1106_v21 }
 0x1ed   : > { %p2885_p2 = pnand %p2884_p6, %p2878_p7 }
 0x1f5   : > { %v1168_v22 = vpop.trf.xlu1 }
 0x1f6   : > { %2543 = vmatprep.mubr.msk.bf16.mxu0 %vm1176_vm5, %v1168_v22 }
 0x1f9   : > { %v1169_v23 = vpop.trf.xlu1 }
 0x1fa   : > { %2544 = vmatmul.mubr.msk.bf16.vlgmr.msra.gmra.mrb[4].mxu0 %vm1176_vm5, %v1169_v23 }
 0x1fd   : > { %v1170_v24 = vpop.trf.xlu1 }
 0x1fe   : > { %2547 = vmatprep.mubr.msk.bf16.mxu0 %vm1176_vm5, %v1170_v24 }
 0x201   : > { %v1171_v25 = vpop.trf.xlu1 }
 0x202   : > { %2548 = vmatmul.mubr.msk.bf16.gmra.mrb[8].mxu0 %vm1176_vm5, %v1171_v25 }
 0x205   : > { %v1172_v26 = vpop.trf.xlu1 }
 0x206   : > { %2551 = vmatprep.mubr.msk.bf16.mxu0 %vm1176_vm5, %v1172_v26 }
 0x209   : > { %v1173_v27 = vpop.trf.xlu1 }
 0x20a   : > { %2552 = vmatmul.mubr.msk.bf16.gmra.mrb[12].mxu0 %vm1176_vm5, %v1173_v27 }
 0x20d   : > { %v1174_v28 = vpop.trf.xlu1 }
 0x20e   : > { %2555 = vmatprep.mubr.msk.bf16.mxu0 %vm1176_vm5, %v1174_v28 }
 0x211   : > { %v1175_v29 = vpop.trf.xlu1 }
 0x212   : > { %2556 = vmatmul.mubr.msk.bf16.gmra.mrb[16].mxu0 %vm1176_vm5, %v1175_v29 }
 0x213   : > { %1725 = vmatprep.mubr.bf16.mxu0 %v3210_v3 }
 0x279   : > { %v1131_v30 = vpop.xlane.xlu0 %1130 }
 0x27a   : > { %2757 = vrsqrt.f32 %v1131_v30  ;;  %vm1137_vm6 = vcmp.gt.f32.partialorder %v1131_v30, 0.0 }
 0x284   : > { %v2758_v31 = vpop.eup %2757 }
 0x285   : > { %v1139_v32 = vsel %vm1137_vm6, %v2758_v31, 0.0 }
 0x286   : > { %v1141_v33 = vmul.f32 %v1139_v32, %v1088_v8  ;;  %v1140_v34 = vmul.f32 %v1139_v32, %v1087_v4 }
 0x288   : > { %v1143_v35 = vpack.c.bf16 %v1141_v33, %v1141_v33  ;;  %v1142_v36 = vpack.c.bf16 %v1140_v34, %v1140_v34  ;;  %v1153_v33 = vld [vmem:[#allocation13 + $0x48] sm:$0xff] }
 0x28a   : > { %1629 = vxpose.xlu0.c.b16.start.end [1/1] (short) %v1143_v35, 128  ;;  %2462 = vmatprep.subr.msk.bf16.mxu1 %vm1201_vm1, %v1143_v35  ;;  %v1367_v37 = vsel %vm1201_vm1, %v1142_v36, 0 }
 0x28b   : > { %2471 = vmatprep.subr.msk.bf16.mxu0 %vm1201_vm1, %v1143_v35  ;;  %1613 = vxpose.xlu1.c.b16.start.end [1/1] (short) %v1142_v36, 128 }
 0x28c   : > { %1373 = vmatpush1.bf16.msra.mxu1 %v1367_v37  ;;  %1694 = vmatpush1.bf16.msra.mxu0 %v1367_v37 }
 0x28d   : > { %2559 = vmatprep.subr.msk.bf16.mxu1 %vm1201_vm1, %v1143_v35 }
 0x28f   : > { %2463 = vmatmul.mubr.msk.bf16.vlgmr.msra.gmra.mrb[4].mxu1 %vm1176_vm5, %v1168_v22 }
 0x290   : > { %2560 = vmatpush1.bf16.msra.mxu1 %v1367_v37  ;;  %1414 = vmatprep.mubr.bf16.mxu1 %v3210_v3 }
 0x297   : > { %2464 = vmatmul.mubr.msk.bf16.gmra.mrb[8].mxu1 %vm1176_vm5, %v1169_v23 }
 0x298   : > { %1424 = vmatprep.mubr.bf16.mxu1 %v3210_v3 }
 0x29f   : > { %2465 = vmatmul.mubr.msk.bf16.gmra.mrb[12].mxu1 %vm1176_vm5, %v1170_v24 }
 0x2a0   : > { %1434 = vmatprep.mubr.bf16.mxu1 %v3210_v3 }
 0x2a7   : > { %2466 = vmatmul.mubr.msk.bf16.gmra.mrb[16].mxu1 %vm1176_vm5, %v1171_v25  ;;  %v1154_v25 = vld [vmem:[#allocation13 + $0x50] sm:$0xff] }
 0x2a8   : > { %1444 = vmatprep.mubr.bf16.mxu1 %v3210_v3 }
 0x2af   : > { %2467 = vmatmul.mubr.msk.bf16.gmra.mrb[20].mxu1 %vm1176_vm5, %v1172_v26  ;;  %v1152_v26 = vld [vmem:[#allocation13 + $0x40] sm:$0xff] }
 0x2b0   : > { %1454 = vmatprep.mubr.bf16.mxu1 %v3210_v3 }
 0x2b7   : > { %2468 = vmatmul.mubr.msk.bf16.gmra.mrb[24].mxu1 %vm1176_vm5, %v1173_v27 }
 0x2b8   : > { %1464 = vmatprep.mubr.bf16.mxu1 %v3210_v3 }
 0x2bc   : > { %v2526_v38 = vpop.f32.mrb[0].mxu1 }
 0x2bd   : > { %v2527_v40 = vpop.f32.mrb[1].mxu1 }
 0x2be   : > { %v2528_v41 = vadd.f32 %v2527_v40, %v2526_v38  ;;  %v2529_v42 = vpop.f32.mrb[2].mxu1  ;;  %v1156_v40 = vld [vmem:[#allocation13 + $0x60] sm:$0xff] }
 0x2bf   : > { %v2530_v44 = vpop.f32.mrb[3].mxu1  ;;  %2469 = vmatmul.mubr.msk.bf16.gmra.mrb[28].mxu1 %vm1176_vm5, %v1174_v28  ;;  %v1159_v42 = vld [vmem:[#allocation13 + $0x78] sm:$0xff] }
 0x2c0   : > { %v1069_v45 = vadd.f32 %v2528_v41, %v2435_v39  ;;  %1474 = vmatprep.mubr.bf16.mxu1 %v3210_v3  ;;  %v1158_v39 = vld [vmem:[#allocation13 + $0x70] sm:$0xff] }
 0x2c2   : > { %v1091_v46 = vsub.f32 %v1069_v45, %v742_v43  ;;  %1074 = vst [vmem:[%s587_s12] sm:$0xff] %v1069_v45 }
 0x2c4   : > { %v1092_v47 = vmul.f32 %v3664_v61, %v1091_v46  ;;  %v1157_v46 = vld [vmem:[#allocation13 + $0x68] sm:$0xff] }
 0x2c6   : > { %v1122_v49 = vmul.f32 %v1092_v47, %v1092_v47 }
 0x2c7   : > { %2470 = vmatmul.mubr.msk.bf16.gmra.mrb[32].mxu1 %vm1176_vm5, %v1175_v29  ;;  %v1155_v29 = vld [vmem:[#allocation13 + $0x58] sm:$0xff] }
 0x2c8   : > { %1825 = vmatprep.mubr.bf16.mxu1 %v3210_v3  ;;  %v1124_v50 = vadd.f32 %v1122_v49, %v1121_v48 }
 0x2ca   : > { %1125 = vst [vmem:[#allocation22] sm:$0xff] %v1124_v50 }
 0x2cd   : > { %v2545_v52 = vpop.f32.mrb[4].mxu0 }
 0x2ce   : > { %v1304_v53 = vadd.f32 %v2545_v52, %v1146_v51  ;;  %v1239_v55 = vpop.f32.mrb[5].mxu0  ;;  %v1334_v52 = vld [vmem:[#allocation14] sm:$0xff] }
 0x2cf   : > { %v1302_v56 = vadd.f32 %v1239_v55, %v1144_v54  ;;  %v2546_v58 = vpop.f32.mrb[6].mxu0  ;;  %v1336_v55 = vld [vmem:[#allocation14 + $0x10] sm:$0xff] }
 0x2d0   : > { %1320 = vst [vmem:[#allocation13 + $0x10] sm:$0xff] %v1304_v53  ;;  %v1305_v59 = vadd.f32 %v2546_v58, %v1147_v57  ;;  %v1242_v61 = vpop.f32.mrb[7].mxu0  ;;  %v1335_v53 = vld [vmem:[#allocation14 + $0x8] sm:$0xff]  ;;  %v1337_v58 = vld [vmem:[#allocation14 + $0x18] sm:$0xff] }
 0x2d1   : > { %1318 = vst [vmem:[#allocation13] sm:$0xff] %v1302_v56  ;;  %v1303_v63 = vadd.f32 %v1242_v61, %v1145_v60 }
 0x2d2   : > { %1321 = vst [vmem:[#allocation13 + $0x18] sm:$0xff] %v1305_v59 }
 0x2d3   : > { %1319 = vst [vmem:[#allocation13 + $0x8] sm:$0xff] %v1303_v63 }
 0x2d5   : > { %v2549_v14 = vpop.f32.mrb[8].mxu0 }
 0x2d6   : > { %v1308_v17 = vadd.f32 %v2549_v14, %v1150_v11  ;;  %v1255_v18 = vpop.f32.mrb[9].mxu0 }
 0x2d7   : > { %v1306_v20 = vadd.f32 %v1255_v18, %v1148_v12  ;;  %v2550_v21 = vpop.f32.mrb[10].mxu0  ;;  %v1342_v12 = vld [vmem:[#allocation14 + $0x40] sm:$0xff]  ;;  %v1345_v18 = vld [vmem:[#allocation14 + $0x58] sm:$0xff] }
 0x2d8   : > { %1324 = vst [vmem:[#allocation13 + $0x30] sm:$0xff] %v1308_v17  ;;  %v1309_v22 = vadd.f32 %v2550_v21, %v1151_v15  ;;  %v1258_v23 = vpop.f32.mrb[11].mxu0  ;;  %v1344_v15 = vld [vmem:[#allocation14 + $0x50] sm:$0xff] }
 0x2d9   : > { %1322 = vst [vmem:[#allocation13 + $0x20] sm:$0xff] %v1306_v20  ;;  %v1307_v24 = vadd.f32 %v1258_v23, %v1149_v19 }
 0x2da   : > { %1325 = vst [vmem:[#allocation13 + $0x38] sm:$0xff] %v1309_v22 }
 0x2db   : > { %1323 = vst [vmem:[#allocation13 + $0x28] sm:$0xff] %v1307_v24  ;;  %v1346_v24 = vld [vmem:[#allocation14 + $0x60] sm:$0xff] }
 0x2dd   : > { %v2553_v28 = vpop.f32.mrb[12].mxu0 }
 0x2de   : > { %v1312_v31 = vadd.f32 %v2553_v28, %v1154_v25  ;;  %v1271_v32 = vpop.f32.mrb[13].mxu0  ;;  %v1347_v25 = vld [vmem:[#allocation14 + $0x68] sm:$0xff] }
 0x2df   : > { %v1310_v34 = vadd.f32 %v1271_v32, %v1152_v26  ;;  %v2554_v35 = vpop.f32.mrb[14].mxu0 }
 0x2e0   : > { %1328 = vst [vmem:[#allocation13 + $0x50] sm:$0xff] %v1312_v31  ;;  %v1313_v36 = vadd.f32 %v2554_v35, %v1155_v29  ;;  %v1274_v37 = vpop.f32.mrb[15].mxu0 }
 0x2e1   : > { %1326 = vst [vmem:[#allocation13 + $0x40] sm:$0xff] %v1310_v34  ;;  %v1311_v38 = vadd.f32 %v1274_v37, %v1153_v33  ;;  %v1351_v37 = vld [vmem:[#allocation14 + $0x88] sm:$0xff] }
 0x2e2   : > { %1329 = vst [vmem:[#allocation13 + $0x58] sm:$0xff] %v1313_v36  ;;  %v1350_v36 = vld [vmem:[#allocation14 + $0x80] sm:$0xff] }
 0x2e3   : > { %1327 = vst [vmem:[#allocation13 + $0x48] sm:$0xff] %v1311_v38 }
 0x2e5   : > { %v2557_v41 = vpop.f32.mrb[16].mxu0 }
 0x2e6   : > { %v1316_v44 = vadd.f32 %v2557_v41, %v1158_v39  ;;  %v1287_v45 = vpop.f32.mrb[17].mxu0  ;;  %v1352_v39 = vld [vmem:[#allocation14 + $0x90] sm:$0xff] }
 0x2e7   : > { %v1314_v47 = vadd.f32 %v1287_v45, %v1156_v40  ;;  %v2558_v48 = vpop.f32.mrb[18].mxu0 }
 0x2e8   : > { %1332 = vst [vmem:[#allocation13 + $0x70] sm:$0xff] %v1316_v44  ;;  %v1317_v49 = vadd.f32 %v2558_v48, %v1159_v42  ;;  %v1290_v50 = vpop.f32.mrb[19].mxu0  ;;  %v1353_v42 = vld [vmem:[#allocation14 + $0x98] sm:$0xff]  ;;  %v1354_v48 = vld [vmem:[#allocation14 + $0xa0] sm:$0xff] }
 0x2e9   : > { %1330 = vst [vmem:[#allocation13 + $0x60] sm:$0xff] %v1314_v47  ;;  %v1315_v51 = vadd.f32 %v1290_v50, %v1157_v46 }
 0x2ea   : > { %1333 = vst [vmem:[#allocation13 + $0x78] sm:$0xff] %v1317_v49  ;;  %v1355_v49 = vld [vmem:[#allocation14 + $0xa8] sm:$0xff] }
 0x2eb   : > { %1331 = vst [vmem:[#allocation13 + $0x68] sm:$0xff] %v1315_v51  ;;  %v1356_v51 = vld [vmem:[#allocation14 + $0xb0] sm:$0xff] }
 0x2f0   : > { %v3710_v62 = vpop.trf.xlu0 }
 0x2f1   : > { %v1621_v0 = vpop.trf.xlu1 }
 0x2f2   : > { %2472 = vmatmul.mubr.msk.bf16.vlgmr.msra.gmra.mrb[20].mxu0 %vm1176_vm5, %v1621_v0 }
 0x2f3   : > { %1735 = vmatprep.mubr.bf16.mxu0 %v3210_v3 }
 0x2f4   : > { %v3714_v1 = vpop.trf.xlu0 }
 0x2f5   : > { %v1622_v2 = vpop.trf.xlu1 }
 0x2f8   : > { %v1639_v4 = vpop.trf.xlu0 }
 0x2f9   : > { %2482 = vmatmul.mubr.msk.bf16.vlgmr.msra.gmra.mrb[36].mxu1 %vm1176_vm5, %v1639_v4  ;;  %v1623_v6 = vpop.trf.xlu1 }
 0x2fa   : > { %2473 = vmatmul.mubr.msk.bf16.gmra.mrb[24].mxu0 %vm1176_vm5, %v1622_v2  ;;  %1835 = vmatprep.mubr.bf16.mxu1 %v3210_v3 }
 0x2fb   : > { %1745 = vmatprep.mubr.bf16.mxu0 %v3210_v3 }
 0x2fc   : > { %v1640_v5 = vpop.trf.xlu0 }
 0x2fd   : > { %v1624_v8 = vpop.trf.xlu1 }
 0x300   : > { %v1641_v7 = vpop.trf.xlu0 }
 0x301   : > { %2483 = vmatmul.mubr.msk.bf16.gmra.mrb[40].mxu1 %vm1176_vm5, %v1640_v5  ;;  %v1625_v10 = vpop.trf.xlu1 }
 0x302   : > { %2474 = vmatmul.mubr.msk.bf16.gmra.mrb[28].mxu0 %vm1176_vm5, %v1623_v6  ;;  %1845 = vmatprep.mubr.bf16.mxu1 %v3210_v3  ;;  %v1341_v6 = vld [vmem:[#allocation14 + $0x38] sm:$0xff] }
 0x303   : > { %1755 = vmatprep.mubr.bf16.mxu0 %v3210_v3 }
 0x304   : > { %v1642_v9 = vpop.trf.xlu0 }
 0x305   : > { %v1626_v16 = vpop.trf.xlu1 }
 0x308   : > { %v1643_v13 = vpop.trf.xlu0 }
 0x309   : > { %2484 = vmatmul.mubr.msk.bf16.gmra.mrb[44].mxu1 %vm1176_vm5, %v1641_v7  ;;  %v1627_v30 = vpop.trf.xlu1 }
 0x30a   : > { %2475 = vmatmul.mubr.msk.bf16.gmra.mrb[32].mxu0 %vm1176_vm5, %v1624_v8  ;;  %1855 = vmatprep.mubr.bf16.mxu1 %v3210_v3 }
 0x30b   : > { %1765 = vmatprep.mubr.bf16.mxu0 %v3210_v3 }
 0x30c   : > { %v1644_v27 = vpop.trf.xlu0 }
 0x30d   : > { %v1628_v43 = vpop.trf.xlu1 }
 0x311   : > { %2485 = vmatmul.mubr.msk.bf16.gmra.mrb[48].mxu1 %vm1176_vm5, %v1642_v9 }
 0x312   : > { %2476 = vmatmul.mubr.msk.bf16.gmra.mrb[36].mxu0 %vm1176_vm5, %v1625_v10  ;;  %1865 = vmatprep.mubr.bf16.mxu1 %v3210_v3 }
 0x313   : > { %1775 = vmatprep.mubr.bf16.mxu0 %v3210_v3 }
 0x319   : > { %2486 = vmatmul.mubr.msk.bf16.gmra.mrb[52].mxu1 %vm1176_vm5, %v1643_v13  ;;  %v1343_v13 = vld [vmem:[#allocation14 + $0x48] sm:$0xff] }
 0x31a   : > { %2477 = vmatmul.mubr.msk.bf16.gmra.mrb[40].mxu0 %vm1176_vm5, %v1626_v16  ;;  %1875 = vmatprep.mubr.bf16.mxu1 %v3210_v3 }
 0x31b   : > { %1785 = vmatprep.mubr.bf16.mxu0 %v3210_v3 }
 0x321   : > { %2487 = vmatmul.mubr.msk.bf16.gmra.mrb[56].mxu1 %vm1176_vm5, %v1644_v27  ;;  %v1348_v27 = vld [vmem:[#allocation14 + $0x70] sm:$0xff] }
 0x322   : > { %2478 = vmatmul.mubr.msk.bf16.gmra.mrb[44].mxu0 %vm1176_vm5, %v1627_v30  ;;  %v1349_v30 = vld [vmem:[#allocation14 + $0x78] sm:$0xff] }
 0x323   : > { %1795 = vmatprep.mubr.bf16.mxu0 %v3210_v3 }
 0x32a   : > { %2479 = vmatmul.mubr.msk.bf16.gmra.mrb[48].mxu0 %vm1176_vm5, %v1628_v43 }
 0x32b   : > { %1805 = vmatprep.mubr.bf16.mxu0 %v3210_v3 }
 0x332   : > { %2480 = vmatmul.mubr.msk.bf16.gmra.mrb[52].mxu0 %vm1176_vm5, %v3710_v62  ;;  %v1339_v62 = vld [vmem:[#allocation14 + $0x28] sm:$0xff] }
 0x333   : > { %1815 = vmatprep.mubr.bf16.mxu0 %v3210_v3  ;;  %v1338_v3 = vld [vmem:[#allocation14 + $0x20] sm:$0xff] }
 0x33a   : > { %2481 = vmatmul.mubr.msk.bf16.gmra.mrb[56].mxu0 %vm1176_vm5, %v3714_v1  ;;  %v1340_v1 = vld [vmem:[#allocation14 + $0x30] sm:$0xff] }
 0x362   : > { %v1406_v54 = vpop.f32.mrb[4].mxu1 }
 0x363   : > { %v1485_v56 = vadd.f32 %v1406_v54, %v1334_v52  ;;  %v1408_v57 = vpop.f32.mrb[5].mxu1  ;;  %v1357_v54 = vld [vmem:[#allocation14 + $0xb8] sm:$0xff] }
 0x364   : > { %v1486_v59 = vadd.f32 %v1408_v57, %v1335_v53  ;;  %v1410_v60 = vpop.f32.mrb[6].mxu1 }
 0x365   : > { %1517 = vst [vmem:[#allocation14] sm:$0xff] %v1485_v56  ;;  %v1487_v61 = vadd.f32 %v1410_v60, %v1336_v55  ;;  %v1412_v63 = vpop.f32.mrb[7].mxu1  ;;  %v1358_v60 = vld [vmem:[#allocation14 + $0xc0] sm:$0xff] }
 0x366   : > { %1518 = vst [vmem:[#allocation14 + $0x8] sm:$0xff] %v1486_v59  ;;  %v1488_v0 = vadd.f32 %v1412_v63, %v1337_v58 }
 0x367   : > { %1519 = vst [vmem:[#allocation14 + $0x10] sm:$0xff] %v1487_v61  ;;  %v1359_v61 = vld [vmem:[#allocation14 + $0xc8] sm:$0xff] }
 0x368   : > { %1520 = vst [vmem:[#allocation14 + $0x18] sm:$0xff] %v1488_v0  ;;  %v1360_v0 = vld [vmem:[#allocation14 + $0xd0] sm:$0xff] }
 0x36a   : > { %v1416_v2 = vpop.f32.mrb[8].mxu1 }
 0x36b   : > { %v1489_v4 = vadd.f32 %v1416_v2, %v1338_v3  ;;  %v1418_v5 = vpop.f32.mrb[9].mxu1  ;;  %v1361_v2 = vld [vmem:[#allocation14 + $0xd8] sm:$0xff] }
 0x36c   : > { %v1490_v7 = vadd.f32 %v1418_v5, %v1339_v62  ;;  %v1420_v8 = vpop.f32.mrb[10].mxu1 }
 0x36d   : > { %1521 = vst [vmem:[#allocation14 + $0x20] sm:$0xff] %v1489_v4  ;;  %v1491_v9 = vadd.f32 %v1420_v8, %v1340_v1  ;;  %v1422_v10 = vpop.f32.mrb[11].mxu1 }
 0x36e   : > { %1522 = vst [vmem:[#allocation14 + $0x28] sm:$0xff] %v1490_v7  ;;  %v1492_v11 = vadd.f32 %v1422_v10, %v1341_v6 }
 0x36f   : > { %1523 = vst [vmem:[#allocation14 + $0x30] sm:$0xff] %v1491_v9 }
 0x370   : > { %1524 = vst [vmem:[#allocation14 + $0x38] sm:$0xff] %v1492_v11 }
 0x372   : > { %v1426_v14 = vpop.f32.mrb[12].mxu1 }
 0x373   : > { %v1493_v16 = vadd.f32 %v1426_v14, %v1342_v12  ;;  %v1428_v17 = vpop.f32.mrb[13].mxu1 }
 0x374   : > { %v1494_v19 = vadd.f32 %v1428_v17, %v1343_v13  ;;  %v1430_v20 = vpop.f32.mrb[14].mxu1 }
 0x375   : > { %1525 = vst [vmem:[#allocation14 + $0x40] sm:$0xff] %v1493_v16  ;;  %v1495_v21 = vadd.f32 %v1430_v20, %v1344_v15  ;;  %v1432_v22 = vpop.f32.mrb[15].mxu1 }
 0x376   : > { %1526 = vst [vmem:[#allocation14 + $0x48] sm:$0xff] %v1494_v19  ;;  %v1496_v23 = vadd.f32 %v1432_v22, %v1345_v18 }
 0x377   : > { %1527 = vst [vmem:[#allocation14 + $0x50] sm:$0xff] %v1495_v21 }
 0x378   : > { %1528 = vst [vmem:[#allocation14 + $0x58] sm:$0xff] %v1496_v23 }
 0x37a   : > { %v1436_v26 = vpop.f32.mrb[16].mxu1 }
 0x37b   : > { %v1497_v28 = vadd.f32 %v1436_v26, %v1346_v24  ;;  %v1438_v29 = vpop.f32.mrb[17].mxu1 }
 0x37c   : > { %v1498_v31 = vadd.f32 %v1438_v29, %v1347_v25  ;;  %v1440_v32 = vpop.f32.mrb[18].mxu1 }
 0x37d   : > { %1529 = vst [vmem:[#allocation14 + $0x60] sm:$0xff] %v1497_v28  ;;  %v1499_v33 = vadd.f32 %v1440_v32, %v1348_v27  ;;  %v1442_v34 = vpop.f32.mrb[19].mxu1 }
 0x37e   : > { %1530 = vst [vmem:[#allocation14 + $0x68] sm:$0xff] %v1498_v31  ;;  %v1500_v35 = vadd.f32 %v1442_v34, %v1349_v30 }
 0x37f   : > { %1531 = vst [vmem:[#allocation14 + $0x70] sm:$0xff] %v1499_v33 }
 0x380   : > { %1532 = vst [vmem:[#allocation14 + $0x78] sm:$0xff] %v1500_v35 }
 0x382   : > { %v1446_v38 = vpop.f32.mrb[20].mxu1 }
 0x383   : > { %v1501_v40 = vadd.f32 %v1446_v38, %v1350_v36  ;;  %v1448_v41 = vpop.f32.mrb[21].mxu1 }
 0x384   : > { %v1502_v43 = vadd.f32 %v1448_v41, %v1351_v37  ;;  %v1450_v44 = vpop.f32.mrb[22].mxu1 }
 0x385   : > { %1533 = vst [vmem:[#allocation14 + $0x80] sm:$0xff] %v1501_v40  ;;  %v1503_v45 = vadd.f32 %v1450_v44, %v1352_v39  ;;  %v1452_v46 = vpop.f32.mrb[23].mxu1 }
 0x386   : > { %1534 = vst [vmem:[#allocation14 + $0x88] sm:$0xff] %v1502_v43  ;;  %v1504_v47 = vadd.f32 %v1452_v46, %v1353_v42 }
 0x387   : > { %1535 = vst [vmem:[#allocation14 + $0x90] sm:$0xff] %v1503_v45 }
 0x388   : > { %1536 = vst [vmem:[#allocation14 + $0x98] sm:$0xff] %v1504_v47 }
 0x38a   : > { %v1456_v50 = vpop.f32.mrb[24].mxu1 }
 0x38b   : > { %v1505_v52 = vadd.f32 %v1456_v50, %v1354_v48  ;;  %v1458_v53 = vpop.f32.mrb[25].mxu1 }
 0x38c   : > { %v1506_v55 = vadd.f32 %v1458_v53, %v1355_v49  ;;  %v1460_v56 = vpop.f32.mrb[26].mxu1 }
 0x38d   : > { %1537 = vst [vmem:[#allocation14 + $0xa0] sm:$0xff] %v1505_v52  ;;  %v1507_v57 = vadd.f32 %v1460_v56, %v1356_v51  ;;  %v1462_v58 = vpop.f32.mrb[27].mxu1 }
 0x38e   : > { %1538 = vst [vmem:[#allocation14 + $0xa8] sm:$0xff] %v1506_v55  ;;  %v1508_v59 = vadd.f32 %v1462_v58, %v1357_v54 }
 0x38f   : > { %1539 = vst [vmem:[#allocation14 + $0xb0] sm:$0xff] %v1507_v57 }
 0x390   : > { %1540 = vst [vmem:[#allocation14 + $0xb8] sm:$0xff] %v1508_v59 }
 0x392   : > { %v1466_v63 = vpop.f32.mrb[28].mxu1 }
 0x393   : > { %v1509_v3 = vadd.f32 %v1466_v63, %v1358_v60  ;;  %v1468_v62 = vpop.f32.mrb[29].mxu1 }
 0x394   : > { %v1510_v1 = vadd.f32 %v1468_v62, %v1359_v61  ;;  %v1470_v4 = vpop.f32.mrb[30].mxu1 }
 0x395   : > { %2888 = shalt.err (!%p2885_p2)
}
 0x396   : > { %s2889_s23 = scalar_lea.hbm %s3751_s8, 256  ;;  %s2893_s6 = scalar_lea.hbm %s4006_s7, 1024 }
 0x397   : > { %p2890_p8 = scmp.ne.s32.totalorder %s3751_s8, %s2889_s23  ;;  %p2894_p13 = scmp.lt.u32.totalorder %s3751_s8, %s4006_s7 }
 0x398   : > { %p2895_p0 = scmp.lt.u32.totalorder %s2893_s6, %s2889_s23  ;;  %p2897_p9 = scmp.lt.u32.totalorder %s2889_s23, %s3751_s8 }
 0x399   : > { %p2891_p10 = pnand %p2890_p8, %p4057_p12 }
 0x39a   : > { %p2896_p5 = por %p2895_p0, %p2894_p13 }
 0x39b   : > { %p2892_p3 = pneg %p2891_p10 }
 0x39c   : > { %p2898_p11 = por %p2897_p9, %p2896_p5 }
 0x39e   : > { %p2899_p7 = pnand %p2898_p11, %p2892_p3 }
 0x3a0   : > { %2902 = shalt.err (!%p2899_p7)
}
 0x3a1   : > { %2575 = dma.vmem_to_hbm [thread:$0]  (%p4057_p12), %s3753_s9, 256, %s3751_s8, %s2020_s24   ;;  %1541 = vst [vmem:[#allocation14 + $0xc0] sm:$0xff] %v1509_v3  ;;  %v1511_v5 = vadd.f32 %v1470_v4, %v1360_v0  ;;  %v1472_v6 = vpop.f32.mrb[31].mxu1  ;;  %1542 = vst [vmem:[#allocation14 + $0xc8] sm:$0xff] %v1510_v1  ;;  %v1362_v8 = vld [vmem:[#allocation14 + $0xe0] sm:$0xff] }
 0x3a2   : > { %v1512_v7 = vadd.f32 %v1472_v6, %v1361_v2  ;;  %s3214_s10 = smov [#allocation17]   ;;  %p4058_p4 = scmp.eq.s32.totalorder %s3331_s19, 3 }
 0x3a3   : > { %s2113_s29 = sshll.u32 %s3214_s10, 4  ;;  %1543 = vst [vmem:[#allocation14 + $0xd0] sm:$0xff] %v1511_v5  ;;  %s2114_s29 = int_to_ptr.vmem [resolvable:$true] %s2113_s29 }
 0x3a4   : > { %1544 = vst [vmem:[#allocation14 + $0xd8] sm:$0xff] %v1512_v7  ;;  %s2903_s21 = scalar_lea.vmem %s2114_s29, 256  ;;  %p2910_p8 = scmp.lt.s32.totalorder %s2114_s29, %s2114_s29 }
 0x3a5   : > { %p2904_p1 = scmp.ne.s32.totalorder %s2114_s29, %s2903_s21  ;;  %p2911_p10 = scmp.lt.s32.totalorder %s2903_s21, %s2903_s21 }
 0x3a7   : > { %p2905_p6 = pnand %p2904_p1, %p4058_p4  ;;  %p2912_p3 = por %p2911_p10, %p2910_p8 }
 0x3a9   : > { %p2906_p2 = pneg %p2905_p6 }
 0x3ab   : > { %p2913_p13 = pnand %p2912_p3, %p2906_p2 }
 0x3ad   : > { %2916 = shalt.err (!%p2913_p13)
}
 0x3ae   : > { %s2917_s24 = scalar_lea.hbm %s4010_s11, 256  ;;  %p4059_p5 = pmov %p4058_p4 }
 0x3af   : > { %p2918_p0 = scmp.ne.s32.totalorder %s4010_s11, %s2917_s24  ;;  %p2923_p7 = scmp.lt.u32.totalorder %s2917_s24, %s4010_s11 }
 0x3b1   : > { %p2919_p9 = pnand %p2918_p0, %p4059_p5 }
 0x3b3   : > { %p2920_p11 = pneg %p2919_p9 }
 0x3b5   : > { %p2925_p1 = pnand %p2923_p7, %p2920_p11 }
 0x3b7   : > { %2928 = shalt.err (!%p2925_p1)
}
 0x3b8   : > { %2583 = dma.vmem_to_hbm [thread:$0]  (%p4058_p4), %s2114_s29, 256, %s4010_s11, [#allocation18]   ;;  %v1363_v9 = vld [vmem:[#allocation14 + $0xe8] sm:$0xff]  ;;  %v1476_v10 = vpop.f32.mrb[32].mxu1  ;;  %v1364_v11 = vld [vmem:[#allocation14 + $0xf0] sm:$0xff]  ;;  %v1365_v14 = vld [vmem:[#allocation14 + $0xf8] sm:$0xff] }
 0x3b9   : > { %s3215_s25 = smov [#allocation20]   ;;  %s2490_s10 = sshll.u32 %s3191_s16, 7  ;;  %v1513_v12 = vadd.f32 %v1476_v10, %v1362_v8  ;;  %v1478_v13 = vpop.f32.mrb[33].mxu1 }
 0x3ba   : > { %s2141_s26 = sshll.u32 %s3215_s25, 4  ;;  %p4060_p2 = pmov %p4058_p4  ;;  %s2142_s26 = int_to_ptr.vmem [resolvable:$true] %s2141_s26 }
 0x3bb   : > { %s2929_s21 = scalar_lea.vmem %s2142_s26, 256  ;;  %p2936_p3 = scmp.lt.s32.totalorder %s2142_s26, %s2142_s26 }
 0x3bc   : > { %p2930_p6 = scmp.ne.s32.totalorder %s2142_s26, %s2929_s21  ;;  %p2937_p13 = scmp.lt.s32.totalorder %s2929_s21, %s2929_s21 }
 0x3be   : > { %p2931_p8 = pnand %p2930_p6, %p4060_p2  ;;  %p2938_p0 = por %p2937_p13, %p2936_p3 }
 0x3c0   : > { %p2932_p10 = pneg %p2931_p8 }
 0x3c2   : > { %p2939_p5 = pnand %p2938_p0, %p2932_p10 }
 0x3c4   : > { %2942 = shalt.err (!%p2939_p5)
}
 0x3c5   : > { %s2943_s8 = scalar_lea.hbm %s4012_s13, 256  ;;  %p4061_p11 = pmov %p4060_p2 }
 0x3c6   : > { %p2944_p9 = scmp.ne.s32.totalorder %s4012_s13, %s2943_s8  ;;  %p2949_p4 = scmp.lt.u32.totalorder %s2943_s8, %s4012_s13 }
 0x3c8   : > { %p2945_p7 = pnand %p2944_p9, %p4061_p11 }
 0x3ca   : > { %p2946_p1 = pneg %p2945_p7 }
 0x3cc   : > { %p2951_p6 = pnand %p2949_p4, %p2946_p1 }
 0x3ce   : > { %2954 = shalt.err (!%p2951_p6)
}
 0x3cf   : > { %2587 = dma.vmem_to_hbm [thread:$0]  (%p4060_p2), %s2142_s26, 256, %s4012_s13, [#allocation21]   ;;  %v1514_v15 = vadd.f32 %v1478_v13, %v1363_v9  ;;  %v1480_v16 = vpop.f32.mrb[34].mxu1  ;;  %1545 = vst [vmem:[#allocation14 + $0xe0] sm:$0xff] %v1513_v12 }
 0x3d0   : > { %s4062_s25 = sld [smem:[#allocation40_spill]]  ;;  %s2035_s29 = sshll.u32 %s587_s12, 4  ;;  %v1515_v17 = vadd.f32 %v1480_v16, %v1364_v11  ;;  %v1482_v18 = vpop.f32.mrb[35].mxu1  ;;  %s3827_s29 = int_to_ptr.vmem [resolvable:$true] %s2035_s29 }
 0x3d1   : > { %1546 = vst [vmem:[#allocation14 + $0xe8] sm:$0xff] %v1514_v15  ;;  %v1516_v19 = vadd.f32 %v1482_v18, %v1365_v14  ;;  %s2015_s26 = scalar_lea.sflag [#allocation4], %s3504_s2  ;;  %s2955_s9 = scalar_lea.vmem %s3827_s29, 128 }
 0x3d2   : > { %p2956_p8 = scmp.ne.s32.totalorder %s3827_s29, %s2955_s9 }
 0x3d4   : > { %p2957_p10 = pnand %p2956_p8, %p4057_p12 }
 0x3d6   : > { %s3823_s21 = scalar_lea.hbm %s4062_s25, %s2490_s10  ;;  %p2958_p3 = pneg %p2957_p10 }
 0x3d7   : > { %s3216_s10 = smov [#allocation10]  }
 0x3d8   : > { %s2959_s8 = sshll.u32 %s3216_s10, 4  ;;  %s2960_s8 = int_to_ptr.vmem [resolvable:$false] %s2959_s8 }
 0x3d9   : > { %s2961_s20 = scalar_lea.vmem %s2960_s8, 256  ;;  %p2962_p13 = scmp.lt.s32.totalorder %s3827_s29, %s2960_s8 }
 0x3da   : > { %p2963_p0 = scmp.lt.s32.totalorder %s2961_s20, %s2955_s9 }
 0x3dc   : > { %p2964_p5 = por %p2963_p0, %p2962_p13 }
 0x3de   : > { %p2965_p9 = pnand %p2964_p5, %p2958_p3 }
 0x3e0   : > { %2968 = shalt.err (!%p2965_p9)
}
 0x3e1   : > { %s2969_s2 = scalar_lea.hbm %s3823_s21, 128  ;;  %s2973_s16 = scalar_lea.hbm %s4062_s25, 512 }
 0x3e2   : > { %p2970_p11 = scmp.ne.s32.totalorder %s3823_s21, %s2969_s2  ;;  %p2974_p4 = scmp.lt.u32.totalorder %s3823_s21, %s4062_s25 }
 0x3e3   : > { %p2975_p6 = scmp.lt.u32.totalorder %s2973_s16, %s2969_s2  ;;  %p2977_p8 = scmp.lt.u32.totalorder %s2969_s2, %s3823_s21 }
 0x3e4   : > { %p2971_p7 = pnand %p2970_p11, %p4057_p12 }
 0x3e5   : > { %p2976_p2 = por %p2975_p6, %p2974_p4 }
 0x3e6   : > { %p2972_p1 = pneg %p2971_p7 }
 0x3e7   : > { %p2978_p10 = por %p2977_p8, %p2976_p2 }
 0x3e9   : > { %p2979_p3 = pnand %p2978_p10, %p2972_p1 }
 0x3eb   : > { %2982 = shalt.err (!%p2979_p3)
}
 0x3ec   : > { %2574 = dma.vmem_to_hbm [thread:$0]  (%p4057_p12), %s3827_s29, 128, %s3823_s21, %s2015_s26   ;;  %1547 = vst [vmem:[#allocation14 + $0xf0] sm:$0xff] %v1515_v17  ;;  %1548 = vst [vmem:[#allocation14 + $0xf8] sm:$0xff] %v1516_v19 }
 0x3ed   : > { %s3217_s23 = smov [#allocation13]   ;;  %s2983_s28 = scalar_lea.vmem %s3781_s27, 4096 }
 0x3ee   : > { %s2064_s17 = sshll.u32 %s3217_s23, 4  ;;  %p2984_p13 = scmp.ne.s32.totalorder %s3781_s27, %s2983_s28  ;;  %s3851_s17 = int_to_ptr.vmem [resolvable:$true] %s2064_s17 }
 0x3ef   : > { %p4063_p0 = scmp.eq.s32.totalorder %s3331_s19, 3  ;;  %p2990_p11 = scmp.lt.s32.totalorder %s3781_s27, %s3781_s27 }
 0x3f0   : > { %p2991_p7 = scmp.lt.s32.totalorder %s2983_s28, %s2983_s28 }
 0x3f1   : > { %p2985_p5 = pnand %p2984_p13, %p4063_p0 }
 0x3f2   : > { %p2992_p1 = por %p2991_p7, %p2990_p11 }
 0x3f3   : > { %p2986_p9 = pneg %p2985_p5 }
 0x3f5   : > { %p2993_p4 = pnand %p2992_p1, %p2986_p9 }
 0x3f7   : > { %2996 = shalt.err (!%p2993_p4)
}
 0x3f8   : > { %s4064_s21 = sld [smem:[#allocation42_spill]]  ;;  %p4065_p6 = pmov %p4063_p0 }
 0x3fe   : > { %s2997_s29 = scalar_lea.hbm %s4064_s21, 4096 }
 0x3ff   : > { %p2998_p12 = scmp.ne.s32.totalorder %s4064_s21, %s2997_s29  ;;  %p3003_p10 = scmp.lt.u32.totalorder %s2997_s29, %s4064_s21 }
 0x401   : > { %p2999_p2 = pnand %p2998_p12, %p4065_p6 }
 0x403   : > { %p3000_p8 = pneg %p2999_p2 }
 0x405   : > { %p3005_p3 = pnand %p3003_p10, %p3000_p8 }
 0x407   : > { %3008 = shalt.err (!%p3005_p3)
}
 0x408   : > { %s3218_s20 = smov 256   ;;  %s3219_s2 = smov 16  }
 0x409   : > { %p4066_p13 = pmov %p4063_p0  ;;  %s3009_s16 = scalar_lea.vmem %s3851_s17, 2048 }
 0x40a   : > { %p3010_p0 = scmp.ne.s32.totalorder %s3851_s17, %s3009_s16  ;;  %p4067_p5 = pmov %p4065_p6 }
 0x40b   : > { %2579 = dma.vmem_to_hbm [thread:$0]  (%p4066_p13), %s3781_s27, 4096, %s4064_s21, [#allocation15], %s3218_s20, %s3218_s20, %s3219_s2  }
 0x40c   : > { %p3011_p9 = pnand %p3010_p0, %p4067_p5  ;;  %p3016_p7 = scmp.lt.s32.totalorder %s3851_s17, %s3851_s17 }
 0x40d   : > { %p3017_p1 = scmp.lt.s32.totalorder %s3009_s16, %s3009_s16 }
 0x40e   : > { %p3012_p11 = pneg %p3011_p9 }
 0x40f   : > { %p3018_p4 = por %p3017_p1, %p3016_p7 }
 0x411   : > { %p3019_p12 = pnand %p3018_p4, %p3012_p11 }
 0x413   : > { %3022 = shalt.err (!%p3019_p12)
}
 0x414   : > { %s4068_s23 = sld [smem:[#allocation41_spill]]  ;;  %p4069_p2 = pmov %p4067_p5 }
 0x41a   : > { %s3023_s28 = scalar_lea.hbm %s4068_s23, 2048 }
 0x41b   : > { %p3024_p6 = scmp.ne.s32.totalorder %s4068_s23, %s3023_s28  ;;  %p3029_p3 = scmp.lt.u32.totalorder %s3023_s28, %s4068_s23 }
 0x41d   : > { %p3025_p8 = pnand %p3024_p6, %p4069_p2 }
 0x41f   : > { %p3026_p10 = pneg %p3025_p8 }
 0x421   : > { %p3031_p13 = pnand %p3029_p3, %p3026_p10 }
 0x423   : > { %3034 = shalt.err (!%p3031_p13)
}
 0x424   : > { %s3220_s26 = smov 128   ;;  %s3221_s9 = smov 8  }
 0x425   : > { %p4070_p0 = pmov %p4069_p2  ;;  %s3222_s12 = smov [#allocation19]  }
 0x426   : > { %s2127_s24 = sshll.u32 %s3222_s12, 4  ;;  %s2128_s24 = int_to_ptr.vmem [resolvable:$true] %s2127_s24 }
 0x427   : > { %2577 = dma.vmem_to_hbm [thread:$0]  (%p4070_p0), %s3851_s17, 2048, %s4068_s23, [#allocation12], %s3220_s26, %s3220_s26, %s3221_s9  }
 0x428   : > { %s3035_s16 = scalar_lea.vmem %s2128_s24, 256  ;;  %p4071_p9 = pmov %p4070_p0 }
 0x429   : > { %p3036_p5 = scmp.ne.s32.totalorder %s2128_s24, %s3035_s16  ;;  %p3042_p1 = scmp.lt.s32.totalorder %s2128_s24, %s2128_s24 }
 0x42a   : > { %p3043_p4 = scmp.lt.s32.totalorder %s3035_s16, %s3035_s16 }
 0x42b   : > { %p3037_p11 = pnand %p3036_p5, %p4071_p9 }
 0x42c   : > { %p3044_p12 = por %p3043_p4, %p3042_p1 }
 0x42d   : > { %p3038_p7 = pneg %p3037_p11 }
 0x42f   : > { %p3045_p6 = pnand %p3044_p12, %p3038_p7 }
 0x431   : > { %3048 = shalt.err (!%p3045_p6)
}
 0x432   : > { %s4072_s28 = sld [smem:[#allocation44_spill]]  ;;  %p4073_p8 = pmov %p4070_p0 }
 0x438   : > { %s3049_s14 = scalar_lea.hbm %s4072_s28, 256 }
 0x439   : > { %p3050_p2 = scmp.ne.s32.totalorder %s4072_s28, %s3049_s14  ;;  %p3055_p13 = scmp.lt.u32.totalorder %s3049_s14, %s4072_s28 }
 0x43b   : > { %p3051_p10 = pnand %p3050_p2, %p4073_p8 }
 0x43d   : > { %p3052_p3 = pneg %p3051_p10 }
 0x43f   : > { %p3057_p0 = pnand %p3055_p13, %p3052_p3 }
 0x441   : > { %3060 = shalt.err (!%p3057_p0)
}
 0x442   : > { %p4074_p5 = pmov %p4073_p8  ;;  %s3223_s10 = smov [#allocation22]  }
 0x443   : > { %s2154_s8 = sshll.u32 %s3223_s10, 4  ;;  %s2155_s8 = int_to_ptr.vmem [resolvable:$true] %s2154_s8 }
 0x444   : > { %2585 = dma.vmem_to_hbm [thread:$0]  (%p4074_p5), %s2128_s24, 256, %s4072_s28, [#allocation18]  }
 0x445   : > { %s3061_s12 = scalar_lea.vmem %s2155_s8, 128  ;;  %p4075_p11 = pmov %p4074_p5 }
 0x446   : > { %p3062_p9 = scmp.ne.s32.totalorder %s2155_s8, %s3061_s12  ;;  %p3068_p4 = scmp.lt.s32.totalorder %s2155_s8, %s2155_s8 }
 0x447   : > { %p3069_p12 = scmp.lt.s32.totalorder %s3061_s12, %s3061_s12 }
 0x448   : > { %p3063_p7 = pnand %p3062_p9, %p4075_p11 }
 0x449   : > { %p3070_p6 = por %p3069_p12, %p3068_p4 }
 0x44a   : > { %p3064_p1 = pneg %p3063_p7 }
 0x44c   : > { %p3071_p2 = pnand %p3070_p6, %p3064_p1 }
 0x44e   : > { %3074 = shalt.err (!%p3071_p2)
}
 0x44f   : > { %s4076_s22 = sld [smem:[#allocation45_spill]]  ;;  %p4077_p10 = pmov %p4074_p5 }
 0x455   : > { %s3075_s14 = scalar_lea.hbm %s4076_s22, 128 }
 0x456   : > { %p3076_p8 = scmp.ne.s32.totalorder %s4076_s22, %s3075_s14  ;;  %p3081_p0 = scmp.lt.u32.totalorder %s3075_s14, %s4076_s22 }
 0x458   : > { %p3077_p3 = pnand %p3076_p8, %p4077_p10 }
 0x45a   : > { %p3078_p13 = pneg %p3077_p3 }
 0x45c   : > { %p3083_p5 = pnand %p3081_p0, %p3078_p13 }
 0x45e   : > { %3086 = shalt.err (!%p3083_p5)
}
 0x45f   : > { %p4078_p9 = pmov %p4077_p10  ;;  %v1549_v20 = vld [vmem:[#allocation16] sm:$0xff]  ;;  %v1550_v21 = vld [vmem:[#allocation16 + $0x8] sm:$0xff]  ;;  %v1727_v22 = vpop.f32.mrb[20].mxu0  ;;  %v1551_v23 = vld [vmem:[#allocation16 + $0x10] sm:$0xff]  ;;  %v1827_v36 = vpop.f32.mrb[36].mxu1  ;;  %s3224_s9 = smov [#allocation16]  }
 0x460   : > { %v1886_v24 = vadd.f32 %v1727_v22, %v1549_v20  ;;  %v1729_v25 = vpop.f32.mrb[21].mxu0  ;;  %v1552_v26 = vld [vmem:[#allocation16 + $0x18] sm:$0xff]  ;;  %v1589_v32 = vld [vmem:[#allocation16 + $0x140] sm:$0xff]  ;;  %v1590_v34 = vld [vmem:[#allocation16 + $0x148] sm:$0xff]  ;;  %v1829_v41 = vpop.f32.mrb[37].mxu1  ;;  %s2096_s10 = sshll.u32 %s3224_s9, 4  ;;  %s2097_s10 = int_to_ptr.vmem [resolvable:$true] %s2096_s10 }
 0x461   : > { %2589 = dma.vmem_to_hbm [thread:$0]  (%p4078_p9), %s2155_s8, 128, %s4076_s22, [#allocation21]   ;;  %v1887_v27 = vadd.f32 %v1729_v25, %v1550_v21  ;;  %v1731_v28 = vpop.f32.mrb[22].mxu0  ;;  %v1553_v33 = vld [vmem:[#allocation16 + $0x20] sm:$0xff]  ;;  %v1554_v35 = vld [vmem:[#allocation16 + $0x28] sm:$0xff]  ;;  %v1591_v37 = vld [vmem:[#allocation16 + $0x150] sm:$0xff]  ;;  %v1926_v40 = vadd.f32 %v1827_v36, %v1589_v32  ;;  %v1927_v46 = vadd.f32 %v1829_v41, %v1590_v34 }
 0x462   : > { %1950 = vst [vmem:[#allocation16] sm:$0xff] %v1886_v24  ;;  %v1888_v29 = vadd.f32 %v1731_v28, %v1551_v23  ;;  %v1733_v30 = vpop.f32.mrb[23].mxu0  ;;  %v1555_v39 = vld [vmem:[#allocation16 + $0x30] sm:$0xff]  ;;  %v1592_v42 = vld [vmem:[#allocation16 + $0x158] sm:$0xff]  ;;  %v1831_v47 = vpop.f32.mrb[38].mxu1  ;;  %v1593_v56 = vld [vmem:[#allocation16 + $0x160] sm:$0xff]  ;;  %p4079_p7 = pmov %p4078_p9  ;;  %p3094_p12 = scmp.lt.s32.totalorder %s2097_s10, %s2097_s10 }
 0x463   : > { %1951 = vst [vmem:[#allocation16 + $0x8] sm:$0xff] %v1887_v27  ;;  %v1889_v31 = vadd.f32 %v1733_v30, %v1552_v26  ;;  %v1737_v38 = vpop.f32.mrb[24].mxu0  ;;  %v1556_v45 = vld [vmem:[#allocation16 + $0x38] sm:$0xff]  ;;  %1990 = vst [vmem:[#allocation16 + $0x140] sm:$0xff] %v1926_v40  ;;  %v1928_v50 = vadd.f32 %v1831_v47, %v1591_v37  ;;  %v1833_v51 = vpop.f32.mrb[39].mxu1  ;;  %v1557_v57 = vld [vmem:[#allocation16 + $0x40] sm:$0xff] }
 0x464   : > { %1952 = vst [vmem:[#allocation16 + $0x10] sm:$0xff] %v1888_v29  ;;  %v1890_v43 = vadd.f32 %v1737_v38, %v1553_v33  ;;  %v1739_v44 = vpop.f32.mrb[25].mxu0  ;;  %1991 = vst [vmem:[#allocation16 + $0x148] sm:$0xff] %v1927_v46  ;;  %v1929_v54 = vadd.f32 %v1833_v51, %v1592_v42  ;;  %v1594_v58 = vld [vmem:[#allocation16 + $0x168] sm:$0xff]  ;;  %v1837_v60 = vpop.f32.mrb[40].mxu1  ;;  %v1595_v61 = vld [vmem:[#allocation16 + $0x170] sm:$0xff] }
 0x465   : > { %1953 = vst [vmem:[#allocation16 + $0x18] sm:$0xff] %v1889_v31  ;;  %v1891_v48 = vadd.f32 %v1739_v44, %v1554_v35  ;;  %v1741_v49 = vpop.f32.mrb[26].mxu0  ;;  %1992 = vst [vmem:[#allocation16 + $0x150] sm:$0xff] %v1928_v50  ;;  %v1558_v59 = vld [vmem:[#allocation16 + $0x48] sm:$0xff]  ;;  %v1559_v0 = vld [vmem:[#allocation16 + $0x50] sm:$0xff]  ;;  %v1930_v3 = vadd.f32 %v1837_v60, %v1593_v56  ;;  %v1839_v62 = vpop.f32.mrb[41].mxu1 }
 0x466   : > { %1954 = vst [vmem:[#allocation16 + $0x20] sm:$0xff] %v1890_v43  ;;  %v1892_v52 = vadd.f32 %v1741_v49, %v1555_v39  ;;  %v1743_v53 = vpop.f32.mrb[27].mxu0  ;;  %1993 = vst [vmem:[#allocation16 + $0x158] sm:$0xff] %v1929_v54  ;;  %v1596_v2 = vld [vmem:[#allocation16 + $0x178] sm:$0xff]  ;;  %v1931_v6 = vadd.f32 %v1839_v62, %v1594_v58  ;;  %v1841_v7 = vpop.f32.mrb[42].mxu1  ;;  %v1597_v16 = vld [vmem:[#allocation16 + $0x180] sm:$0xff] }
 0x467   : > { %1955 = vst [vmem:[#allocation16 + $0x28] sm:$0xff] %v1891_v48  ;;  %v1893_v55 = vadd.f32 %v1743_v53, %v1556_v45  ;;  %v1747_v63 = vpop.f32.mrb[28].mxu0  ;;  %v1560_v5 = vld [vmem:[#allocation16 + $0x58] sm:$0xff]  ;;  %1994 = vst [vmem:[#allocation16 + $0x160] sm:$0xff] %v1930_v3  ;;  %v1932_v10 = vadd.f32 %v1841_v7, %v1595_v61  ;;  %v1843_v11 = vpop.f32.mrb[43].mxu1  ;;  %v1561_v17 = vld [vmem:[#allocation16 + $0x60] sm:$0xff] }
 0x468   : > { %1956 = vst [vmem:[#allocation16 + $0x30] sm:$0xff] %v1892_v52  ;;  %v1894_v1 = vadd.f32 %v1747_v63, %v1557_v57  ;;  %v1749_v4 = vpop.f32.mrb[29].mxu0  ;;  %1995 = vst [vmem:[#allocation16 + $0x168] sm:$0xff] %v1931_v6  ;;  %v1933_v14 = vadd.f32 %v1843_v11, %v1596_v2  ;;  %v1598_v18 = vld [vmem:[#allocation16 + $0x188] sm:$0xff]  ;;  %v1847_v20 = vpop.f32.mrb[44].mxu1  ;;  %v1599_v21 = vld [vmem:[#allocation16 + $0x190] sm:$0xff] }
 0x469   : > { %1957 = vst [vmem:[#allocation16 + $0x38] sm:$0xff] %v1893_v55  ;;  %v1895_v8 = vadd.f32 %v1749_v4, %v1558_v59  ;;  %v1751_v9 = vpop.f32.mrb[30].mxu0  ;;  %1996 = vst [vmem:[#allocation16 + $0x170] sm:$0xff] %v1932_v10  ;;  %v1562_v19 = vld [vmem:[#allocation16 + $0x68] sm:$0xff]  ;;  %v1563_v23 = vld [vmem:[#allocation16 + $0x70] sm:$0xff]  ;;  %v1934_v24 = vadd.f32 %v1847_v20, %v1597_v16  ;;  %v1849_v25 = vpop.f32.mrb[45].mxu1 }
 0x46a   : > { %1958 = vst [vmem:[#allocation16 + $0x40] sm:$0xff] %v1894_v1  ;;  %v1896_v12 = vadd.f32 %v1751_v9, %v1559_v0  ;;  %v1753_v13 = vpop.f32.mrb[31].mxu0  ;;  %1997 = vst [vmem:[#allocation16 + $0x178] sm:$0xff] %v1933_v14  ;;  %v1600_v26 = vld [vmem:[#allocation16 + $0x198] sm:$0xff]  ;;  %v1935_v30 = vadd.f32 %v1849_v25, %v1598_v18  ;;  %v1851_v31 = vpop.f32.mrb[46].mxu1  ;;  %v1601_v40 = vld [vmem:[#allocation16 + $0x1a0] sm:$0xff] }
 0x46b   : > { %1959 = vst [vmem:[#allocation16 + $0x48] sm:$0xff] %v1895_v8  ;;  %v1897_v15 = vadd.f32 %v1753_v13, %v1560_v5  ;;  %v1757_v22 = vpop.f32.mrb[32].mxu0  ;;  %v1564_v29 = vld [vmem:[#allocation16 + $0x78] sm:$0xff]  ;;  %1998 = vst [vmem:[#allocation16 + $0x180] sm:$0xff] %v1934_v24  ;;  %v1936_v34 = vadd.f32 %v1851_v31, %v1599_v21  ;;  %v1853_v35 = vpop.f32.mrb[47].mxu1  ;;  %v1565_v41 = vld [vmem:[#allocation16 + $0x80] sm:$0xff] }
 0x46c   : > { %1960 = vst [vmem:[#allocation16 + $0x50] sm:$0xff] %v1896_v12  ;;  %v1898_v27 = vadd.f32 %v1757_v22, %v1561_v17  ;;  %v1759_v28 = vpop.f32.mrb[33].mxu0  ;;  %1999 = vst [vmem:[#allocation16 + $0x188] sm:$0xff] %v1935_v30  ;;  %v1937_v38 = vadd.f32 %v1853_v35, %v1600_v26  ;;  %v1602_v42 = vld [vmem:[#allocation16 + $0x1a8] sm:$0xff]  ;;  %v1857_v44 = vpop.f32.mrb[48].mxu1  ;;  %v1603_v45 = vld [vmem:[#allocation16 + $0x1b0] sm:$0xff] }
 0x46d   : > { %1961 = vst [vmem:[#allocation16 + $0x58] sm:$0xff] %v1897_v15  ;;  %v1899_v32 = vadd.f32 %v1759_v28, %v1562_v19  ;;  %v1761_v33 = vpop.f32.mrb[34].mxu0  ;;  %2000 = vst [vmem:[#allocation16 + $0x190] sm:$0xff] %v1936_v34  ;;  %v1566_v43 = vld [vmem:[#allocation16 + $0x88] sm:$0xff]  ;;  %v1567_v47 = vld [vmem:[#allocation16 + $0x90] sm:$0xff]  ;;  %v1938_v48 = vadd.f32 %v1857_v44, %v1601_v40  ;;  %v1859_v49 = vpop.f32.mrb[49].mxu1 }
 0x46e   : > { %1962 = vst [vmem:[#allocation16 + $0x60] sm:$0xff] %v1898_v27  ;;  %v1900_v36 = vadd.f32 %v1761_v33, %v1563_v23  ;;  %v1763_v37 = vpop.f32.mrb[35].mxu0  ;;  %2001 = vst [vmem:[#allocation16 + $0x198] sm:$0xff] %v1937_v38  ;;  %v1604_v50 = vld [vmem:[#allocation16 + $0x1b8] sm:$0xff]  ;;  %v1939_v54 = vadd.f32 %v1859_v49, %v1602_v42  ;;  %v1861_v55 = vpop.f32.mrb[50].mxu1  ;;  %v1605_v3 = vld [vmem:[#allocation16 + $0x1c0] sm:$0xff] }
 0x46f   : > { %1963 = vst [vmem:[#allocation16 + $0x68] sm:$0xff] %v1899_v32  ;;  %v1901_v39 = vadd.f32 %v1763_v37, %v1564_v29  ;;  %v1767_v46 = vpop.f32.mrb[36].mxu0  ;;  %v1568_v53 = vld [vmem:[#allocation16 + $0x98] sm:$0xff]  ;;  %2002 = vst [vmem:[#allocation16 + $0x1a0] sm:$0xff] %v1938_v48  ;;  %v1940_v58 = vadd.f32 %v1861_v55, %v1603_v45  ;;  %v1863_v59 = vpop.f32.mrb[51].mxu1  ;;  %v1569_v62 = vld [vmem:[#allocation16 + $0xa0] sm:$0xff] }
 0x470   : > { %1964 = vst [vmem:[#allocation16 + $0x70] sm:$0xff] %v1900_v36  ;;  %v1902_v51 = vadd.f32 %v1767_v46, %v1565_v41  ;;  %v1769_v52 = vpop.f32.mrb[37].mxu0  ;;  %2003 = vst [vmem:[#allocation16 + $0x1a8] sm:$0xff] %v1939_v54  ;;  %v1941_v63 = vadd.f32 %v1863_v59, %v1604_v50  ;;  %v1606_v2 = vld [vmem:[#allocation16 + $0x1c8] sm:$0xff]  ;;  %v1867_v4 = vpop.f32.mrb[52].mxu1  ;;  %v1607_v5 = vld [vmem:[#allocation16 + $0x1d0] sm:$0xff] }
 0x471   : > { %1965 = vst [vmem:[#allocation16 + $0x78] sm:$0xff] %v1901_v39  ;;  %v1903_v56 = vadd.f32 %v1769_v52, %v1566_v43  ;;  %v1771_v57 = vpop.f32.mrb[38].mxu0  ;;  %2004 = vst [vmem:[#allocation16 + $0x1b0] sm:$0xff] %v1940_v58  ;;  %v1570_v1 = vld [vmem:[#allocation16 + $0xa8] sm:$0xff]  ;;  %v1571_v7 = vld [vmem:[#allocation16 + $0xb0] sm:$0xff]  ;;  %v1942_v8 = vadd.f32 %v1867_v4, %v1605_v3  ;;  %v1869_v9 = vpop.f32.mrb[53].mxu1 }
 0x472   : > { %1966 = vst [vmem:[#allocation16 + $0x80] sm:$0xff] %v1902_v51  ;;  %v1904_v60 = vadd.f32 %v1771_v57, %v1567_v47  ;;  %v1773_v61 = vpop.f32.mrb[39].mxu0  ;;  %2005 = vst [vmem:[#allocation16 + $0x1b8] sm:$0xff] %v1941_v63  ;;  %v1608_v10 = vld [vmem:[#allocation16 + $0x1d8] sm:$0xff]  ;;  %v1943_v14 = vadd.f32 %v1869_v9, %v1606_v2  ;;  %v1871_v15 = vpop.f32.mrb[54].mxu1  ;;  %v1609_v24 = vld [vmem:[#allocation16 + $0x1e0] sm:$0xff] }
 0x473   : > { %1967 = vst [vmem:[#allocation16 + $0x88] sm:$0xff] %v1903_v56  ;;  %v1905_v0 = vadd.f32 %v1773_v61, %v1568_v53  ;;  %v1777_v6 = vpop.f32.mrb[40].mxu0  ;;  %v1572_v13 = vld [vmem:[#allocation16 + $0xb8] sm:$0xff]  ;;  %2006 = vst [vmem:[#allocation16 + $0x1c0] sm:$0xff] %v1942_v8  ;;  %v1944_v18 = vadd.f32 %v1871_v15, %v1607_v5  ;;  %v1873_v19 = vpop.f32.mrb[55].mxu1  ;;  %v1573_v25 = vld [vmem:[#allocation16 + $0xc0] sm:$0xff] }
 0x474   : > { %1968 = vst [vmem:[#allocation16 + $0x90] sm:$0xff] %v1904_v60  ;;  %v1906_v11 = vadd.f32 %v1777_v6, %v1569_v62  ;;  %v1779_v12 = vpop.f32.mrb[41].mxu0  ;;  %2007 = vst [vmem:[#allocation16 + $0x1c8] sm:$0xff] %v1943_v14  ;;  %v1945_v22 = vadd.f32 %v1873_v19, %v1608_v10  ;;  %v1610_v26 = vld [vmem:[#allocation16 + $0x1e8] sm:$0xff]  ;;  %v1877_v28 = vpop.f32.mrb[56].mxu1  ;;  %v1611_v29 = vld [vmem:[#allocation16 + $0x1f0] sm:$0xff] }
 0x475   : > { %1969 = vst [vmem:[#allocation16 + $0x98] sm:$0xff] %v1905_v0  ;;  %v1907_v16 = vadd.f32 %v1779_v12, %v1570_v1  ;;  %v1781_v17 = vpop.f32.mrb[42].mxu0  ;;  %2008 = vst [vmem:[#allocation16 + $0x1d0] sm:$0xff] %v1944_v18  ;;  %v1574_v27 = vld [vmem:[#allocation16 + $0xc8] sm:$0xff]  ;;  %v1575_v31 = vld [vmem:[#allocation16 + $0xd0] sm:$0xff]  ;;  %v1946_v32 = vadd.f32 %v1877_v28, %v1609_v24  ;;  %v1879_v33 = vpop.f32.mrb[57].mxu1 }
 0x476   : > { %1970 = vst [vmem:[#allocation16 + $0xa0] sm:$0xff] %v1906_v11  ;;  %v1908_v20 = vadd.f32 %v1781_v17, %v1571_v7  ;;  %v1783_v21 = vpop.f32.mrb[43].mxu0  ;;  %2009 = vst [vmem:[#allocation16 + $0x1d8] sm:$0xff] %v1945_v22  ;;  %v1612_v34 = vld [vmem:[#allocation16 + $0x1f8] sm:$0xff]  ;;  %v1947_v38 = vadd.f32 %v1879_v33, %v1610_v26  ;;  %v1881_v39 = vpop.f32.mrb[58].mxu1  ;;  %v1577_v48 = vld [vmem:[#allocation16 + $0xe0] sm:$0xff] }
 0x477   : > { %1971 = vst [vmem:[#allocation16 + $0xa8] sm:$0xff] %v1907_v16  ;;  %v1909_v23 = vadd.f32 %v1783_v21, %v1572_v13  ;;  %v1787_v30 = vpop.f32.mrb[44].mxu0  ;;  %v1576_v37 = vld [vmem:[#allocation16 + $0xd8] sm:$0xff]  ;;  %2010 = vst [vmem:[#allocation16 + $0x1e0] sm:$0xff] %v1946_v32  ;;  %v1948_v42 = vadd.f32 %v1881_v39, %v1611_v29  ;;  %v1883_v43 = vpop.f32.mrb[59].mxu1  ;;  %v1578_v49 = vld [vmem:[#allocation16 + $0xe8] sm:$0xff] }
 0x478   : > { %1972 = vst [vmem:[#allocation16 + $0xb0] sm:$0xff] %v1908_v20  ;;  %v1910_v35 = vadd.f32 %v1787_v30, %v1573_v25  ;;  %v1789_v36 = vpop.f32.mrb[45].mxu0  ;;  %2011 = vst [vmem:[#allocation16 + $0x1e8] sm:$0xff] %v1947_v38  ;;  %v1949_v46 = vadd.f32 %v1883_v43, %v1612_v34  ;;  %v1579_v51 = vld [vmem:[#allocation16 + $0xf0] sm:$0xff]  ;;  %v1580_v54 = vld [vmem:[#allocation16 + $0xf8] sm:$0xff]  ;;  %s3087_s8 = scalar_lea.vmem %s2097_s10, 8192 }
 0x479   : > { %1973 = vst [vmem:[#allocation16 + $0xb8] sm:$0xff] %v1909_v23  ;;  %v1911_v40 = vadd.f32 %v1789_v36, %v1574_v27  ;;  %v1791_v41 = vpop.f32.mrb[46].mxu0  ;;  %2012 = vst [vmem:[#allocation16 + $0x1f0] sm:$0xff] %v1948_v42  ;;  %v1581_v60 = vld [vmem:[#allocation16 + $0x100] sm:$0xff]  ;;  %v1582_v61 = vld [vmem:[#allocation16 + $0x108] sm:$0xff]  ;;  %p3088_p11 = scmp.ne.s32.totalorder %s2097_s10, %s3087_s8  ;;  %p3095_p6 = scmp.lt.s32.totalorder %s3087_s8, %s3087_s8 }
 0x47a   : > { %1974 = vst [vmem:[#allocation16 + $0xc0] sm:$0xff] %v1910_v35  ;;  %v1912_v44 = vadd.f32 %v1791_v41, %v1575_v31  ;;  %v1793_v45 = vpop.f32.mrb[47].mxu0  ;;  %2013 = vst [vmem:[#allocation16 + $0x1f8] sm:$0xff] %v1949_v46  ;;  %v1583_v0 = vld [vmem:[#allocation16 + $0x110] sm:$0xff]  ;;  %v1584_v2 = vld [vmem:[#allocation16 + $0x118] sm:$0xff] }
 0x47b   : > { %1975 = vst [vmem:[#allocation16 + $0xc8] sm:$0xff] %v1911_v40  ;;  %v1913_v47 = vadd.f32 %v1793_v45, %v1576_v37  ;;  %v1797_v50 = vpop.f32.mrb[48].mxu0  ;;  %v1585_v8 = vld [vmem:[#allocation16 + $0x120] sm:$0xff]  ;;  %v1586_v9 = vld [vmem:[#allocation16 + $0x128] sm:$0xff]  ;;  %v1587_v11 = vld [vmem:[#allocation16 + $0x130] sm:$0xff]  ;;  %p3089_p1 = pnand %p3088_p11, %p4079_p7  ;;  %p3096_p2 = por %p3095_p6, %p3094_p12 }
 0x47c   : > { %1976 = vst [vmem:[#allocation16 + $0xd0] sm:$0xff] %v1912_v44  ;;  %v1914_v52 = vadd.f32 %v1797_v50, %v1577_v48  ;;  %v1799_v53 = vpop.f32.mrb[49].mxu0  ;;  %v1588_v14 = vld [vmem:[#allocation16 + $0x138] sm:$0xff] }
 0x47d   : > { %1977 = vst [vmem:[#allocation16 + $0xd8] sm:$0xff] %v1913_v47  ;;  %v1915_v55 = vadd.f32 %v1799_v53, %v1578_v49  ;;  %v1801_v56 = vpop.f32.mrb[50].mxu0  ;;  %p3090_p4 = pneg %p3089_p1 }
 0x47e   : > { %1978 = vst [vmem:[#allocation16 + $0xe0] sm:$0xff] %v1914_v52  ;;  %v1916_v57 = vadd.f32 %v1801_v56, %v1579_v51  ;;  %v1803_v58 = vpop.f32.mrb[51].mxu0 }
 0x47f   : > { %1979 = vst [vmem:[#allocation16 + $0xe8] sm:$0xff] %v1915_v55  ;;  %v1917_v59 = vadd.f32 %v1803_v58, %v1580_v54  ;;  %v1807_v63 = vpop.f32.mrb[52].mxu0  ;;  %p3097_p8 = pnand %p3096_p2, %p3090_p4 }
 0x480   : > { %1980 = vst [vmem:[#allocation16 + $0xf0] sm:$0xff] %v1916_v57  ;;  %v1918_v3 = vadd.f32 %v1807_v63, %v1581_v60  ;;  %v1809_v62 = vpop.f32.mrb[53].mxu0 }
 0x481   : > { %1981 = vst [vmem:[#allocation16 + $0xf8] sm:$0xff] %v1917_v59  ;;  %v1919_v1 = vadd.f32 %v1809_v62, %v1582_v61  ;;  %v1811_v4 = vpop.f32.mrb[54].mxu0 }
 0x482   : > { %1982 = vst [vmem:[#allocation16 + $0x100] sm:$0xff] %v1918_v3  ;;  %v1920_v5 = vadd.f32 %v1811_v4, %v1583_v0  ;;  %v1813_v6 = vpop.f32.mrb[55].mxu0 }
 0x483   : > { %1983 = vst [vmem:[#allocation16 + $0x108] sm:$0xff] %v1919_v1  ;;  %v1921_v7 = vadd.f32 %v1813_v6, %v1584_v2  ;;  %v1817_v10 = vpop.f32.mrb[56].mxu0 }
 0x484   : > { %1984 = vst [vmem:[#allocation16 + $0x110] sm:$0xff] %v1920_v5  ;;  %v1922_v12 = vadd.f32 %v1817_v10, %v1585_v8  ;;  %v1819_v13 = vpop.f32.mrb[57].mxu0 }
 0x485   : > { %1985 = vst [vmem:[#allocation16 + $0x118] sm:$0xff] %v1921_v7  ;;  %v1923_v15 = vadd.f32 %v1819_v13, %v1586_v9  ;;  %v1821_v16 = vpop.f32.mrb[58].mxu0 }
 0x486   : > { %1986 = vst [vmem:[#allocation16 + $0x120] sm:$0xff] %v1922_v12  ;;  %v1924_v17 = vadd.f32 %v1821_v16, %v1587_v11  ;;  %v1823_v18 = vpop.f32.mrb[59].mxu0 }
 0x487   : > { %1987 = vst [vmem:[#allocation16 + $0x128] sm:$0xff] %v1923_v15  ;;  %v1925_v19 = vadd.f32 %v1823_v18, %v1588_v14 }
 0x488   : > { %1988 = vst [vmem:[#allocation16 + $0x130] sm:$0xff] %v1924_v17 }
 0x489   : > { %1989 = vst [vmem:[#allocation16 + $0x138] sm:$0xff] %v1925_v19 }
 0x48a   : > { %3100 = shalt.err (!%p3097_p8)
}
 0x48b   : > { %s4080_s4 = sld [smem:[#allocation43_spill]]  ;;  %p4081_p3 = pmov %p4079_p7 }
 0x491   : > { %s3101_s14 = scalar_lea.hbm %s4080_s4, 8192 }
 0x492   : > { %p3102_p10 = scmp.ne.s32.totalorder %s4080_s4, %s3101_s14  ;;  %p3107_p5 = scmp.lt.u32.totalorder %s3101_s14, %s4080_s4 }
 0x494   : > { %p3103_p13 = pnand %p3102_p10, %p4081_p3 }
 0x496   : > { %p3104_p0 = pneg %p3103_p13 }
 0x498   : > { %p3109_p9 = pnand %p3107_p5, %p3104_p0 }
 0x49a   : > { %3112 = shalt.err (!%p3109_p9)
}
 0x49b   : > { %p4082_p11 = pmov %p4081_p3  ;;  %p4083_p7 = pmov %p4081_p3 }
 0x49d   : > { %2581 = dma.vmem_to_hbm [thread:$0]  (%p4082_p11), %s2097_s10, 8192, %s4080_s4, [#allocation15], %s3218_s20, %s3218_s20, %s3219_s2  }
 0x49e   : > { %3154 = dma.done.wait (%p4083_p7), [#allocation12], 2048   ;;  %p4084_p1 = pmov %p4081_p3 }
 0x4a0   : > { %3156 = vsyncadd (%p4084_p1), [#allocation12], 4294965248  ;;  %p4085_p4 = pmov %p4084_p1 }
 0x4a1   : > { %p4086_p12 = pmov %p4084_p1 }
 0x4a2   : > { %3158 = dma.done.wait (%p4085_p4), [#allocation15], 12288  }
 0x4a3   : > { %3160 = vsyncadd (%p4086_p12), [#allocation15], 4294955008  ;;  %p4087_p6 = pmov %p4084_p1 }
 0x4a4   : > { %p4088_p2 = pmov %p4084_p1 }
 0x4a5   : > { %3162 = dma.done.wait (%p4087_p6), [#allocation18], 512  }
 0x4a6   : > { %3164 = vsyncadd (%p4088_p2), [#allocation18], 4294966784  ;;  %p4089_p8 = pmov %p4084_p1 }
 0x4a7   : > { %p4090_p10 = pmov %p4084_p1 }
 0x4a8   : > { %3166 = dma.done.wait (%p4089_p8), [#allocation21], 384  }
 0x4a9   : > { %3168 = vsyncadd (%p4090_p10), [#allocation21], 4294966912 }
 0x4aa PF: > { %s4091_s20 = sld [smem:[#allocation33_spill]]  ;;  %s4092_s2 = sld [smem:[#allocation35_spill]] }
 0x4ab   : > { %p2646_p3 = scmp.ge.s32.totalorder %s3199_s18, 2 }
 0x4b0   : > { %s2194_s9 = sand.u32 1, %s4091_s20   ;;  %p4093_p13 = scmp.ne.s32.totalorder %s4092_s2, 0 }
 0x4b1   : > { %s2195_s10 = scalar_lea.sflag [#allocation4], %s2194_s9 }
 0x4b2   : > { %p2621_p0 = pnand %p2646_p3, %p4093_p13 }
 0x4b4   : > { %3170 = dma.done.wait (!%p2621_p0), %s2195_s10, 128  }
 0x4b5   : > { %3172 = vsyncadd (!%p2621_p0), %s2195_s10, 4294967168  ;;  %s4094_s8 = sadd.s32 4294967294, %s3199_s18  }
 0x4b6   : > { %s2203_s12 = sand.u32 1, %s4094_s8  }
 0x4b7   : > { %s2204_s16 = scalar_lea.sflag [#allocation12], %s2203_s12 }
 0x4b8   : > { %3174 = dma.done.wait (!%p2621_p0), %s2204_s16, 256  }
 0x4b9   : > { %3176 = vsyncadd (!%p2621_p0), %s2204_s16, 4294967040  ;;  %s41_s18 = sadd.s32 1, %s3199_s18   ;;  %s4095_s19 = sld [smem:[#allocation37_spill]] }
 0x4ba   : > { %p38_p5 = scmp.ge.s32.totalorder %s41_s18, 6   ;;  %s4096_s16 = sld [smem:[#allocation34_spill]] }
 0x4bb   : > { %s4097_s17 = sld [smem:[#allocation36_spill]]  ;;  %s4098_s29 = smov %s3183_s30 }
 0x4bc   : > { %s4099_s30 = smov %s3187_s15  ;;  %40 = sbr.rel (!%p38_p5) target bundleno = 23 (0x17), region = 194 }
 0x4bf   : > { %s4100_s15 = smov %s4095_s19 }
 0x4c3   :  { %2209 = vsyncpa [#allocation3], 1 }
 0x4c4   :  { %2211 = vsyncpa [#allocation3 + $0x1], 1 }
 0x4c5   :  { %2212 = vsyncpa [#allocation6], 1 }
 0x4c6   :  { %2214 = vsyncpa [#allocation6 + $0x1], 1 }
 0x4c7   :  { %2215 = vsyncpa [#allocation9], 1 }
 0x4c8   :  { %2216 = vsyncpa [#allocation4], 1 }
 0x4c9   :  { %2218 = vsyncpa [#allocation4 + $0x1], 1 }
 0x4ca   :  { %2219 = vsyncpa [#allocation12], 1 }
 0x4cb   :  { %2221 = vsyncpa [#allocation12 + $0x1], 1 }
 0x4cc   :  { %2222 = vsyncpa [#allocation15], 1 }
 0x4cd   :  { %2223 = vsyncpa [#allocation18], 1 }
 0x4ce   :  { %2224 = vsyncpa [#allocation21], 1 }

</bundles_post_ra>
